<compile_context>
chip_gen: v6e
topology: v6e:2x2x1
jax: 0.10.0
libtpu: 0.0.40
codegen_flags: <defaults>
</compile_context>

<pallas_src>
import functools

import numpy as np
import jax
import jax.numpy as jnp
from jax import lax
from jax.experimental import pallas as pl
from jax.experimental.pallas import tpu as pltpu


# ----------------------------- fused Pallas kernel --------------------------

def _fused_dqn_kernel(
    p1_ref, w1_ref, b1_ref,            # conv1 (block-diag over ow2), bf16
    wd2_ref, bd2_ref,                  # conv2 depthwise taps (tiled over ow2)
    wp2_ref, bp2_ref,                  # conv2 pointwise (block-diag over ow2)
    wd3_ref, bd3_ref,                  # conv3 depthwise taps (tiled over ow3)
    wp3_ref, bp3_ref,                  # conv3 pointwise (block-diag over ow3)
    w1cat_ref, b1cat_ref,              # value|advantage hidden layer (concat)
    wv2_ref, bv2_ref, wa2_ref, ba2_ref,
    q_ref,                             # (B, n_actions)
    y1_scr, y2_scr, y3_scr,            # VMEM scratch: intermediates stay on-chip
    *, batch, oh2, ow2, oh3, ow3, c1, c2, hid):
    f32 = jnp.float32
    rows2 = batch * oh2

    # conv1: one bf16 MXU matmul.  rows=(dw2-tap, b, oh2), cols=(ow2, c1)
    y1 = jnp.dot(p1_ref[...], w1_ref[...], preferred_element_type=f32)
    y1_scr[...] = jnp.maximum(y1 + b1_ref[...], 0.0)

    # conv2 depthwise (k=4, s=2): static unrolled VPU FMA over the 16 taps
    acc2 = jnp.zeros((rows2, ow2 * c1), f32)
    for t in range(16):
        acc2 = acc2 + y1_scr[t * rows2:(t + 1) * rows2, :] * wd2_ref[t:t + 1, :]
    y2 = jnp.maximum(acc2 + bd2_ref[...], 0.0)

    # conv2 pointwise: block-diagonal (ow2*c1, ow2*c2) matmul
    y2 = jnp.dot(y2, wp2_ref[...], preferred_element_type=f32)
    y2_scr[...] = jnp.maximum(y2 + bp2_ref[...], 0.0)   # rows=(b,oh2), cols=(ow2,c2)

    for b in range(batch):
        # conv3 depthwise (k=3, s=1): unrolled FMA over 9 taps, contiguous slabs
        acc3 = jnp.zeros((oh3, ow3 * c2), f32)
        for ki in range(3):
            for kj in range(3):
                t = ki * 3 + kj
                slab = y2_scr[b * oh2 + ki:b * oh2 + ki + oh3,
                              kj * c2:kj * c2 + ow3 * c2]
                acc3 = acc3 + slab * wd3_ref[t:t + 1, :]
        y3 = jnp.maximum(acc3 + bd3_ref[...], 0.0)

        # conv3 pointwise: block-diagonal (ow3*c2, ow3*c2) matmul
        y3 = jnp.dot(y3, wp3_ref[...], preferred_element_type=f32)
        y3_scr[...] = jnp.maximum(y3 + bp3_ref[...], 0.0)   # rows=oh3, cols=(ow3,c2)

        # dueling head: value|advantage fused into one (feat, 2*hid) weight whose
        # rows are already permuted for our NHWC-flatten ordering.
        h = jnp.zeros((1, 2 * hid), f32)
        blk = ow3 * c2
        for r in range(oh3):
            h = h + jnp.dot(y3_scr[r:r + 1, :],
                            w1cat_ref[r * blk:(r + 1) * blk, :],
                            preferred_element_type=f32)
        h = jnp.maximum(h + b1cat_ref[...], 0.0)
        hv = h[:, :hid]
        ha = h[:, hid:]
        v = jnp.dot(hv, wv2_ref[...], preferred_element_type=f32) + bv2_ref[...]
        a = jnp.dot(ha, wa2_ref[...], preferred_element_type=f32) + ba2_ref[...]
        q_ref[b:b + 1, :] = v + a - jnp.mean(a, axis=1, keepdims=True)


# ------------------------------- JAX glue ----------------------------------

def conv_dims(input_shape):
    _, H, W = input_shape
    co = lambda s, k, st: (s - k) // st + 1
    oh1, ow1 = co(H, 8, 4), co(W, 8, 4)
    oh2, ow2 = co(oh1, 4, 2), co(ow1, 4, 2)
    oh3, ow3 = co(oh2, 3, 1), co(ow2, 3, 1)
    return oh1, ow1, oh2, ow2, oh3, ow3


def _extract_patches(x, kh, kw, sh, sw):
    """im2col patch extraction. Returns (B, OH, OW, kh*kw, C)."""
    B, H, W, C = x.shape
    oh = (H - kh) // sh + 1
    ow = (W - kw) // sw + 1
    cols = []
    for i in range(kh):
        for j in range(kw):
            cols.append(x[:, i:i + sh * (oh - 1) + 1:sh,
                          j:j + sw * (ow - 1) + 1:sw, :])
    return jnp.stack(cols, axis=3), oh, ow


def prepare_weights(params, input_shape, n_actions):
    """One-time repack of torch-layout weights into kernel-ready layouts."""
    c_in, _, _ = input_shape
    _, _, oh2, ow2, oh3, ow3 = conv_dims(input_shape)
    f32 = jnp.float32

    # conv1 -> block-diagonal over ow2 output groups (bf16 for the MXU)
    w1 = jnp.transpose(params['conv1_w'], (2, 3, 1, 0)).reshape(64 * c_in, 16)
    w1_blk = jnp.kron(jnp.eye(ow2, dtype=f32), w1.astype(f32)).astype(jnp.bfloat16)
    b1 = jnp.tile(params['conv1_b'], ow2).reshape(1, -1).astype(f32)

    # conv2 depthwise taps, tiled across ow2 column groups
    wd2 = jnp.transpose(params['dw2_w'][:, 0], (1, 2, 0)).reshape(16, 16)
    wd2_t = jnp.tile(wd2, (1, ow2)).astype(f32)
    bd2 = jnp.tile(params['dw2_b'], ow2).reshape(1, -1).astype(f32)

    # conv2 pointwise -> block-diagonal over ow2
    wp2 = params['pw2_w'][:, :, 0, 0].T
    wp2_blk = jnp.kron(jnp.eye(ow2, dtype=f32), wp2).astype(f32)
    bp2 = jnp.tile(params['pw2_b'], ow2).reshape(1, -1).astype(f32)

    # conv3 depthwise / pointwise
    wd3 = jnp.transpose(params['dw3_w'][:, 0], (1, 2, 0)).reshape(9, 32)
    wd3_t = jnp.tile(wd3, (1, ow3)).astype(f32)
    bd3 = jnp.tile(params['dw3_b'], ow3).reshape(1, -1).astype(f32)
    wp3 = params['pw3_w'][:, :, 0, 0].T
    wp3_blk = jnp.kron(jnp.eye(ow3, dtype=f32), wp3).astype(f32)
    bp3 = jnp.tile(params['pw3_b'], ow3).reshape(1, -1).astype(f32)

    # head: fold torch's NCHW flatten ordering into the weights and concatenate
    # the value / advantage first layers into one (feat, 256) matmul.
    def perm(w):   # (128, 32*oh3*ow3) NCHW-flatten cols -> (oh3, ow3, c) cols
        return w.reshape(128, 32, oh3, ow3).transpose(0, 2, 3, 1).reshape(128, -1)

    w1cat = jnp.concatenate([perm(params['v1_w']).T, perm(params['a1_w']).T],
                            axis=1).astype(f32)
    b1cat = jnp.concatenate([params['v1_b'], params['a1_b']]).reshape(1, -1).astype(f32)
    wv2 = params['v2_w'].T.astype(f32)
    bv2 = params['v2_b'].reshape(1, -1).astype(f32)
    wa2 = params['a2_w'].T.astype(f32)
    ba2 = params['a2_b'].reshape(1, -1).astype(f32)

    return dict(w1_blk=w1_blk, b1=b1, wd2=wd2_t, bd2=bd2, wp2=wp2_blk, bp2=bp2,
                wd3=wd3_t, bd3=bd3, wp3=wp3_blk, bp3=bp3,
                w1cat=w1cat, b1cat=b1cat, wv2=wv2, bv2=bv2, wa2=wa2, ba2=ba2)


def forward_pallas(wts, x_nchw, input_shape, n_actions):
    """Fused Pallas implementation of EfficientDuelingDQN.forward (x is NCHW)."""
    c_in, _, _ = input_shape
    oh1, ow1, oh2, ow2, oh3, ow3 = conv_dims(input_shape)
    B = x_nchw.shape[0]

    x = jnp.transpose(x_nchw, (0, 2, 3, 1)).astype(jnp.bfloat16)       # NHWC, bf16
    p1, _, _ = _extract_patches(x, 8, 8, 4, 4)                         # (B,oh1,ow1,64,C)
    p1 = p1.reshape(B, oh1, ow1, 64 * c_in)

    # Duplicate/reorder conv1 patches per conv2-depthwise tap so every later
    # stage only needs contiguous VMEM slices.  rows=(tap, b, oh2), cols=(ow2, K)
    taps = []
    for ki in range(4):
        for kj in range(4):
            taps.append(p1[:, ki:ki + 2 * (oh2 - 1) + 1:2,
                           kj:kj + 2 * (ow2 - 1) + 1:2, :])
    p1_dup = jnp.stack(taps, axis=0).reshape(16 * B * oh2, ow2 * 64 * c_in)

    kernel = functools.partial(_fused_dqn_kernel, batch=B, oh2=oh2, ow2=ow2,
                               oh3=oh3, ow3=ow3, c1=16, c2=32, hid=128)
    vmem = pl.BlockSpec(memory_space=pltpu.MemorySpace.VMEM)
    args = (p1_dup, wts['w1_blk'], wts['b1'], wts['wd2'], wts['bd2'],
            wts['wp2'], wts['bp2'], wts['wd3'], wts['bd3'],
            wts['wp3'], wts['bp3'], wts['w1cat'], wts['b1cat'],
            wts['wv2'], wts['bv2'], wts['wa2'], wts['ba2'])
    return pl.pallas_call(
        kernel,
        out_shape=jax.ShapeDtypeStruct((B, n_actions), jnp.float32),
        in_specs=[vmem] * len(args),
        out_specs=vmem,
        scratch_shapes=[
            pltpu.VMEM((16 * B * oh2, ow2 * 16), jnp.float32),   # y1
            pltpu.VMEM((B * oh2, ow2 * 32), jnp.float32),        # y2
            pltpu.VMEM((oh3, ow3 * 32), jnp.float32),            # y3 (per batch)
        ],
    )(*args)


# ------------------------------ init & reference ---------------------------

def init_params(key, input_shape, n_actions):
    """Deterministic kaiming_normal (fan_out, relu) weights in torch layouts."""
    c_in, H, W = input_shape
    _, _, _, _, oh3, ow3 = conv_dims(input_shape)
    conv_out = oh3 * ow3 * 32
    ks = jax.random.split(key, 9)

    def kconv(k, o, i, kh, kw):                       # torch (O, I, kh, kw)
        std = (2.0 / (o * kh * kw)) ** 0.5
        return std * jax.random.normal(k, (o, i, kh, kw), jnp.float32)

    def klin(k, o, i):                                # torch (O, I)
        std = (2.0 / o) ** 0.5
        return std * jax.random.normal(k, (o, i), jnp.float32)

    z = lambda *s: jnp.zeros(s, jnp.float32)
    return dict(
        conv1_w=kconv(ks[0], 16, c_in, 8, 8), conv1_b=z(16),
        dw2_w=kconv(ks[1], 16, 1, 4, 4),      dw2_b=z(16),
        pw2_w=kconv(ks[2], 32, 16, 1, 1),     pw2_b=z(32),
        dw3_w=kconv(ks[3], 32, 1, 3, 3),      dw3_b=z(32),
        pw3_w=kconv(ks[4], 32, 32, 1, 1),     pw3_b=z(32),
        v1_w=klin(ks[5], 128, conv_out),      v1_b=z(128),
        v2_w=klin(ks[6], 1, 128),             v2_b=z(1),
        a1_w=klin(ks[7], 128, conv_out),      a1_b=z(128),
        a2_w=klin(ks[8], n_actions, 128),     a2_b=z(n_actions),
    )


def forward_ref(params, x_nchw):
    """Pure-JAX reference (lax.conv, HIGHEST precision) for verification."""
    x = jnp.transpose(x_nchw, (0, 2, 3, 1)).astype(jnp.float32)
    hi = lax.Precision.HIGHEST

    def conv(h, w_torch, b, stride, groups=1):
        w_hwio = jnp.transpose(w_torch, (2, 3, 1, 0))
        y = lax.conv_general_dilated(h, w_hwio, (stride, stride), 'VALID',
                                     dimension_numbers=('NHWC', 'HWIO', 'NHWC'),
                                     feature_group_count=groups, precision=hi)
        return jax.nn.relu(y + b)

    y = conv(x, params['conv1_w'], params['conv1_b'], 4)
    y = conv(y, params['dw2_w'], params['dw2_b'], 2, groups=16)
    y = conv(y, params['pw2_w'], params['pw2_b'], 1)
    y = conv(y, params['dw3_w'], params['dw3_b'], 1, groups=32)
    y = conv(y, params['pw3_w'], params['pw3_b'], 1)
    B = y.shape[0]
    feat = jnp.transpose(y, (0, 3, 1, 2)).reshape(B, -1)
    mm = functools.partial(jnp.dot, precision=hi)
    hv = jax.nn.relu(mm(feat, params['v1_w'].T) + params['v1_b'])
    v = mm(hv, params['v2_w'].T) + params['v2_b']
    ha = jax.nn.relu(mm(feat, params['a1_w'].T) + params['a1_b'])
    a = mm(ha, params['a2_w'].T) + params['a2_b']
    return v + a - jnp.mean(a, axis=1, keepdims=True)


if __name__ == "__main__":
    input_shape = (4, 52, 52)      # (C, H, W): conv stack -> 12 -> 5 -> 3 spatial
    n_actions = 6
    batch = 2

    params = init_params(jax.random.PRNGKey(0), input_shape, n_actions)
    x = jax.random.normal(jax.random.PRNGKey(1), (batch, *input_shape), jnp.float32)

    wts = prepare_weights(params, input_shape, n_actions)     # one-time repack
    fwd = jax.jit(functools.partial(forward_pallas, input_shape=input_shape,
                                    n_actions=n_actions))
    q = jax.block_until_ready(fwd(wts, x))

    q_ref = forward_ref(params, x)
    # bf16 MXU inputs + default matmul precision vs. a HIGHEST-precision ref.
    np.testing.assert_allclose(np.asarray(q), np.asarray(q_ref), rtol=5e-2, atol=2e-2)
    assert q.shape == (batch, n_actions)

    print("KERNEL_OK")
</pallas_src>

<mosaic_0001>
module attributes {stable_mosaic.version = 11 : i64} {
  func.func @_fused_dqn_kernel(%arg0: memref<160x1280xbf16, #tpu.memory_space<vmem>>, %arg1: memref<1280x80xbf16, #tpu.memory_space<vmem>>, %arg2: memref<1x80xf32, #tpu.memory_space<vmem>>, %arg3: memref<16x80xf32, #tpu.memory_space<vmem>>, %arg4: memref<1x80xf32, #tpu.memory_space<vmem>>, %arg5: memref<80x160xf32, #tpu.memory_space<vmem>>, %arg6: memref<1x160xf32, #tpu.memory_space<vmem>>, %arg7: memref<9x96xf32, #tpu.memory_space<vmem>>, %arg8: memref<1x96xf32, #tpu.memory_space<vmem>>, %arg9: memref<96x96xf32, #tpu.memory_space<vmem>>, %arg10: memref<1x96xf32, #tpu.memory_space<vmem>>, %arg11: memref<288x256xf32, #tpu.memory_space<vmem>>, %arg12: memref<1x256xf32, #tpu.memory_space<vmem>>, %arg13: memref<128x1xf32, #tpu.memory_space<vmem>>, %arg14: memref<1x1xf32, #tpu.memory_space<vmem>>, %arg15: memref<128x6xf32, #tpu.memory_space<vmem>>, %arg16: memref<1x6xf32, #tpu.memory_space<vmem>>, %arg17: memref<2x6xf32, #tpu.memory_space<vmem>>, %arg18: memref<160x80xf32, #tpu.memory_space<vmem>>, %arg19: memref<10x160xf32, #tpu.memory_space<vmem>>, %arg20: memref<3x96xf32, #tpu.memory_space<vmem>>) attributes {dimension_semantics = [], scalar_prefetch = 0 : i64, scratch_operands = 3 : i64, tpu.core_type = #tpu.core_type<tc>} {
    %c0 = arith.constant 0 : index
    %c0_0 = arith.constant 0 : index
    %0 = vector.load %arg0[%c0, %c0_0] : memref<160x1280xbf16, #tpu.memory_space<vmem>>, vector<160x1280xbf16>
    %c0_1 = arith.constant 0 : index
    %c0_2 = arith.constant 0 : index
    %1 = vector.load %arg1[%c0_1, %c0_2] : memref<1280x80xbf16, #tpu.memory_space<vmem>>, vector<1280x80xbf16>
    %cst = arith.constant dense<0.000000e+00> : vector<160x80xf32>
    %2 = tpu.matmul %0, %1, %cst {dimension_numbers = #tpu.dot_dimension_numbers<[1], [0], [0], [1], [0, 0, 1, 1], [], []>} : vector<160x1280xbf16>, vector<1280x80xbf16>, vector<160x80xf32> -> vector<160x80xf32>
    %c0_3 = arith.constant 0 : index
    %c0_4 = arith.constant 0 : index
    %3 = vector.load %arg2[%c0_3, %c0_4] : memref<1x80xf32, #tpu.memory_space<vmem>>, vector<1x80xf32>
    %4 = vector.broadcast %3 : vector<1x80xf32> to vector<160x80xf32>
    %5 = arith.addf %2, %4 : vector<160x80xf32>
    %cst_5 = arith.constant 0.000000e+00 : f32
    %6 = vector.broadcast %cst_5 : f32 to vector<160x80xf32>
    %7 = arith.maximumf %5, %6 : vector<160x80xf32>
    %c0_6 = arith.constant 0 : index
    %c0_7 = arith.constant 0 : index
    %8 = vector.load %arg18[%c0_6, %c0_7] : memref<160x80xf32, #tpu.memory_space<vmem>>, vector<160x80xf32>
    tpu.vector_store %arg18[%c0_6, %c0_7], %7 {strides = array<i32>} : memref<160x80xf32, #tpu.memory_space<vmem>>, vector<160x80xf32>,
    %cst_8 = arith.constant 0.000000e+00 : f32
    %9 = vector.broadcast %cst_8 : f32 to vector<10x80xf32>
    %c0_9 = arith.constant 0 : index
    %c0_10 = arith.constant 0 : index
    %10 = vector.load %arg18[%c0_9, %c0_10] : memref<160x80xf32, #tpu.memory_space<vmem>>, vector<10x80xf32>
    %c0_11 = arith.constant 0 : index
    %c0_12 = arith.constant 0 : index
    %11 = vector.load %arg3[%c0_11, %c0_12] : memref<16x80xf32, #tpu.memory_space<vmem>>, vector<1x80xf32>
    %12 = vector.broadcast %11 : vector<1x80xf32> to vector<10x80xf32>
    %13 = arith.mulf %10, %12 : vector<10x80xf32>
    %14 = arith.addf %9, %13 : vector<10x80xf32>
    %c10 = arith.constant 10 : index
    %c0_13 = arith.constant 0 : index
    %15 = vector.load %arg18[%c10, %c0_13] : memref<160x80xf32, #tpu.memory_space<vmem>>, vector<10x80xf32>
    %c1 = arith.constant 1 : index
    %c0_14 = arith.constant 0 : index
    %16 = vector.load %arg3[%c1, %c0_14] : memref<16x80xf32, #tpu.memory_space<vmem>>, vector<1x80xf32>
    %17 = vector.broadcast %16 : vector<1x80xf32> to vector<10x80xf32>
    %18 = arith.mulf %15, %17 : vector<10x80xf32>
    %19 = arith.addf %14, %18 : vector<10x80xf32>
    %c20 = arith.constant 20 : index
    %c0_15 = arith.constant 0 : index
    %20 = vector.load %arg18[%c20, %c0_15] : memref<160x80xf32, #tpu.memory_space<vmem>>, vector<10x80xf32>
    %c2 = arith.constant 2 : index
    %c0_16 = arith.constant 0 : index
    %21 = vector.load %arg3[%c2, %c0_16] : memref<16x80xf32, #tpu.memory_space<vmem>>, vector<1x80xf32>
    %22 = vector.broadcast %21 : vector<1x80xf32> to vector<10x80xf32>
    %23 = arith.mulf %20, %22 : vector<10x80xf32>
    %24 = arith.addf %19, %23 : vector<10x80xf32>
    %c30 = arith.constant 30 : index
    %c0_17 = arith.constant 0 : index
    %25 = vector.load %arg18[%c30, %c0_17] : memref<160x80xf32, #tpu.memory_space<vmem>>, vector<10x80xf32>
    %c3 = arith.constant 3 : index
    %c0_18 = arith.constant 0 : index
    %26 = vector.load %arg3[%c3, %c0_18] : memref<16x80xf32, #tpu.memory_space<vmem>>, vector<1x80xf32>
    %27 = vector.broadcast %26 : vector<1x80xf32> to vector<10x80xf32>
    %28 = arith.mulf %25, %27 : vector<10x80xf32>
    %29 = arith.addf %24, %28 : vector<10x80xf32>
    %c40 = arith.constant 40 : index
    %c0_19 = arith.constant 0 : index
    %30 = vector.load %arg18[%c40, %c0_19] : memref<160x80xf32, #tpu.memory_space<vmem>>, vector<10x80xf32>
    %c4 = arith.constant 4 : index
    %c0_20 = arith.constant 0 : index
    %31 = vector.load %arg3[%c4, %c0_20] : memref<16x80xf32, #tpu.memory_space<vmem>>, vector<1x80xf32>
    %32 = vector.broadcast %31 : vector<1x80xf32> to vector<10x80xf32>
    %33 = arith.mulf %30, %32 : vector<10x80xf32>
    %34 = arith.addf %29, %33 : vector<10x80xf32>
    %c50 = arith.constant 50 : index
    %c0_21 = arith.constant 0 : index
    %35 = vector.load %arg18[%c50, %c0_21] : memref<160x80xf32, #tpu.memory_space<vmem>>, vector<10x80xf32>
    %c5 = arith.constant 5 : index
    %c0_22 = arith.constant 0 : index
    %36 = vector.load %arg3[%c5, %c0_22] : memref<16x80xf32, #tpu.memory_space<vmem>>, vector<1x80xf32>
    %37 = vector.broadcast %36 : vector<1x80xf32> to vector<10x80xf32>
    %38 = arith.mulf %35, %37 : vector<10x80xf32>
    %39 = arith.addf %34, %38 : vector<10x80xf32>
    %c60 = arith.constant 60 : index
    %c0_23 = arith.constant 0 : index
    %40 = vector.load %arg18[%c60, %c0_23] : memref<160x80xf32, #tpu.memory_space<vmem>>, vector<10x80xf32>
    %c6 = arith.constant 6 : index
    %c0_24 = arith.constant 0 : index
    %41 = vector.load %arg3[%c6, %c0_24] : memref<16x80xf32, #tpu.memory_space<vmem>>, vector<1x80xf32>
    %42 = vector.broadcast %41 : vector<1x80xf32> to vector<10x80xf32>
    %43 = arith.mulf %40, %42 : vector<10x80xf32>
    %44 = arith.addf %39, %43 : vector<10x80xf32>
    %c70 = arith.constant 70 : index
    %c0_25 = arith.constant 0 : index
    %45 = vector.load %arg18[%c70, %c0_25] : memref<160x80xf32, #tpu.memory_space<vmem>>, vector<10x80xf32>
    %c7 = arith.constant 7 : index
    %c0_26 = arith.constant 0 : index
    %46 = vector.load %arg3[%c7, %c0_26] : memref<16x80xf32, #tpu.memory_space<vmem>>, vector<1x80xf32>
    %47 = vector.broadcast %46 : vector<1x80xf32> to vector<10x80xf32>
    %48 = arith.mulf %45, %47 : vector<10x80xf32>
    %49 = arith.addf %44, %48 : vector<10x80xf32>
    %c80 = arith.constant 80 : index
    %c0_27 = arith.constant 0 : index
    %50 = vector.load %arg18[%c80, %c0_27] : memref<160x80xf32, #tpu.memory_space<vmem>>, vector<10x80xf32>
    %c8 = arith.constant 8 : index
    %c0_28 = arith.constant 0 : index
    %51 = vector.load %arg3[%c8, %c0_28] : memref<16x80xf32, #tpu.memory_space<vmem>>, vector<1x80xf32>
    %52 = vector.broadcast %51 : vector<1x80xf32> to vector<10x80xf32>
    %53 = arith.mulf %50, %52 : vector<10x80xf32>
    %54 = arith.addf %49, %53 : vector<10x80xf32>
    %c90 = arith.constant 90 : index
    %c0_29 = arith.constant 0 : index
    %55 = vector.load %arg18[%c90, %c0_29] : memref<160x80xf32, #tpu.memory_space<vmem>>, vector<10x80xf32>
    %c9 = arith.constant 9 : index
    %c0_30 = arith.constant 0 : index
    %56 = vector.load %arg3[%c9, %c0_30] : memref<16x80xf32, #tpu.memory_space<vmem>>, vector<1x80xf32>
    %57 = vector.broadcast %56 : vector<1x80xf32> to vector<10x80xf32>
    %58 = arith.mulf %55, %57 : vector<10x80xf32>
    %59 = arith.addf %54, %58 : vector<10x80xf32>
    %c100 = arith.constant 100 : index
    %c0_31 = arith.constant 0 : index
    %60 = vector.load %arg18[%c100, %c0_31] : memref<160x80xf32, #tpu.memory_space<vmem>>, vector<10x80xf32>
    %c10_32 = arith.constant 10 : index
    %c0_33 = arith.constant 0 : index
    %61 = vector.load %arg3[%c10_32, %c0_33] : memref<16x80xf32, #tpu.memory_space<vmem>>, vector<1x80xf32>
    %62 = vector.broadcast %61 : vector<1x80xf32> to vector<10x80xf32>
    %63 = arith.mulf %60, %62 : vector<10x80xf32>
    %64 = arith.addf %59, %63 : vector<10x80xf32>
    %c110 = arith.constant 110 : index
    %c0_34 = arith.constant 0 : index
    %65 = vector.load %arg18[%c110, %c0_34] : memref<160x80xf32, #tpu.memory_space<vmem>>, vector<10x80xf32>
    %c11 = arith.constant 11 : index
    %c0_35 = arith.constant 0 : index
    %66 = vector.load %arg3[%c11, %c0_35] : memref<16x80xf32, #tpu.memory_space<vmem>>, vector<1x80xf32>
    %67 = vector.broadcast %66 : vector<1x80xf32> to vector<10x80xf32>
    %68 = arith.mulf %65, %67 : vector<10x80xf32>
    %69 = arith.addf %64, %68 : vector<10x80xf32>
    %c120 = arith.constant 120 : index
    %c0_36 = arith.constant 0 : index
    %70 = vector.load %arg18[%c120, %c0_36] : memref<160x80xf32, #tpu.memory_space<vmem>>, vector<10x80xf32>
    %c12 = arith.constant 12 : index
    %c0_37 = arith.constant 0 : index
    %71 = vector.load %arg3[%c12, %c0_37] : memref<16x80xf32, #tpu.memory_space<vmem>>, vector<1x80xf32>
    %72 = vector.broadcast %71 : vector<1x80xf32> to vector<10x80xf32>
    %73 = arith.mulf %70, %72 : vector<10x80xf32>
    %74 = arith.addf %69, %73 : vector<10x80xf32>
    %c130 = arith.constant 130 : index
    %c0_38 = arith.constant 0 : index
    %75 = vector.load %arg18[%c130, %c0_38] : memref<160x80xf32, #tpu.memory_space<vmem>>, vector<10x80xf32>
    %c13 = arith.constant 13 : index
    %c0_39 = arith.constant 0 : index
    %76 = vector.load %arg3[%c13, %c0_39] : memref<16x80xf32, #tpu.memory_space<vmem>>, vector<1x80xf32>
    %77 = vector.broadcast %76 : vector<1x80xf32> to vector<10x80xf32>
    %78 = arith.mulf %75, %77 : vector<10x80xf32>
    %79 = arith.addf %74, %78 : vector<10x80xf32>
    %c140 = arith.constant 140 : index
    %c0_40 = arith.constant 0 : index
    %80 = vector.load %arg18[%c140, %c0_40] : memref<160x80xf32, #tpu.memory_space<vmem>>, vector<10x80xf32>
    %c14 = arith.constant 14 : index
    %c0_41 = arith.constant 0 : index
    %81 = vector.load %arg3[%c14, %c0_41] : memref<16x80xf32, #tpu.memory_space<vmem>>, vector<1x80xf32>
    %82 = vector.broadcast %81 : vector<1x80xf32> to vector<10x80xf32>
    %83 = arith.mulf %80, %82 : vector<10x80xf32>
    %84 = arith.addf %79, %83 : vector<10x80xf32>
    %c150 = arith.constant 150 : index
    %c0_42 = arith.constant 0 : index
    %85 = vector.load %arg18[%c150, %c0_42] : memref<160x80xf32, #tpu.memory_space<vmem>>, vector<10x80xf32>
    %c15 = arith.constant 15 : index
    %c0_43 = arith.constant 0 : index
    %86 = vector.load %arg3[%c15, %c0_43] : memref<16x80xf32, #tpu.memory_space<vmem>>, vector<1x80xf32>
    %87 = vector.broadcast %86 : vector<1x80xf32> to vector<10x80xf32>
    %88 = arith.mulf %85, %87 : vector<10x80xf32>
    %89 = arith.addf %84, %88 : vector<10x80xf32>
    %c0_44 = arith.constant 0 : index
    %c0_45 = arith.constant 0 : index
    %90 = vector.load %arg4[%c0_44, %c0_45] : memref<1x80xf32, #tpu.memory_space<vmem>>, vector<1x80xf32>
    %91 = vector.broadcast %90 : vector<1x80xf32> to vector<10x80xf32>
    %92 = arith.addf %89, %91 : vector<10x80xf32>
    %cst_46 = arith.constant 0.000000e+00 : f32
    %93 = vector.broadcast %cst_46 : f32 to vector<10x80xf32>
    %94 = arith.maximumf %92, %93 : vector<10x80xf32>
    %c0_47 = arith.constant 0 : index
    %c0_48 = arith.constant 0 : index
    %95 = vector.load %arg5[%c0_47, %c0_48] : memref<80x160xf32, #tpu.memory_space<vmem>>, vector<80x160xf32>
    %cst_49 = arith.constant dense<0.000000e+00> : vector<10x160xf32>
    %96 = tpu.matmul %94, %95, %cst_49 {dimension_numbers = #tpu.dot_dimension_numbers<[1], [0], [0], [1], [0, 0, 1, 1], [], []>} : vector<10x80xf32>, vector<80x160xf32>, vector<10x160xf32> -> vector<10x160xf32>
    %c0_50 = arith.constant 0 : index
    %c0_51 = arith.constant 0 : index
    %97 = vector.load %arg6[%c0_50, %c0_51] : memref<1x160xf32, #tpu.memory_space<vmem>>, vector<1x160xf32>
    %98 = vector.broadcast %97 : vector<1x160xf32> to vector<10x160xf32>
    %99 = arith.addf %96, %98 : vector<10x160xf32>
    %cst_52 = arith.constant 0.000000e+00 : f32
    %100 = vector.broadcast %cst_52 : f32 to vector<10x160xf32>
    %101 = arith.maximumf %99, %100 : vector<10x160xf32>
    %c0_53 = arith.constant 0 : index
    %c0_54 = arith.constant 0 : index
    %102 = vector.load %arg19[%c0_53, %c0_54] : memref<10x160xf32, #tpu.memory_space<vmem>>, vector<10x160xf32>
    tpu.vector_store %arg19[%c0_53, %c0_54], %101 {strides = array<i32>} : memref<10x160xf32, #tpu.memory_space<vmem>>, vector<10x160xf32>,
    %cst_55 = arith.constant 0.000000e+00 : f32
    %103 = vector.broadcast %cst_55 : f32 to vector<3x96xf32>
    %c0_56 = arith.constant 0 : index
    %c0_57 = arith.constant 0 : index
    %104 = vector.load %arg19[%c0_56, %c0_57] : memref<10x160xf32, #tpu.memory_space<vmem>>, vector<3x96xf32>
    %c0_58 = arith.constant 0 : index
    %c0_59 = arith.constant 0 : index
    %105 = vector.load %arg7[%c0_58, %c0_59] : memref<9x96xf32, #tpu.memory_space<vmem>>, vector<1x96xf32>
    %106 = vector.broadcast %105 : vector<1x96xf32> to vector<3x96xf32>
    %107 = arith.mulf %104, %106 : vector<3x96xf32>
    %108 = arith.addf %103, %107 : vector<3x96xf32>
    %c0_60 = arith.constant 0 : index
    %c32 = arith.constant 32 : index
    %109 = vector.load %arg19[%c0_60, %c32] : memref<10x160xf32, #tpu.memory_space<vmem>>, vector<3x96xf32>
    %c1_61 = arith.constant 1 : index
    %c0_62 = arith.constant 0 : index
    %110 = vector.load %arg7[%c1_61, %c0_62] : memref<9x96xf32, #tpu.memory_space<vmem>>, vector<1x96xf32>
    %111 = vector.broadcast %110 : vector<1x96xf32> to vector<3x96xf32>
    %112 = arith.mulf %109, %111 : vector<3x96xf32>
    %113 = arith.addf %108, %112 : vector<3x96xf32>
    %c0_63 = arith.constant 0 : index
    %c64 = arith.constant 64 : index
    %114 = vector.load %arg19[%c0_63, %c64] : memref<10x160xf32, #tpu.memory_space<vmem>>, vector<3x96xf32>
    %c2_64 = arith.constant 2 : index
    %c0_65 = arith.constant 0 : index
    %115 = vector.load %arg7[%c2_64, %c0_65] : memref<9x96xf32, #tpu.memory_space<vmem>>, vector<1x96xf32>
    %116 = vector.broadcast %115 : vector<1x96xf32> to vector<3x96xf32>
    %117 = arith.mulf %114, %116 : vector<3x96xf32>
    %118 = arith.addf %113, %117 : vector<3x96xf32>
    %c1_66 = arith.constant 1 : index
    %c0_67 = arith.constant 0 : index
    %119 = vector.load %arg19[%c1_66, %c0_67] : memref<10x160xf32, #tpu.memory_space<vmem>>, vector<3x96xf32>
    %c3_68 = arith.constant 3 : index
    %c0_69 = arith.constant 0 : index
    %120 = vector.load %arg7[%c3_68, %c0_69] : memref<9x96xf32, #tpu.memory_space<vmem>>, vector<1x96xf32>
    %121 = vector.broadcast %120 : vector<1x96xf32> to vector<3x96xf32>
    %122 = arith.mulf %119, %121 : vector<3x96xf32>
    %123 = arith.addf %118, %122 : vector<3x96xf32>
    %c1_70 = arith.constant 1 : index
    %c32_71 = arith.constant 32 : index
    %124 = vector.load %arg19[%c1_70, %c32_71] : memref<10x160xf32, #tpu.memory_space<vmem>>, vector<3x96xf32>
    %c4_72 = arith.constant 4 : index
    %c0_73 = arith.constant 0 : index
    %125 = vector.load %arg7[%c4_72, %c0_73] : memref<9x96xf32, #tpu.memory_space<vmem>>, vector<1x96xf32>
    %126 = vector.broadcast %125 : vector<1x96xf32> to vector<3x96xf32>
    %127 = arith.mulf %124, %126 : vector<3x96xf32>
    %128 = arith.addf %123, %127 : vector<3x96xf32>
    %c1_74 = arith.constant 1 : index
    %c64_75 = arith.constant 64 : index
    %129 = vector.load %arg19[%c1_74, %c64_75] : memref<10x160xf32, #tpu.memory_space<vmem>>, vector<3x96xf32>
    %c5_76 = arith.constant 5 : index
    %c0_77 = arith.constant 0 : index
    %130 = vector.load %arg7[%c5_76, %c0_77] : memref<9x96xf32, #tpu.memory_space<vmem>>, vector<1x96xf32>
    %131 = vector.broadcast %130 : vector<1x96xf32> to vector<3x96xf32>
    %132 = arith.mulf %129, %131 : vector<3x96xf32>
    %133 = arith.addf %128, %132 : vector<3x96xf32>
    %c2_78 = arith.constant 2 : index
    %c0_79 = arith.constant 0 : index
    %134 = vector.load %arg19[%c2_78, %c0_79] : memref<10x160xf32, #tpu.memory_space<vmem>>, vector<3x96xf32>
    %c6_80 = arith.constant 6 : index
    %c0_81 = arith.constant 0 : index
    %135 = vector.load %arg7[%c6_80, %c0_81] : memref<9x96xf32, #tpu.memory_space<vmem>>, vector<1x96xf32>
    %136 = vector.broadcast %135 : vector<1x96xf32> to vector<3x96xf32>
    %137 = arith.mulf %134, %136 : vector<3x96xf32>
    %138 = arith.addf %133, %137 : vector<3x96xf32>
    %c2_82 = arith.constant 2 : index
    %c32_83 = arith.constant 32 : index
    %139 = vector.load %arg19[%c2_82, %c32_83] : memref<10x160xf32, #tpu.memory_space<vmem>>, vector<3x96xf32>
    %c7_84 = arith.constant 7 : index
    %c0_85 = arith.constant 0 : index
    %140 = vector.load %arg7[%c7_84, %c0_85] : memref<9x96xf32, #tpu.memory_space<vmem>>, vector<1x96xf32>
    %141 = vector.broadcast %140 : vector<1x96xf32> to vector<3x96xf32>
    %142 = arith.mulf %139, %141 : vector<3x96xf32>
    %143 = arith.addf %138, %142 : vector<3x96xf32>
    %c2_86 = arith.constant 2 : index
    %c64_87 = arith.constant 64 : index
    %144 = vector.load %arg19[%c2_86, %c64_87] : memref<10x160xf32, #tpu.memory_space<vmem>>, vector<3x96xf32>
    %c8_88 = arith.constant 8 : index
    %c0_89 = arith.constant 0 : index
    %145 = vector.load %arg7[%c8_88, %c0_89] : memref<9x96xf32, #tpu.memory_space<vmem>>, vector<1x96xf32>
    %146 = vector.broadcast %145 : vector<1x96xf32> to vector<3x96xf32>
    %147 = arith.mulf %144, %146 : vector<3x96xf32>
    %148 = arith.addf %143, %147 : vector<3x96xf32>
    %c0_90 = arith.constant 0 : index
    %c0_91 = arith.constant 0 : index
    %149 = vector.load %arg8[%c0_90, %c0_91] : memref<1x96xf32, #tpu.memory_space<vmem>>, vector<1x96xf32>
    %150 = vector.broadcast %149 : vector<1x96xf32> to vector<3x96xf32>
    %151 = arith.addf %148, %150 : vector<3x96xf32>
    %cst_92 = arith.constant 0.000000e+00 : f32
    %152 = vector.broadcast %cst_92 : f32 to vector<3x96xf32>
    %153 = arith.maximumf %151, %152 : vector<3x96xf32>
    %c0_93 = arith.constant 0 : index
    %c0_94 = arith.constant 0 : index
    %154 = vector.load %arg9[%c0_93, %c0_94] : memref<96x96xf32, #tpu.memory_space<vmem>>, vector<96x96xf32>
    %cst_95 = arith.constant dense<0.000000e+00> : vector<3x96xf32>
    %155 = tpu.matmul %153, %154, %cst_95 {dimension_numbers = #tpu.dot_dimension_numbers<[1], [0], [0], [1], [0, 0, 1, 1], [], []>} : vector<3x96xf32>, vector<96x96xf32>, vector<3x96xf32> -> vector<3x96xf32>
    %c0_96 = arith.constant 0 : index
    %c0_97 = arith.constant 0 : index
    %156 = vector.load %arg10[%c0_96, %c0_97] : memref<1x96xf32, #tpu.memory_space<vmem>>, vector<1x96xf32>
    %157 = vector.broadcast %156 : vector<1x96xf32> to vector<3x96xf32>
    %158 = arith.addf %155, %157 : vector<3x96xf32>
    %cst_98 = arith.constant 0.000000e+00 : f32
    %159 = vector.broadcast %cst_98 : f32 to vector<3x96xf32>
    %160 = arith.maximumf %158, %159 : vector<3x96xf32>
    %c0_99 = arith.constant 0 : index
    %c0_100 = arith.constant 0 : index
    %161 = vector.load %arg20[%c0_99, %c0_100] : memref<3x96xf32, #tpu.memory_space<vmem>>, vector<3x96xf32>
    tpu.vector_store %arg20[%c0_99, %c0_100], %160 {strides = array<i32>} : memref<3x96xf32, #tpu.memory_space<vmem>>, vector<3x96xf32>,
    %cst_101 = arith.constant 0.000000e+00 : f32
    %162 = vector.broadcast %cst_101 : f32 to vector<1x256xf32>
    %c0_102 = arith.constant 0 : index
    %c0_103 = arith.constant 0 : index
    %163 = vector.load %arg20[%c0_102, %c0_103] : memref<3x96xf32, #tpu.memory_space<vmem>>, vector<1x96xf32>
    %c0_104 = arith.constant 0 : index
    %c0_105 = arith.constant 0 : index
    %164 = vector.load %arg11[%c0_104, %c0_105] : memref<288x256xf32, #tpu.memory_space<vmem>>, vector<96x256xf32>
    %cst_106 = arith.constant dense<0.000000e+00> : vector<1x256xf32>
    %165 = tpu.matmul %163, %164, %cst_106 {dimension_numbers = #tpu.dot_dimension_numbers<[1], [0], [0], [1], [0, 0, 1, 1], [], []>} : vector<1x96xf32>, vector<96x256xf32>, vector<1x256xf32> -> vector<1x256xf32>
    %166 = arith.addf %162, %165 : vector<1x256xf32>
    %c1_107 = arith.constant 1 : index
    %c0_108 = arith.constant 0 : index
    %167 = vector.load %arg20[%c1_107, %c0_108] : memref<3x96xf32, #tpu.memory_space<vmem>>, vector<1x96xf32>
    %c96 = arith.constant 96 : index
    %c0_109 = arith.constant 0 : index
    %168 = vector.load %arg11[%c96, %c0_109] : memref<288x256xf32, #tpu.memory_space<vmem>>, vector<96x256xf32>
    %cst_110 = arith.constant dense<0.000000e+00> : vector<1x256xf32>
    %169 = tpu.matmul %167, %168, %cst_110 {dimension_numbers = #tpu.dot_dimension_numbers<[1], [0], [0], [1], [0, 0, 1, 1], [], []>} : vector<1x96xf32>, vector<96x256xf32>, vector<1x256xf32> -> vector<1x256xf32>
    %170 = arith.addf %166, %169 : vector<1x256xf32>
    %c2_111 = arith.constant 2 : index
    %c0_112 = arith.constant 0 : index
    %171 = vector.load %arg20[%c2_111, %c0_112] : memref<3x96xf32, #tpu.memory_space<vmem>>, vector<1x96xf32>
    %c192 = arith.constant 192 : index
    %c0_113 = arith.constant 0 : index
    %172 = vector.load %arg11[%c192, %c0_113] : memref<288x256xf32, #tpu.memory_space<vmem>>, vector<96x256xf32>
    %cst_114 = arith.constant dense<0.000000e+00> : vector<1x256xf32>
    %173 = tpu.matmul %171, %172, %cst_114 {dimension_numbers = #tpu.dot_dimension_numbers<[1], [0], [0], [1], [0, 0, 1, 1], [], []>} : vector<1x96xf32>, vector<96x256xf32>, vector<1x256xf32> -> vector<1x256xf32>
    %174 = arith.addf %170, %173 : vector<1x256xf32>
    %c0_115 = arith.constant 0 : index
    %c0_116 = arith.constant 0 : index
    %175 = vector.load %arg12[%c0_115, %c0_116] : memref<1x256xf32, #tpu.memory_space<vmem>>, vector<1x256xf32>
    %176 = arith.addf %174, %175 : vector<1x256xf32>
    %cst_117 = arith.constant 0.000000e+00 : f32
    %177 = vector.broadcast %cst_117 : f32 to vector<1x256xf32>
    %178 = arith.maximumf %176, %177 : vector<1x256xf32>
    %179 = vector.extract_strided_slice %178 {offsets = [0, 0], sizes = [1, 128], strides = [1, 1]} : vector<1x256xf32> to vector<1x128xf32>
    %180 = vector.extract_strided_slice %178 {offsets = [0, 128], sizes = [1, 128], strides = [1, 1]} : vector<1x256xf32> to vector<1x128xf32>
    %c0_118 = arith.constant 0 : index
    %c0_119 = arith.constant 0 : index
    %181 = vector.load %arg13[%c0_118, %c0_119] : memref<128x1xf32, #tpu.memory_space<vmem>>, vector<128x1xf32>
    %cst_120 = arith.constant dense<0.000000e+00> : vector<1x1xf32>
    %182 = tpu.matmul %179, %181, %cst_120 {dimension_numbers = #tpu.dot_dimension_numbers<[1], [0], [0], [1], [0, 0, 1, 1], [], []>} : vector<1x128xf32>, vector<128x1xf32>, vector<1x1xf32> -> vector<1x1xf32>
    %c0_121 = arith.constant 0 : index
    %c0_122 = arith.constant 0 : index
    %183 = vector.load %arg14[%c0_121, %c0_122] : memref<1x1xf32, #tpu.memory_space<vmem>>, vector<1x1xf32>
    %184 = arith.addf %182, %183 : vector<1x1xf32>
    %c0_123 = arith.constant 0 : index
    %c0_124 = arith.constant 0 : index
    %185 = vector.load %arg15[%c0_123, %c0_124] : memref<128x6xf32, #tpu.memory_space<vmem>>, vector<128x6xf32>
    %cst_125 = arith.constant dense<0.000000e+00> : vector<1x6xf32>
    %186 = tpu.matmul %180, %185, %cst_125 {dimension_numbers = #tpu.dot_dimension_numbers<[1], [0], [0], [1], [0, 0, 1, 1], [], []>} : vector<1x128xf32>, vector<128x6xf32>, vector<1x6xf32> -> vector<1x6xf32>
    %c0_126 = arith.constant 0 : index
    %c0_127 = arith.constant 0 : index
    %187 = vector.load %arg16[%c0_126, %c0_127] : memref<1x6xf32, #tpu.memory_space<vmem>>, vector<1x6xf32>
    %188 = arith.addf %186, %187 : vector<1x6xf32>
    %189 = vector.broadcast %184 : vector<1x1xf32> to vector<1x6xf32>
    %190 = arith.addf %189, %188 : vector<1x6xf32>
    %cst_128 = arith.constant dense<0.000000e+00> : vector<1xf32>
    %191 = vector.multi_reduction <add>, %188, %cst_128 [1] : vector<1x6xf32> to vector<1xf32>
    %192 = vector.shape_cast %191 : vector<1xf32> to vector<1x1xf32>
    %cst_129 = arith.constant 6.000000e+00 : f32
    %193 = vector.broadcast %cst_129 : f32 to vector<1x1xf32>
    %194 = arith.divf %192, %193 : vector<1x1xf32>
    %195 = vector.broadcast %194 : vector<1x1xf32> to vector<1x6xf32>
    %196 = arith.subf %190, %195 : vector<1x6xf32>
    %c0_130 = arith.constant 0 : index
    %c0_131 = arith.constant 0 : index
    %197 = vector.load %arg17[%c0_130, %c0_131] : memref<2x6xf32, #tpu.memory_space<vmem>>, vector<1x6xf32>
    tpu.vector_store %arg17[%c0_130, %c0_131], %196 {strides = array<i32>} : memref<2x6xf32, #tpu.memory_space<vmem>>, vector<1x6xf32>,
    %cst_132 = arith.constant 0.000000e+00 : f32
    %198 = vector.broadcast %cst_132 : f32 to vector<3x96xf32>
    %c5_133 = arith.constant 5 : index
    %c0_134 = arith.constant 0 : index
    %199 = vector.load %arg19[%c5_133, %c0_134] : memref<10x160xf32, #tpu.memory_space<vmem>>, vector<3x96xf32>
    %c0_135 = arith.constant 0 : index
    %c0_136 = arith.constant 0 : index
    %200 = vector.load %arg7[%c0_135, %c0_136] : memref<9x96xf32, #tpu.memory_space<vmem>>, vector<1x96xf32>
    %201 = vector.broadcast %200 : vector<1x96xf32> to vector<3x96xf32>
    %202 = arith.mulf %199, %201 : vector<3x96xf32>
    %203 = arith.addf %198, %202 : vector<3x96xf32>
    %c5_137 = arith.constant 5 : index
    %c32_138 = arith.constant 32 : index
    %204 = vector.load %arg19[%c5_137, %c32_138] : memref<10x160xf32, #tpu.memory_space<vmem>>, vector<3x96xf32>
    %c1_139 = arith.constant 1 : index
    %c0_140 = arith.constant 0 : index
    %205 = vector.load %arg7[%c1_139, %c0_140] : memref<9x96xf32, #tpu.memory_space<vmem>>, vector<1x96xf32>
    %206 = vector.broadcast %205 : vector<1x96xf32> to vector<3x96xf32>
    %207 = arith.mulf %204, %206 : vector<3x96xf32>
    %208 = arith.addf %203, %207 : vector<3x96xf32>
    %c5_141 = arith.constant 5 : index
    %c64_142 = arith.constant 64 : index
    %209 = vector.load %arg19[%c5_141, %c64_142] : memref<10x160xf32, #tpu.memory_space<vmem>>, vector<3x96xf32>
    %c2_143 = arith.constant 2 : index
    %c0_144 = arith.constant 0 : index
    %210 = vector.load %arg7[%c2_143, %c0_144] : memref<9x96xf32, #tpu.memory_space<vmem>>, vector<1x96xf32>
    %211 = vector.broadcast %210 : vector<1x96xf32> to vector<3x96xf32>
    %212 = arith.mulf %209, %211 : vector<3x96xf32>
    %213 = arith.addf %208, %212 : vector<3x96xf32>
    %c6_145 = arith.constant 6 : index
    %c0_146 = arith.constant 0 : index
    %214 = vector.load %arg19[%c6_145, %c0_146] : memref<10x160xf32, #tpu.memory_space<vmem>>, vector<3x96xf32>
    %c3_147 = arith.constant 3 : index
    %c0_148 = arith.constant 0 : index
    %215 = vector.load %arg7[%c3_147, %c0_148] : memref<9x96xf32, #tpu.memory_space<vmem>>, vector<1x96xf32>
    %216 = vector.broadcast %215 : vector<1x96xf32> to vector<3x96xf32>
    %217 = arith.mulf %214, %216 : vector<3x96xf32>
    %218 = arith.addf %213, %217 : vector<3x96xf32>
    %c6_149 = arith.constant 6 : index
    %c32_150 = arith.constant 32 : index
    %219 = vector.load %arg19[%c6_149, %c32_150] : memref<10x160xf32, #tpu.memory_space<vmem>>, vector<3x96xf32>
    %c4_151 = arith.constant 4 : index
    %c0_152 = arith.constant 0 : index
    %220 = vector.load %arg7[%c4_151, %c0_152] : memref<9x96xf32, #tpu.memory_space<vmem>>, vector<1x96xf32>
    %221 = vector.broadcast %220 : vector<1x96xf32> to vector<3x96xf32>
    %222 = arith.mulf %219, %221 : vector<3x96xf32>
    %223 = arith.addf %218, %222 : vector<3x96xf32>
    %c6_153 = arith.constant 6 : index
    %c64_154 = arith.constant 64 : index
    %224 = vector.load %arg19[%c6_153, %c64_154] : memref<10x160xf32, #tpu.memory_space<vmem>>, vector<3x96xf32>
    %c5_155 = arith.constant 5 : index
    %c0_156 = arith.constant 0 : index
    %225 = vector.load %arg7[%c5_155, %c0_156] : memref<9x96xf32, #tpu.memory_space<vmem>>, vector<1x96xf32>
    %226 = vector.broadcast %225 : vector<1x96xf32> to vector<3x96xf32>
    %227 = arith.mulf %224, %226 : vector<3x96xf32>
    %228 = arith.addf %223, %227 : vector<3x96xf32>
    %c7_157 = arith.constant 7 : index
    %c0_158 = arith.constant 0 : index
    %229 = vector.load %arg19[%c7_157, %c0_158] : memref<10x160xf32, #tpu.memory_space<vmem>>, vector<3x96xf32>
    %c6_159 = arith.constant 6 : index
    %c0_160 = arith.constant 0 : index
    %230 = vector.load %arg7[%c6_159, %c0_160] : memref<9x96xf32, #tpu.memory_space<vmem>>, vector<1x96xf32>
    %231 = vector.broadcast %230 : vector<1x96xf32> to vector<3x96xf32>
    %232 = arith.mulf %229, %231 : vector<3x96xf32>
    %233 = arith.addf %228, %232 : vector<3x96xf32>
    %c7_161 = arith.constant 7 : index
    %c32_162 = arith.constant 32 : index
    %234 = vector.load %arg19[%c7_161, %c32_162] : memref<10x160xf32, #tpu.memory_space<vmem>>, vector<3x96xf32>
    %c7_163 = arith.constant 7 : index
    %c0_164 = arith.constant 0 : index
    %235 = vector.load %arg7[%c7_163, %c0_164] : memref<9x96xf32, #tpu.memory_space<vmem>>, vector<1x96xf32>
    %236 = vector.broadcast %235 : vector<1x96xf32> to vector<3x96xf32>
    %237 = arith.mulf %234, %236 : vector<3x96xf32>
    %238 = arith.addf %233, %237 : vector<3x96xf32>
    %c7_165 = arith.constant 7 : index
    %c64_166 = arith.constant 64 : index
    %239 = vector.load %arg19[%c7_165, %c64_166] : memref<10x160xf32, #tpu.memory_space<vmem>>, vector<3x96xf32>
    %c8_167 = arith.constant 8 : index
    %c0_168 = arith.constant 0 : index
    %240 = vector.load %arg7[%c8_167, %c0_168] : memref<9x96xf32, #tpu.memory_space<vmem>>, vector<1x96xf32>
    %241 = vector.broadcast %240 : vector<1x96xf32> to vector<3x96xf32>
    %242 = arith.mulf %239, %241 : vector<3x96xf32>
    %243 = arith.addf %238, %242 : vector<3x96xf32>
    %c0_169 = arith.constant 0 : index
    %c0_170 = arith.constant 0 : index
    %244 = vector.load %arg8[%c0_169, %c0_170] : memref<1x96xf32, #tpu.memory_space<vmem>>, vector<1x96xf32>
    %245 = vector.broadcast %244 : vector<1x96xf32> to vector<3x96xf32>
    %246 = arith.addf %243, %245 : vector<3x96xf32>
    %cst_171 = arith.constant 0.000000e+00 : f32
    %247 = vector.broadcast %cst_171 : f32 to vector<3x96xf32>
    %248 = arith.maximumf %246, %247 : vector<3x96xf32>
    %c0_172 = arith.constant 0 : index
    %c0_173 = arith.constant 0 : index
    %249 = vector.load %arg9[%c0_172, %c0_173] : memref<96x96xf32, #tpu.memory_space<vmem>>, vector<96x96xf32>
    %cst_174 = arith.constant dense<0.000000e+00> : vector<3x96xf32>
    %250 = tpu.matmul %248, %249, %cst_174 {dimension_numbers = #tpu.dot_dimension_numbers<[1], [0], [0], [1], [0, 0, 1, 1], [], []>} : vector<3x96xf32>, vector<96x96xf32>, vector<3x96xf32> -> vector<3x96xf32>
    %c0_175 = arith.constant 0 : index
    %c0_176 = arith.constant 0 : index
    %251 = vector.load %arg10[%c0_175, %c0_176] : memref<1x96xf32, #tpu.memory_space<vmem>>, vector<1x96xf32>
    %252 = vector.broadcast %251 : vector<1x96xf32> to vector<3x96xf32>
    %253 = arith.addf %250, %252 : vector<3x96xf32>
    %cst_177 = arith.constant 0.000000e+00 : f32
    %254 = vector.broadcast %cst_177 : f32 to vector<3x96xf32>
    %255 = arith.maximumf %253, %254 : vector<3x96xf32>
    %c0_178 = arith.constant 0 : index
    %c0_179 = arith.constant 0 : index
    %256 = vector.load %arg20[%c0_178, %c0_179] : memref<3x96xf32, #tpu.memory_space<vmem>>, vector<3x96xf32>
    tpu.vector_store %arg20[%c0_178, %c0_179], %255 {strides = array<i32>} : memref<3x96xf32, #tpu.memory_space<vmem>>, vector<3x96xf32>,
    %cst_180 = arith.constant 0.000000e+00 : f32
    %257 = vector.broadcast %cst_180 : f32 to vector<1x256xf32>
    %c0_181 = arith.constant 0 : index
    %c0_182 = arith.constant 0 : index
    %258 = vector.load %arg20[%c0_181, %c0_182] : memref<3x96xf32, #tpu.memory_space<vmem>>, vector<1x96xf32>
    %c0_183 = arith.constant 0 : index
    %c0_184 = arith.constant 0 : index
    %259 = vector.load %arg11[%c0_183, %c0_184] : memref<288x256xf32, #tpu.memory_space<vmem>>, vector<96x256xf32>
    %cst_185 = arith.constant dense<0.000000e+00> : vector<1x256xf32>
    %260 = tpu.matmul %258, %259, %cst_185 {dimension_numbers = #tpu.dot_dimension_numbers<[1], [0], [0], [1], [0, 0, 1, 1], [], []>} : vector<1x96xf32>, vector<96x256xf32>, vector<1x256xf32> -> vector<1x256xf32>
    %261 = arith.addf %257, %260 : vector<1x256xf32>
    %c1_186 = arith.constant 1 : index
    %c0_187 = arith.constant 0 : index
    %262 = vector.load %arg20[%c1_186, %c0_187] : memref<3x96xf32, #tpu.memory_space<vmem>>, vector<1x96xf32>
    %c96_188 = arith.constant 96 : index
    %c0_189 = arith.constant 0 : index
    %263 = vector.load %arg11[%c96_188, %c0_189] : memref<288x256xf32, #tpu.memory_space<vmem>>, vector<96x256xf32>
    %cst_190 = arith.constant dense<0.000000e+00> : vector<1x256xf32>
    %264 = tpu.matmul %262, %263, %cst_190 {dimension_numbers = #tpu.dot_dimension_numbers<[1], [0], [0], [1], [0, 0, 1, 1], [], []>} : vector<1x96xf32>, vector<96x256xf32>, vector<1x256xf32> -> vector<1x256xf32>
    %265 = arith.addf %261, %264 : vector<1x256xf32>
    %c2_191 = arith.constant 2 : index
    %c0_192 = arith.constant 0 : index
    %266 = vector.load %arg20[%c2_191, %c0_192] : memref<3x96xf32, #tpu.memory_space<vmem>>, vector<1x96xf32>
    %c192_193 = arith.constant 192 : index
    %c0_194 = arith.constant 0 : index
    %267 = vector.load %arg11[%c192_193, %c0_194] : memref<288x256xf32, #tpu.memory_space<vmem>>, vector<96x256xf32>
    %cst_195 = arith.constant dense<0.000000e+00> : vector<1x256xf32>
    %268 = tpu.matmul %266, %267, %cst_195 {dimension_numbers = #tpu.dot_dimension_numbers<[1], [0], [0], [1], [0, 0, 1, 1], [], []>} : vector<1x96xf32>, vector<96x256xf32>, vector<1x256xf32> -> vector<1x256xf32>
    %269 = arith.addf %265, %268 : vector<1x256xf32>
    %c0_196 = arith.constant 0 : index
    %c0_197 = arith.constant 0 : index
    %270 = vector.load %arg12[%c0_196, %c0_197] : memref<1x256xf32, #tpu.memory_space<vmem>>, vector<1x256xf32>
    %271 = arith.addf %269, %270 : vector<1x256xf32>
    %cst_198 = arith.constant 0.000000e+00 : f32
    %272 = vector.broadcast %cst_198 : f32 to vector<1x256xf32>
    %273 = arith.maximumf %271, %272 : vector<1x256xf32>
    %274 = vector.extract_strided_slice %273 {offsets = [0, 0], sizes = [1, 128], strides = [1, 1]} : vector<1x256xf32> to vector<1x128xf32>
    %275 = vector.extract_strided_slice %273 {offsets = [0, 128], sizes = [1, 128], strides = [1, 1]} : vector<1x256xf32> to vector<1x128xf32>
    %c0_199 = arith.constant 0 : index
    %c0_200 = arith.constant 0 : index
    %276 = vector.load %arg13[%c0_199, %c0_200] : memref<128x1xf32, #tpu.memory_space<vmem>>, vector<128x1xf32>
    %cst_201 = arith.constant dense<0.000000e+00> : vector<1x1xf32>
    %277 = tpu.matmul %274, %276, %cst_201 {dimension_numbers = #tpu.dot_dimension_numbers<[1], [0], [0], [1], [0, 0, 1, 1], [], []>} : vector<1x128xf32>, vector<128x1xf32>, vector<1x1xf32> -> vector<1x1xf32>
    %c0_202 = arith.constant 0 : index
    %c0_203 = arith.constant 0 : index
    %278 = vector.load %arg14[%c0_202, %c0_203] : memref<1x1xf32, #tpu.memory_space<vmem>>, vector<1x1xf32>
    %279 = arith.addf %277, %278 : vector<1x1xf32>
    %c0_204 = arith.constant 0 : index
    %c0_205 = arith.constant 0 : index
    %280 = vector.load %arg15[%c0_204, %c0_205] : memref<128x6xf32, #tpu.memory_space<vmem>>, vector<128x6xf32>
    %cst_206 = arith.constant dense<0.000000e+00> : vector<1x6xf32>
    %281 = tpu.matmul %275, %280, %cst_206 {dimension_numbers = #tpu.dot_dimension_numbers<[1], [0], [0], [1], [0, 0, 1, 1], [], []>} : vector<1x128xf32>, vector<128x6xf32>, vector<1x6xf32> -> vector<1x6xf32>
    %c0_207 = arith.constant 0 : index
    %c0_208 = arith.constant 0 : index
    %282 = vector.load %arg16[%c0_207, %c0_208] : memref<1x6xf32, #tpu.memory_space<vmem>>, vector<1x6xf32>
    %283 = arith.addf %281, %282 : vector<1x6xf32>
    %284 = vector.broadcast %279 : vector<1x1xf32> to vector<1x6xf32>
    %285 = arith.addf %284, %283 : vector<1x6xf32>
    %cst_209 = arith.constant dense<0.000000e+00> : vector<1xf32>
    %286 = vector.multi_reduction <add>, %283, %cst_209 [1] : vector<1x6xf32> to vector<1xf32>
    %287 = vector.shape_cast %286 : vector<1xf32> to vector<1x1xf32>
    %cst_210 = arith.constant 6.000000e+00 : f32
    %288 = vector.broadcast %cst_210 : f32 to vector<1x1xf32>
    %289 = arith.divf %287, %288 : vector<1x1xf32>
    %290 = vector.broadcast %289 : vector<1x1xf32> to vector<1x6xf32>
    %291 = arith.subf %285, %290 : vector<1x6xf32>
    %c1_211 = arith.constant 1 : index
    %c0_212 = arith.constant 0 : index
    %292 = vector.load %arg17[%c1_211, %c0_212] : memref<2x6xf32, #tpu.memory_space<vmem>>, vector<1x6xf32>
    tpu.vector_store %arg17[%c1_211, %c0_212], %291 {strides = array<i32>} : memref<2x6xf32, #tpu.memory_space<vmem>>, vector<1x6xf32>,
    return
  }
}

</mosaic_0001>

<bundles_post_ra>
// kernel: forward_pallas.1
= control target key start
LH: loop header
LB: loop body
LE: loop exit
PB: predicated region body
PF: predicated region fallthrough
CT: control target
= control target key end

     0   :  { %s7064_s0 = inlined_call_operand.vmem [shape: bf16[160,1280], index: 0, kind: input, shape index: {}]   ;;  %s7065_s1 = inlined_call_operand.vmem [shape: bf16[1280,80], index: 1, kind: input, shape index: {}]   ;;  %s7066_s2 = inlined_call_operand.vmem [shape: f32[1,80], index: 2, kind: input, shape index: {}]   ;;  %s7067_s3 = inlined_call_operand.vmem [shape: f32[16,80], index: 3, kind: input, shape index: {}]   ;;  %s7068_s4 = inlined_call_operand.vmem [shape: f32[1,80], index: 4, kind: input, shape index: {}]   ;;  %s7069_s5 = inlined_call_operand.vmem [shape: f32[80,160], index: 5, kind: input, shape index: {}]   ;;  %s7070_s6 = inlined_call_operand.vmem [shape: f32[1,160], index: 6, kind: input, shape index: {}]   ;;  %s7071_s7 = inlined_call_operand.vmem [shape: f32[9,96], index: 7, kind: input, shape index: {}]   ;;  %s7072_s8 = inlined_call_operand.vmem [shape: f32[1,96], index: 8, kind: input, shape index: {}]   ;;  %s7073_s9 = inlined_call_operand.vmem [shape: f32[96,96], index: 9, kind: input, shape index: {}]   ;;  %s7074_s10 = inlined_call_operand.vmem [shape: f32[1,96], index: 10, kind: input, shape index: {}]   ;;  %s7075_s11 = inlined_call_operand.vmem [shape: f32[288,256], index: 11, kind: input, shape index: {}]   ;;  %s7076_s12 = inlined_call_operand.vmem [shape: f32[1,256], index: 12, kind: input, shape index: {}]   ;;  %s7077_s13 = inlined_call_operand.vmem [shape: f32[128,1], index: 13, kind: input, shape index: {}]   ;;  %s7078_s14 = inlined_call_operand.<no memory space> [shape: f32[1,1], index: 14, kind: input, shape index: {}]   ;;  %s7079_s15 = inlined_call_operand.vmem [shape: f32[128,6], index: 15, kind: input, shape index: {}]   ;;  %s7080_s16 = inlined_call_operand.vmem [shape: f32[1,6], index: 16, kind: input, shape index: {}]   ;;  %s7081_s17 = inlined_call_operand.hbm [shape: f32[2,6], index: 17, kind: output, shape index: {}]  }
   0x1   :  { %7161 = sst [smem:[#allocation84_spill]] %s7064_s0  ;;  %v22_v0 = vstv %s7078_s14 }
   0x2   :  { %7162 = sst [smem:[#allocation85_spill]] %s7065_s1  ;;  %23 = vst [vmem:[#allocation5] sm:$0x1] %v22_v0 }
   0x3   :  { %s7163_s28 = sld [smem:[#allocation85_spill]] }
   0x4   :  { %s7164_s30 = sld [smem:[#allocation84_spill]] }
   0x9   :  { %v4686_v1 = vld [vmem:[%s7163_s28 + $0x78] sm:$0xff]   ;;  %v4690_v5 = vld [vmem:[%s7163_s28 + $0x70] sm:$0xff]   ;;  %v4694_v9 = vld [vmem:[%s7163_s28 + $0x68] sm:$0xff]  }
   0xa   :  { %v4687_v2 = vld [vmem:[%s7163_s28 + $0x38] sm:$0xff]   ;;  %4009 = vmatprep.subr.bf16.mxu0 %v4686_v1  ;;  %v4691_v6 = vld [vmem:[%s7163_s28 + $0x30] sm:$0xff]   ;;  %v4695_v10 = vld [vmem:[%s7163_s28 + $0x28] sm:$0xff]  }
   0xb   :  { %v4688_v3 = vld [vmem:[%s7163_s28 + $0xf8] sm:$0xff]   ;;  %4010 = vmatpush3.bf16.msra.mxu0 %v4687_v2  ;;  %v4692_v7 = vld [vmem:[%s7163_s28 + $0xf0] sm:$0xff]   ;;  %v4696_v11 = vld [vmem:[%s7163_s28 + $0xe8] sm:$0xff]  }
   0xc   :  { %v4689_v4 = vld [vmem:[%s7163_s28 + $0xb8] sm:$0xff]   ;;  %4085 = vmatprep.subr.bf16.mxu1 %v4688_v3  ;;  %4011 = vmatprep.subr.bf16.mxu0 %v4690_v5  ;;  %v4693_v8 = vld [vmem:[%s7163_s28 + $0xb0] sm:$0xff]   ;;  %v4697_v12 = vld [vmem:[%s7163_s28 + $0xa8] sm:$0xff]  }
   0xd   :  { %4086 = vmatpush3.bf16.msra.mxu1 %v4689_v4  ;;  %v4698_v13 = vld [vmem:[%s7163_s28 + $0x60] sm:$0xff]   ;;  %v4702_v17 = vld [vmem:[%s7163_s28 + $0x58] sm:$0xff]   ;;  %v4706_v21 = vld [vmem:[%s7163_s28 + $0x50] sm:$0xff]  }
   0xe   :  { %4087 = vmatprep.subr.bf16.mxu1 %v4692_v7  ;;  %v4699_v14 = vld [vmem:[%s7163_s28 + $0x20] sm:$0xff]   ;;  %v4703_v18 = vld [vmem:[%s7163_s28 + $0x18] sm:$0xff]   ;;  %v4707_v22 = vld [vmem:[%s7163_s28 + $0x10] sm:$0xff]  }
   0xf   :  { %4012 = vmatpush3.bf16.msra.mxu0 %v4691_v6  ;;  %v4700_v15 = vld [vmem:[%s7163_s28 + $0xe0] sm:$0xff]   ;;  %v4704_v19 = vld [vmem:[%s7163_s28 + $0xd8] sm:$0xff]   ;;  %v4708_v23 = vld [vmem:[%s7163_s28 + $0xd0] sm:$0xff]  }
  0x10   :  { %4013 = vmatprep.subr.bf16.mxu0 %v4694_v9  ;;  %v4701_v16 = vld [vmem:[%s7163_s28 + $0xa0] sm:$0xff]   ;;  %v4705_v20 = vld [vmem:[%s7163_s28 + $0x98] sm:$0xff]   ;;  %v4709_v24 = vld [vmem:[%s7163_s28 + $0x90] sm:$0xff]  }
  0x11   :  { %4088 = vmatpush3.bf16.msra.mxu1 %v4693_v8  ;;  %v4710_v25 = vld [vmem:[%s7163_s28 + $0x48] sm:$0xff]   ;;  %v4714_v29 = vld [vmem:[%s7163_s28 + $0x40] sm:$0xff]   ;;  %v4721_v35 = vld [vmem:[%s7163_s28 + $0x178] sm:$0xff]  }
  0x12   :  { %4089 = vmatprep.subr.bf16.mxu1 %v4696_v11  ;;  %v4711_v26 = vld [vmem:[%s7163_s28 + $0x8] sm:$0xff]   ;;  %v4715_v30 = vld [vmem:[%s7163_s28] sm:$0xff]   ;;  %v4725_v38 = vld [vmem:[%s7163_s28 + $0x138] sm:$0xff]  }
  0x13   :  { %4014 = vmatpush3.bf16.msra.mxu0 %v4695_v10  ;;  %v4712_v27 = vld [vmem:[%s7163_s28 + $0xc8] sm:$0xff]   ;;  %v4716_v31 = vld [vmem:[%s7163_s28 + $0xc0] sm:$0xff]   ;;  %v4726_v39 = vld [vmem:[%s7164_s30 + $0x54] ss:$40 sps:$4 sm:$0xff]  }
  0x14   :  { %4015 = vmatprep.subr.bf16.mxu0 %v4698_v13  ;;  %v4713_v28 = vld [vmem:[%s7163_s28 + $0x88] sm:$0xff]   ;;  %v4720_v34 = vld [vmem:[%s7163_s28 + $0x80] sm:$0xff]   ;;  %v4728_v41 = vld [vmem:[%s7164_s30 + $0x50] ss:$40 sps:$4 sm:$0xff]  }
  0x15   :  { %4090 = vmatpush3.bf16.msra.mxu1 %v4697_v12  ;;  %v4717_v32 = vld [vmem:[%s7164_s30] ss:$40 sps:$4 sm:$0xff]   ;;  %v4719_v33 = vld [vmem:[%s7164_s30 + $0x4] ss:$40 sps:$4 sm:$0xff]   ;;  %v4732_v42 = vld [vmem:[%s7163_s28 + $0x170] sm:$0xff]  }
  0x16   :  { %4091 = vmatprep.subr.bf16.mxu1 %v4700_v15  ;;  %1339 = vmatprep.mubr.bf16.mxu0 %v4719_v33  ;;  %v4722_v36 = vld [vmem:[%s7164_s30 + $0x8] ss:$40 sps:$4 sm:$0xff]   ;;  %v4724_v37 = vld [vmem:[%s7164_s30 + $0xc] ss:$40 sps:$4 sm:$0xff]   ;;  %v4729_v40 = vld [vmem:[%s7164_s30 + $0x5c] ss:$40 sps:$4 sm:$0xff]  }
  0x17   :  { %4016 = vmatpush3.bf16.msra.mxu0 %v4699_v14  ;;  %1452 = vmatprep.mubr.bf16.mxu1 %v4724_v37  ;;  %v4733_v43 = vld [vmem:[%s7163_s28 + $0x130] sm:$0xff]   ;;  %v4731_v44 = vld [vmem:[%s7164_s30 + $0x58] ss:$40 sps:$4 sm:$0xff]   ;;  %v4734_v45 = vld [vmem:[%s7164_s30 + $0xa4] ss:$40 sps:$4 sm:$0xff]  }
  0x18   :  { %4017 = vmatprep.subr.bf16.mxu0 %v4702_v17  ;;  %v4737_v46 = vld [vmem:[%s7164_s30 + $0xac] ss:$40 sps:$4 sm:$0xff]   ;;  %v4736_v49 = vld [vmem:[%s7164_s30 + $0xa0] ss:$40 sps:$4 sm:$0xff]   ;;  %v4745_v53 = vld [vmem:[%s7164_s30 + $0xfc] ss:$40 sps:$4 sm:$0xff]  }
  0x19   :  { %4092 = vmatpush3.bf16.msra.mxu1 %v4701_v16  ;;  %v4740_v47 = vld [vmem:[%s7163_s28 + $0x168] sm:$0xff]   ;;  %v4742_v50 = vld [vmem:[%s7164_s30 + $0xf4] ss:$40 sps:$4 sm:$0xff]   ;;  %v4748_v51 = vld [vmem:[%s7163_s28 + $0x160] sm:$0xff]  }
  0x1a   :  { %4093 = vmatprep.subr.bf16.mxu1 %v4704_v19  ;;  %v4741_v48 = vld [vmem:[%s7163_s28 + $0x128] sm:$0xff]   ;;  %v4751_v54 = vld [vmem:[%s7163_s28 + $0x120] sm:$0xff]   ;;  %v4744_v55 = vld [vmem:[%s7164_s30 + $0xf0] ss:$40 sps:$4 sm:$0xff]  }
  0x1b   :  { %4018 = vmatpush3.bf16.msra.mxu0 %v4703_v18  ;;  %v4739_v52 = vld [vmem:[%s7164_s30 + $0xa8] ss:$40 sps:$4 sm:$0xff]   ;;  %v4759_v56 = vld [vmem:[%s7163_s28 + $0x158] sm:$0xff]   ;;  %v4749_v57 = vld [vmem:[%s7164_s30 + $0x144] ss:$40 sps:$4 sm:$0xff]  }
  0x1c   :  { %4019 = vmatprep.subr.bf16.mxu0 %v4706_v21  ;;  %v4762_v58 = vld [vmem:[%s7163_s28 + $0x118] sm:$0xff]   ;;  %v4753_v60 = vld [vmem:[%s7164_s30 + $0x14c] ss:$40 sps:$4 sm:$0xff]   ;;  %v4752_v61 = vld [vmem:[%s7164_s30 + $0x140] ss:$40 sps:$4 sm:$0xff]  }
  0x1d   :  { %4094 = vmatpush3.bf16.msra.mxu1 %v4705_v20  ;;  %v4747_v59 = vld [vmem:[%s7164_s30 + $0xf8] ss:$40 sps:$4 sm:$0xff]   ;;  %v4770_v62 = vld [vmem:[%s7163_s28 + $0x150] sm:$0xff]   ;;  %v4760_v5 = vld [vmem:[%s7164_s30 + $0x19c] ss:$40 sps:$4 sm:$0xff]  }
  0x1e   :  { %4095 = vmatprep.subr.bf16.mxu1 %v4708_v23  ;;  %v4756_v63 = vld [vmem:[%s7164_s30 + $0x194] ss:$40 sps:$4 sm:$0xff]   ;;  %v4755_v4 = vld [vmem:[%s7164_s30 + $0x148] ss:$40 sps:$4 sm:$0xff]   ;;  %v4764_v8 = vld [vmem:[%s7164_s30 + $0x1e4] ss:$40 sps:$4 sm:$0xff]  }
  0x1f   :  { %4020 = vmatpush3.bf16.msra.mxu0 %v4707_v22  ;;  %v4771_v0 = vld [vmem:[%s7163_s28 + $0x1f8] sm:$0xff]   ;;  %v4772_v1 = vld [vmem:[%s7163_s28 + $0x110] sm:$0xff]   ;;  %v4782_v9 = vld [vmem:[%s7163_s28 + $0x1e8] sm:$0xff]  }
  0x20   :  { %4021 = vmatprep.subr.bf16.mxu0 %v4710_v25  ;;  %v4773_v2 = vld [vmem:[%s7163_s28 + $0x1b8] sm:$0xff]   ;;  %v4774_v3 = vld [vmem:[%s7163_s28 + $0x1f0] sm:$0xff]   ;;  %v4783_v10 = vld [vmem:[%s7163_s28 + $0x1a8] sm:$0xff]  }
  0x21   :  { %4096 = vmatpush3.bf16.msra.mxu1 %v4709_v24  ;;  %v4777_v6 = vld [vmem:[%s7163_s28 + $0x1b0] sm:$0xff]   ;;  %v4763_v11 = vld [vmem:[%s7164_s30 + $0x198] ss:$40 sps:$4 sm:$0xff]   ;;  %v4784_v12 = vld [vmem:[%s7163_s28 + $0x148] sm:$0xff]  }
  0x22   :  { %4097 = vmatprep.subr.bf16.mxu1 %v4712_v27  ;;  %v4758_v7 = vld [vmem:[%s7164_s30 + $0x190] ss:$40 sps:$4 sm:$0xff]   ;;  %v4785_v13 = vld [vmem:[%s7163_s28 + $0x108] sm:$0xff]   ;;  %v4786_v14 = vld [vmem:[%s7163_s28 + $0x1e0] sm:$0xff]  }
  0x23   :  { %4022 = vmatpush3.bf16.msra.mxu0 %v4711_v26  ;;  %v4767_v15 = vld [vmem:[%s7164_s30 + $0x1ec] ss:$40 sps:$4 sm:$0xff]   ;;  %v4789_v16 = vld [vmem:[%s7163_s28 + $0x1a0] sm:$0xff]   ;;  %v4794_v19 = vld [vmem:[%s7163_s28 + $0x1d8] sm:$0xff]  }
  0x24   :  { %4023 = vmatprep.subr.bf16.mxu0 %v4714_v29  ;;  %v4766_v17 = vld [vmem:[%s7164_s30 + $0x1e0] ss:$40 sps:$4 sm:$0xff]   ;;  %v4775_v18 = vld [vmem:[%s7164_s30 + $0x234] ss:$40 sps:$4 sm:$0xff]   ;;  %v4778_v27 = vld [vmem:[%s7164_s30 + $0x230] ss:$40 sps:$4 sm:$0xff]  }
  0x25   :  { %4098 = vmatpush3.bf16.msra.mxu1 %v4713_v28  ;;  %v4795_v20 = vld [vmem:[%s7163_s28 + $0x198] sm:$0xff]   ;;  %v4769_v21 = vld [vmem:[%s7164_s30 + $0x1e8] ss:$40 sps:$4 sm:$0xff]   ;;  %v4796_v22 = vld [vmem:[%s7163_s28 + $0x140] sm:$0xff]  }
  0x26   :  { %4099 = vmatprep.subr.bf16.mxu1 %v4716_v31  ;;  %v4797_v23 = vld [vmem:[%s7163_s28 + $0x1d0] sm:$0xff]   ;;  %v4779_v24 = vld [vmem:[%s7164_s30 + $0x23c] ss:$40 sps:$4 sm:$0xff]   ;;  %v4806_v29 = vld [vmem:[%s7163_s28 + $0x1c8] sm:$0xff]  }
  0x27   :  { %4024 = vmatpush3.bf16.msra.mxu0 %v4715_v30  ;;  %v4800_v25 = vld [vmem:[%s7163_s28 + $0x100] sm:$0xff]   ;;  %v4801_v26 = vld [vmem:[%s7163_s28 + $0x190] sm:$0xff]   ;;  %v4807_v30 = vld [vmem:[%s7163_s28 + $0x188] sm:$0xff]  }
  0x28   :  { %4161 = vmatprep.subr.bf16.mxu0 %v4721_v35  ;;  %v4787_v28 = vld [vmem:[%s7164_s30 + $0x284] ss:$40 sps:$4 sm:$0xff]   ;;  %v4813_v35 = vld [vmem:[%s7163_s28 + $0x278] sm:$0xff]  }
  0x29   :  { %4100 = vmatpush3.bf16.msra.mxu1 %v4720_v34  ;;  %v4808_v31 = vld [vmem:[%s7163_s28 + $0x1c0] sm:$0xff]   ;;  %v4791_v33 = vld [vmem:[%s7164_s30 + $0x28c] ss:$40 sps:$4 sm:$0xff]  }
  0x2a   :  { %1340 = vmatmul.mubr.bf16.vlgmr.msra.gmra.mxu0 %v4717_v32  ;;  %4237 = vmatprep.subr.bf16.mxu1 %v4771_v0  ;;  %v4781_v32 = vld [vmem:[%s7164_s30 + $0x238] ss:$40 sps:$4 sm:$0xff]   ;;  %v4798_v37 = vld [vmem:[%s7164_s30 + $0x2d4] ss:$40 sps:$4 sm:$0xff]  }
  0x2b   :  { %4162 = vmatpush3.bf16.msra.mxu0 %v4725_v38  ;;  %1347 = vmatprep.mubr.bf16.mxu0 %v4726_v39  ;;  %v4812_v34 = vld [vmem:[%s7163_s28 + $0x180] sm:$0xff]   ;;  %v4793_v38 = vld [vmem:[%s7164_s30 + $0x288] ss:$40 sps:$4 sm:$0xff]  }
  0x2c   :  { %1453 = vmatmul.mubr.bf16.vlgmr.msra.gmra.mxu1 %v4722_v36  ;;  %4163 = vmatprep.subr.bf16.mxu0 %v4732_v42  ;;  %v4790_v36 = vld [vmem:[%s7164_s30 + $0x280] ss:$40 sps:$4 sm:$0xff]   ;;  %v4803_v39 = vld [vmem:[%s7164_s30 + $0x2dc] ss:$40 sps:$4 sm:$0xff]  }
  0x2d   :  { %1460 = vmatprep.mubr.bf16.mxu1 %v4729_v40  ;;  %4238 = vmatpush3.bf16.msra.mxu1 %v4773_v2  ;;  %v4802_v40 = vld [vmem:[%s7164_s30 + $0x2d0] ss:$40 sps:$4 sm:$0xff]  }
  0x2e   :  { %4239 = vmatprep.subr.bf16.mxu1 %v4774_v3  ;;  %v4805_v42 = vld [vmem:[%s7164_s30 + $0x2d8] ss:$40 sps:$4 sm:$0xff]   ;;  %v4863_v2 = vld [vmem:[%s7163_s28 + $0x210] sm:$0xff]   ;;  %v4870_v3 = vld [vmem:[%s7163_s28 + $0x248] sm:$0xff]  }
  0x2f   :  { %4164 = vmatpush3.bf16.msra.mxu0 %v4733_v43  ;;  %v4816_v43 = vld [vmem:[%s7164_s30 + $0x1c] ss:$40 sps:$4 sm:$0xff]   ;;  %v4831_v0 = vld [vmem:[%s7164_s30 + $0xb8] ss:$40 sps:$4 sm:$0xff]  }
  0x30   :  { %4165 = vmatprep.subr.bf16.mxu0 %v4740_v47  ;;  %v4824_v47 = vld [vmem:[%s7163_s28 + $0x270] sm:$0xff]  }
  0x31   :  { %4240 = vmatpush3.bf16.msra.mxu1 %v4777_v6  ;;  %v4871_v6 = vld [vmem:[%s7163_s28 + $0x208] sm:$0xff]  }
  0x32   :  { %1348 = vmatmul.mubr.bf16.gmra.mxu0 %v4728_v41  ;;  %4241 = vmatprep.subr.bf16.mxu1 %v4782_v9  ;;  %v4811_v41 = vld [vmem:[%s7164_s30 + $0x14] ss:$40 sps:$4 sm:$0xff]  }
  0x33   :  { %1355 = vmatprep.mubr.bf16.mxu0 %v4734_v45  ;;  %4166 = vmatpush3.bf16.msra.mxu0 %v4741_v48  ;;  %v4817_v45 = vld [vmem:[%s7163_s28 + $0x238] sm:$0xff]  }
  0x34   :  { %1461 = vmatmul.mubr.bf16.gmra.mxu1 %v4731_v44  ;;  %4167 = vmatprep.subr.bf16.mxu0 %v4748_v51  ;;  %v4809_v44 = vld [vmem:[%s7164_s30 + $0x10] ss:$40 sps:$4 sm:$0xff]   ;;  %v4832_v51 = vld [vmem:[%s7163_s28 + $0x268] sm:$0xff]   ;;  %v4845_v9 = vld [vmem:[%s7164_s30 + $0x15c] ss:$40 sps:$4 sm:$0xff]  }
  0x35   :  { %1468 = vmatprep.mubr.bf16.mxu1 %v4737_v46  ;;  %4242 = vmatpush3.bf16.msra.mxu1 %v4783_v10  ;;  %v4818_v46 = vld [vmem:[%s7164_s30 + $0x64] ss:$40 sps:$4 sm:$0xff]   ;;  %v4814_v48 = vld [vmem:[%s7164_s30 + $0x18] ss:$40 sps:$4 sm:$0xff]  }
  0x36   :  { %4243 = vmatprep.subr.bf16.mxu1 %v4786_v14  ;;  %v4881_v10 = vld [vmem:[%s7163_s28 + $0x200] sm:$0xff]   ;;  %v4852_v14 = vld [vmem:[%s7164_s30 + $0x1ac] ss:$40 sps:$4 sm:$0xff]  }
  0x37   :  { %4168 = vmatpush3.bf16.msra.mxu0 %v4751_v54  ;;  %v4833_v54 = vld [vmem:[%s7163_s28 + $0x228] sm:$0xff]  }
  0x38   :  { %4169 = vmatprep.subr.bf16.mxu0 %v4759_v56  ;;  %v4823_v56 = vld [vmem:[%s7164_s30 + $0x68] ss:$40 sps:$4 sm:$0xff]  }
  0x39   :  { %4244 = vmatpush3.bf16.msra.mxu1 %v4789_v16 }
  0x3a   :  { %1356 = vmatmul.mubr.bf16.gmra.mxu0 %v4736_v49  ;;  %4245 = vmatprep.subr.bf16.mxu1 %v4794_v19  ;;  %v4821_v49 = vld [vmem:[%s7164_s30 + $0x6c] ss:$40 sps:$4 sm:$0xff]  }
  0x3b   :  { %1363 = vmatprep.mubr.bf16.mxu0 %v4742_v50  ;;  %4170 = vmatpush3.bf16.msra.mxu0 %v4762_v58  ;;  %v4825_v50 = vld [vmem:[%s7163_s28 + $0x230] sm:$0xff]   ;;  %v4843_v58 = vld [vmem:[%s7163_s28 + $0x220] sm:$0xff]  }
  0x3c   :  { %1469 = vmatmul.mubr.bf16.gmra.mxu1 %v4739_v52  ;;  %4171 = vmatprep.subr.bf16.mxu0 %v4770_v62  ;;  %v4820_v52 = vld [vmem:[%s7164_s30 + $0x60] ss:$40 sps:$4 sm:$0xff]   ;;  %v4854_v62 = vld [vmem:[%s7163_s28 + $0x218] sm:$0xff]  }
  0x3d   :  { %1476 = vmatprep.mubr.bf16.mxu1 %v4745_v53  ;;  %4246 = vmatpush3.bf16.msra.mxu1 %v4795_v20  ;;  %v4826_v53 = vld [vmem:[%s7164_s30 + $0xb4] ss:$40 sps:$4 sm:$0xff]  }
  0x3e   :  { %4247 = vmatprep.subr.bf16.mxu1 %v4797_v23 }
  0x3f   :  { %4172 = vmatpush3.bf16.msra.mxu0 %v4772_v1  ;;  %v4837_v1 = vld [vmem:[%s7164_s30 + $0x10c] ss:$40 sps:$4 sm:$0xff]  }
  0x40   :  { %4173 = vmatprep.subr.bf16.mxu0 %v4784_v12  ;;  %v4848_v12 = vld [vmem:[%s7164_s30 + $0x1a4] ss:$40 sps:$4 sm:$0xff]  }
  0x41   :  { %4248 = vmatpush3.bf16.msra.mxu1 %v4801_v26 }
  0x42   :  { %1364 = vmatmul.mubr.bf16.gmra.mxu0 %v4744_v55  ;;  %4249 = vmatprep.subr.bf16.mxu1 %v4806_v29  ;;  %v4840_v55 = vld [vmem:[%s7163_s28 + $0x260] sm:$0xff]  }
  0x43   :  { %1371 = vmatprep.mubr.bf16.mxu0 %v4749_v57  ;;  %4174 = vmatpush3.bf16.msra.mxu0 %v4785_v13  ;;  %v4829_v57 = vld [vmem:[%s7164_s30 + $0xbc] ss:$40 sps:$4 sm:$0xff]   ;;  %v4847_v13 = vld [vmem:[%s7164_s30 + $0x158] ss:$40 sps:$4 sm:$0xff]  }
  0x44   :  { %1477 = vmatmul.mubr.bf16.gmra.mxu1 %v4747_v59  ;;  %4175 = vmatprep.subr.bf16.mxu0 %v4796_v22  ;;  %v4851_v59 = vld [vmem:[%s7163_s28 + $0x258] sm:$0xff]  }
  0x45   :  { %1484 = vmatprep.mubr.bf16.mxu1 %v4753_v60  ;;  %4250 = vmatpush3.bf16.msra.mxu1 %v4807_v30  ;;  %v4828_v60 = vld [vmem:[%s7164_s30 + $0xb0] ss:$40 sps:$4 sm:$0xff]  }
  0x46   :  { %4251 = vmatprep.subr.bf16.mxu1 %v4808_v31 }
  0x47   :  { %4176 = vmatpush3.bf16.msra.mxu0 %v4800_v25 }
  0x48   :  { %4313 = vmatprep.subr.bf16.mxu0 %v4813_v35 }
  0x49   :  { %4252 = vmatpush3.bf16.msra.mxu1 %v4812_v34 }
  0x4a   :  { %1372 = vmatmul.mubr.bf16.gmra.mxu0 %v4752_v61  ;;  %v4834_v61 = vld [vmem:[%s7164_s30 + $0x104] ss:$40 sps:$4 sm:$0xff]  }
  0x4b   :  { %1379 = vmatprep.mubr.bf16.mxu0 %v4756_v63  ;;  %v4862_v63 = vld [vmem:[%s7163_s28 + $0x250] sm:$0xff]  }
  0x4c   :  { %1485 = vmatmul.mubr.bf16.gmra.mxu1 %v4755_v4  ;;  %v4836_v4 = vld [vmem:[%s7164_s30 + $0x100] ss:$40 sps:$4 sm:$0xff]  }
  0x4d   :  { %1492 = vmatprep.mubr.bf16.mxu1 %v4760_v5  ;;  %v4841_v5 = vld [vmem:[%s7164_s30 + $0x154] ss:$40 sps:$4 sm:$0xff]  }
  0x52   :  { %1380 = vmatmul.mubr.bf16.gmra.mxu0 %v4758_v7  ;;  %v4878_v7 = vld [vmem:[%s7163_s28 + $0x240] sm:$0xff]  }
  0x53   :  { %1387 = vmatprep.mubr.bf16.mxu0 %v4764_v8  ;;  %v4839_v8 = vld [vmem:[%s7164_s30 + $0x108] ss:$40 sps:$4 sm:$0xff]  }
  0x54   :  { %1493 = vmatmul.mubr.bf16.gmra.mxu1 %v4763_v11  ;;  %v4844_v11 = vld [vmem:[%s7164_s30 + $0x150] ss:$40 sps:$4 sm:$0xff]  }
  0x55   :  { %1500 = vmatprep.mubr.bf16.mxu1 %v4767_v15 }
  0x5a   :  { %1388 = vmatmul.mubr.bf16.gmra.mxu0 %v4766_v17 }
  0x5b   :  { %1395 = vmatprep.mubr.bf16.mxu0 %v4775_v18 }
  0x5c   :  { %1501 = vmatmul.mubr.bf16.gmra.mxu1 %v4769_v21 }
  0x5d   :  { %1508 = vmatprep.mubr.bf16.mxu1 %v4779_v24 }
  0x62   :  { %1396 = vmatmul.mubr.bf16.gmra.mxu0 %v4778_v27 }
  0x63   :  { %1403 = vmatprep.mubr.bf16.mxu0 %v4787_v28 }
  0x64   :  { %1509 = vmatmul.mubr.bf16.gmra.mxu1 %v4781_v32 }
  0x65   :  { %1516 = vmatprep.mubr.bf16.mxu1 %v4791_v33 }
  0x6a   :  { %1404 = vmatmul.mubr.bf16.gmra.mxu0 %v4790_v36 }
  0x6b   :  { %1411 = vmatprep.mubr.bf16.mxu0 %v4798_v37 }
  0x6c   :  { %1517 = vmatmul.mubr.bf16.gmra.mxu1 %v4793_v38 }
  0x6d   :  { %1524 = vmatprep.mubr.bf16.mxu1 %v4803_v39 }
  0x72   :  { %1412 = vmatmul.mubr.bf16.gmra.mxu0 %v4802_v40 }
  0x73   :  { %1565 = vmatprep.mubr.bf16.mxu0 %v4811_v41 }
  0x74   :  { %1525 = vmatmul.mubr.bf16.gmra.mxu1 %v4805_v42 }
  0x75   :  { %1678 = vmatprep.mubr.bf16.mxu1 %v4816_v43 }
  0x7a   :  { %1566 = vmatmul.mubr.bf16.vlgmr.msra.gmra.mxu0 %v4809_v44 }
  0x7b   :  { %4314 = vmatpush3.bf16.msra.mxu0 %v4817_v45  ;;  %1573 = vmatprep.mubr.bf16.mxu0 %v4818_v46 }
  0x7c   :  { %4315 = vmatprep.subr.bf16.mxu0 %v4824_v47  ;;  %1679 = vmatmul.mubr.bf16.vlgmr.msra.gmra.mxu1 %v4814_v48 }
  0x7d   :  { %1686 = vmatprep.mubr.bf16.mxu1 %v4821_v49 }
  0x7f   :  { %4316 = vmatpush3.bf16.msra.mxu0 %v4825_v50 }
  0x80   :  { %4317 = vmatprep.subr.bf16.mxu0 %v4832_v51 }
  0x82   :  { %1574 = vmatmul.mubr.bf16.gmra.mxu0 %v4820_v52 }
  0x83   :  { %1581 = vmatprep.mubr.bf16.mxu0 %v4826_v53  ;;  %4318 = vmatpush3.bf16.msra.mxu0 %v4833_v54 }
  0x84   :  { %4319 = vmatprep.subr.bf16.mxu0 %v4840_v55  ;;  %1687 = vmatmul.mubr.bf16.gmra.mxu1 %v4823_v56 }
  0x85   :  { %1694 = vmatprep.mubr.bf16.mxu1 %v4829_v57 }
  0x87   :  { %4320 = vmatpush3.bf16.msra.mxu0 %v4843_v58 }
  0x88   :  { %4321 = vmatprep.subr.bf16.mxu0 %v4851_v59 }
  0x8a   :  { %1582 = vmatmul.mubr.bf16.gmra.mxu0 %v4828_v60 }
  0x8b   :  { %1589 = vmatprep.mubr.bf16.mxu0 %v4834_v61  ;;  %4322 = vmatpush3.bf16.msra.mxu0 %v4854_v62 }
  0x8c   :  { %4323 = vmatprep.subr.bf16.mxu0 %v4862_v63  ;;  %1695 = vmatmul.mubr.bf16.gmra.mxu1 %v4831_v0 }
  0x8d   :  { %1702 = vmatprep.mubr.bf16.mxu1 %v4837_v1 }
  0x8f   :  { %4324 = vmatpush3.bf16.msra.mxu0 %v4863_v2 }
  0x90   :  { %4325 = vmatprep.subr.bf16.mxu0 %v4870_v3 }
  0x92   :  { %1590 = vmatmul.mubr.bf16.gmra.mxu0 %v4836_v4 }
  0x93   :  { %1597 = vmatprep.mubr.bf16.mxu0 %v4841_v5  ;;  %4326 = vmatpush3.bf16.msra.mxu0 %v4871_v6 }
  0x94   :  { %4327 = vmatprep.subr.bf16.mxu0 %v4878_v7  ;;  %1703 = vmatmul.mubr.bf16.gmra.mxu1 %v4839_v8 }
  0x95   :  { %1710 = vmatprep.mubr.bf16.mxu1 %v4845_v9 }
  0x97   :  { %4328 = vmatpush3.bf16.msra.mxu0 %v4881_v10 }
  0x9a   :  { %1598 = vmatmul.mubr.bf16.gmra.mxu0 %v4844_v11 }
  0x9b   :  { %24 = vsyncpa [#allocation7], 0  ;;  %1605 = vmatprep.mubr.bf16.mxu0 %v4848_v12  ;;  %v4850_v15 = vld [vmem:[%s7164_s30 + $0x1a0] ss:$40 sps:$4 sm:$0xff]   ;;  %v4856_v16 = vld [vmem:[%s7164_s30 + $0x1f4] ss:$40 sps:$4 sm:$0xff]  }
  0x9c   :  { %1711 = vmatmul.mubr.bf16.gmra.mxu1 %v4847_v13  ;;  %v4855_v17 = vld [vmem:[%s7164_s30 + $0x1a8] ss:$40 sps:$4 sm:$0xff]   ;;  %v4859_v18 = vld [vmem:[%s7164_s30 + $0x1fc] ss:$40 sps:$4 sm:$0xff]   ;;  %v4861_v21 = vld [vmem:[%s7164_s30 + $0x1f8] ss:$40 sps:$4 sm:$0xff]  }
  0x9d   :  { %1718 = vmatprep.mubr.bf16.mxu1 %v4852_v14  ;;  %v4858_v19 = vld [vmem:[%s7164_s30 + $0x1f0] ss:$40 sps:$4 sm:$0xff]   ;;  %v4864_v20 = vld [vmem:[%s7164_s30 + $0x244] ss:$40 sps:$4 sm:$0xff]   ;;  %v4866_v23 = vld [vmem:[%s7164_s30 + $0x240] ss:$40 sps:$4 sm:$0xff]  }
  0x9e   :  { %v4867_v22 = vld [vmem:[%s7164_s30 + $0x24c] ss:$40 sps:$4 sm:$0xff]   ;;  %v4869_v25 = vld [vmem:[%s7164_s30 + $0x248] ss:$40 sps:$4 sm:$0xff]   ;;  %v4875_v26 = vld [vmem:[%s7164_s30 + $0x29c] ss:$40 sps:$4 sm:$0xff]  }
  0x9f   :  { %v4872_v24 = vld [vmem:[%s7164_s30 + $0x294] ss:$40 sps:$4 sm:$0xff]   ;;  %v4874_v27 = vld [vmem:[%s7164_s30 + $0x290] ss:$40 sps:$4 sm:$0xff]   ;;  %v4879_v28 = vld [vmem:[%s7164_s30 + $0x2e4] ss:$40 sps:$4 sm:$0xff]  }
  0xa0   :  { %v4877_v29 = vld [vmem:[%s7164_s30 + $0x298] ss:$40 sps:$4 sm:$0xff]   ;;  %v4883_v30 = vld [vmem:[%s7164_s30 + $0x2ec] ss:$40 sps:$4 sm:$0xff]   ;;  %v4885_v33 = vld [vmem:[%s7164_s30 + $0x2e8] ss:$40 sps:$4 sm:$0xff]  }
  0xa1   :  { %v4882_v31 = vld [vmem:[%s7164_s30 + $0x2e0] ss:$40 sps:$4 sm:$0xff]   ;;  %v4888_v32 = vld [vmem:[%s7164_s30 + $0x24] ss:$40 sps:$4 sm:$0xff]   ;;  %v4889_v35 = vld [vmem:[%s7164_s30 + $0x74] ss:$40 sps:$4 sm:$0xff]  }
  0xa2   :  { %1606 = vmatmul.mubr.bf16.gmra.mxu0 %v4850_v15  ;;  %v4886_v34 = vld [vmem:[%s7164_s30 + $0x20] ss:$40 sps:$4 sm:$0xff]   ;;  %v4891_v36 = vld [vmem:[%s7164_s30 + $0x70] ss:$40 sps:$4 sm:$0xff]   ;;  %v4892_v37 = vld [vmem:[%s7164_s30 + $0xc4] ss:$40 sps:$4 sm:$0xff]  }
  0xa3   :  { %1613 = vmatprep.mubr.bf16.mxu0 %v4856_v16  ;;  %v4894_v38 = vld [vmem:[%s7164_s30 + $0xc0] ss:$40 sps:$4 sm:$0xff]   ;;  %v4895_v39 = vld [vmem:[%s7164_s30 + $0x114] ss:$40 sps:$4 sm:$0xff]   ;;  %v4897_v40 = vld [vmem:[%s7164_s30 + $0x110] ss:$40 sps:$4 sm:$0xff]  }
  0xa4   :  { %1719 = vmatmul.mubr.bf16.gmra.mxu1 %v4855_v17  ;;  %v4898_v41 = vld [vmem:[%s7164_s30 + $0x164] ss:$40 sps:$4 sm:$0xff]   ;;  %v4900_v42 = vld [vmem:[%s7164_s30 + $0x160] ss:$40 sps:$4 sm:$0xff]   ;;  %v4901_v43 = vld [vmem:[%s7164_s30 + $0x1b4] ss:$40 sps:$4 sm:$0xff]  }
  0xa5   :  { %1726 = vmatprep.mubr.bf16.mxu1 %v4859_v18  ;;  %v5554_v45 = vld [vmem:[%s7066_s2] ss:$0 sm:$0xff]  ;;  %v4903_v50 = vld [vmem:[%s7164_s30 + $0x1b0] ss:$40 sps:$4 sm:$0xff]   ;;  %v4904_v53 = vld [vmem:[%s7164_s30 + $0x204] ss:$40 sps:$4 sm:$0xff]  }
  0xa6   :  { %v4906_v4 = vld [vmem:[%s7164_s30 + $0x200] ss:$40 sps:$4 sm:$0xff]   ;;  %v4907_v7 = vld [vmem:[%s7164_s30 + $0x254] ss:$40 sps:$4 sm:$0xff]   ;;  %s4939_s20 = smov 32   ;;  %s4940_s25 = smov 64  }
  0xa7   :  { %vm1892_vm0 = vcmask 654336   ;;  %vm2220_vm1 = vcmask 261120   ;;  %vm2223_vm2 = vcmask 254976   ;;  %s4941_s26 = smov 96   ;;  %vm4942_vm3 = vmmov 0  }
  0xa8   :  { %vm2266_vm4 = vcmask 523264   ;;  %vm2398_vm5 = vcmask 785408   ;;  %vm3033_vm6 = vcmask 1046528   ;;  %vm3102_vm7 = vcmask 1045504  }
  0xa9   :  { %vm2473_vm8 = vcmask 780288   ;;  %vm2970_vm9 = vcmask 40960  }
  0xaa   :  { %1614 = vmatmul.mubr.bf16.gmra.mxu0 %v4858_v19 }
  0xab   :  { %1621 = vmatprep.mubr.bf16.mxu0 %v4864_v20 }
  0xac   :  { %1727 = vmatmul.mubr.bf16.gmra.mxu1 %v4861_v21 }
  0xad   :  { %1734 = vmatprep.mubr.bf16.mxu1 %v4867_v22  ;;  %v4909_v22 = vld [vmem:[%s7164_s30 + $0x250] ss:$40 sps:$4 sm:$0xff]  }
  0xb2   :  { %1622 = vmatmul.mubr.bf16.gmra.mxu0 %v4866_v23 }
  0xb3   :  { %1629 = vmatprep.mubr.bf16.mxu0 %v4872_v24 }
  0xb4   :  { %1735 = vmatmul.mubr.bf16.gmra.mxu1 %v4869_v25  ;;  %v4912_v25 = vld [vmem:[%s7164_s30 + $0x2a4] ss:$40 sps:$4 sm:$0xff]  }
  0xb5   :  { %1742 = vmatprep.mubr.bf16.mxu1 %v4875_v26 }
  0xba   :  { %1630 = vmatmul.mubr.bf16.gmra.mxu0 %v4874_v27 }
  0xbb   :  { %1637 = vmatprep.mubr.bf16.mxu0 %v4879_v28 }
  0xbc   :  { %1743 = vmatmul.mubr.bf16.gmra.mxu1 %v4877_v29 }
  0xbd   :  { %1750 = vmatprep.mubr.bf16.mxu1 %v4883_v30 }
  0xc2   :  { %1638 = vmatmul.mubr.bf16.gmra.mxu0 %v4882_v31 }
  0xc3   :  { %1791 = vmatprep.mubr.bf16.mxu0 %v4888_v32 }
  0xc4   :  { %1751 = vmatmul.mubr.bf16.gmra.mxu1 %v4885_v33 }
  0xca   :  { %1792 = vmatmul.mubr.bf16.vlgmr.msra.gmra.mxu0 %v4886_v34 }
  0xcb   :  { %1799 = vmatprep.mubr.bf16.mxu0 %v4889_v35 }
  0xd2   :  { %1800 = vmatmul.mubr.bf16.gmra.mxu0 %v4891_v36 }
  0xd3   :  { %1807 = vmatprep.mubr.bf16.mxu0 %v4892_v37 }
  0xda   :  { %1808 = vmatmul.mubr.bf16.gmra.mxu0 %v4894_v38 }
  0xdb   :  { %1815 = vmatprep.mubr.bf16.mxu0 %v4895_v39 }
  0xe2   :  { %1816 = vmatmul.mubr.bf16.gmra.mxu0 %v4897_v40  ;;  %v4910_v40 = vld [vmem:[%s7164_s30 + $0x2a0] ss:$40 sps:$4 sm:$0xff]  }
  0xe3   :  { %1823 = vmatprep.mubr.bf16.mxu0 %v4898_v41 }
  0xea   :  { %v4025_v44 = vpop.f32.mrf.mxu0  ;;  %1824 = vmatmul.mubr.bf16.gmra.mxu0 %v4900_v42 }
  0xeb   :  { %1831 = vmatprep.mubr.bf16.mxu0 %v4901_v43  ;;  %v4915_v43 = vld [vmem:[%s7164_s30 + $0x2f4] ss:$40 sps:$4 sm:$0xff]  }
  0xec   :  { %v4026_v46 = vpop.f32.mrf.mxu0  ;;  %v4101_v48 = vpop.f32.mrf.mxu1 }
  0xed   :  { %v4027_v47 = vadd.f32 %v4026_v46, %v4025_v44 }
  0xee   :  { %v4028_v49 = vpop.f32.mrf.mxu0  ;;  %v4102_v52 = vpop.f32.mrf.mxu1 }
  0xef   :  { %v1342_v51 = vadd.f32 %v4027_v47, %v5554_v45  ;;  %v4103_v54 = vadd.f32 %v4102_v52, %v4101_v48 }
  0xf0   :  { %v4029_v55 = vpop.f32.mrf.mxu0  ;;  %v4104_v57 = vpop.f32.mrf.mxu1 }
  0xf1   :  { %v4030_v56 = vadd.f32 %v4029_v55, %v4028_v49  ;;  %v5563_v58 = vadd.f32 %v4103_v54, %v1342_v51 }
  0xf2   :  { %v4031_v59 = vpop.f32.mrf.mxu0  ;;  %1832 = vmatmul.mubr.bf16.gmra.mxu0 %v4903_v50  ;;  %v4105_v61 = vpop.f32.mrf.mxu1 }
  0xf3   :  { %v1345_v60 = vadd.f32 %v4030_v56, %v5554_v45  ;;  %1839 = vmatprep.mubr.bf16.mxu0 %v4904_v53  ;;  %v4106_v62 = vadd.f32 %v4105_v61, %v4104_v57 }
  0xf4   :  { %v4032_v63 = vpop.f32.mrf.mxu0  ;;  %v4107_v1 = vpop.f32.mrf.mxu1 }
  0xf5   :  { %v4033_v0 = vadd.f32 %v4032_v63, %v4031_v59  ;;  %v5566_v2 = vadd.f32 %v4106_v62, %v1345_v60  ;;  %v4913_v60 = vld [vmem:[%s7164_s30 + $0x2f0] ss:$40 sps:$4 sm:$0xff]  }
  0xf6   :  { %v4034_v3 = vpop.f32.mrf.mxu0  ;;  %v4108_v6 = vpop.f32.mrf.mxu1 }
  0xf7   :  { %v1350_v5 = vadd.f32 %v4033_v0, %v5554_v45  ;;  %v4109_v8 = vadd.f32 %v4108_v6, %v4107_v1 }
  0xf8   :  { %v4035_v9 = vpop.f32.mrf.mxu0  ;;  %v4110_v11 = vpop.f32.mrf.mxu1 }
  0xf9   :  { %v4036_v10 = vadd.f32 %v4035_v9, %v4034_v3  ;;  %v5575_v12 = vadd.f32 %v4109_v8, %v1350_v5 }
  0xfa   :  { %v4037_v13 = vpop.f32.mrf.mxu0  ;;  %1840 = vmatmul.mubr.bf16.gmra.mxu0 %v4906_v4  ;;  %v4111_v15 = vpop.f32.mrf.mxu1 }
  0xfb   :  { %v1353_v14 = vadd.f32 %v4036_v10, %v5554_v45  ;;  %1847 = vmatprep.mubr.bf16.mxu0 %v4907_v7  ;;  %v4112_v16 = vadd.f32 %v4111_v15, %v4110_v11 }
  0xfc   :  { %v4038_v17 = vpop.f32.mrf.mxu0  ;;  %v4113_v19 = vpop.f32.mrf.mxu1 }
  0xfd   :  { %v4039_v18 = vadd.f32 %v4038_v17, %v4037_v13  ;;  %v5578_v20 = vadd.f32 %v4112_v16, %v1353_v14 }
  0xfe   :  { %v4040_v21 = vpop.f32.mrf.mxu0  ;;  %v4114_v24 = vpop.f32.mrf.mxu1 }
  0xff   :  { %v1358_v23 = vadd.f32 %v4039_v18, %v5554_v45  ;;  %v4115_v26 = vadd.f32 %v4114_v24, %v4113_v19 }
 0x100   :  { %v4041_v27 = vpop.f32.mrf.mxu0  ;;  %v4116_v29 = vpop.f32.mrf.mxu1 }
 0x101   :  { %v4042_v28 = vadd.f32 %v4041_v27, %v4040_v21  ;;  %v5587_v30 = vadd.f32 %v4115_v26, %v1358_v23 }
 0x102   :  { %v4043_v31 = vpop.f32.mrf.mxu0  ;;  %1848 = vmatmul.mubr.bf16.gmra.mxu0 %v4909_v22  ;;  %v4117_v33 = vpop.f32.mrf.mxu1 }
 0x103   :  { %v1361_v32 = vadd.f32 %v4042_v28, %v5554_v45  ;;  %1855 = vmatprep.mubr.bf16.mxu0 %v4912_v25  ;;  %v4118_v34 = vadd.f32 %v4117_v33, %v4116_v29 }
 0x104   :  { %v4044_v35 = vpop.f32.mrf.mxu0  ;;  %v4119_v37 = vpop.f32.mrf.mxu1 }
 0x105   :  { %v4045_v36 = vadd.f32 %v4044_v35, %v4043_v31  ;;  %v5590_v38 = vadd.f32 %v4118_v34, %v1361_v32 }
 0x106   :  { %v4046_v39 = vpop.f32.mrf.mxu0  ;;  %v4120_v42 = vpop.f32.mrf.mxu1 }
 0x107   :  { %v1366_v41 = vadd.f32 %v4045_v36, %v5554_v45  ;;  %v4121_v44 = vadd.f32 %v4120_v42, %v4119_v37 }
 0x108   :  { %v4047_v46 = vpop.f32.mrf.mxu0  ;;  %v4122_v48 = vpop.f32.mrf.mxu1 }
 0x109   :  { %v4048_v47 = vadd.f32 %v4047_v46, %v4046_v39  ;;  %v5599_v49 = vadd.f32 %v4121_v44, %v1366_v41 }
 0x10a   :  { %v4049_v50 = vpop.f32.mrf.mxu0  ;;  %1856 = vmatmul.mubr.bf16.gmra.mxu0 %v4910_v40  ;;  %v4123_v52 = vpop.f32.mrf.mxu1 }
 0x10b   :  { %v1369_v51 = vadd.f32 %v4048_v47, %v5554_v45  ;;  %1863 = vmatprep.mubr.bf16.mxu0 %v4915_v43  ;;  %v4124_v53 = vadd.f32 %v4123_v52, %v4122_v48 }
 0x10c   :  { %v4050_v54 = vpop.f32.mrf.mxu0  ;;  %v4125_v56 = vpop.f32.mrf.mxu1 }
 0x10d   :  { %v4051_v55 = vadd.f32 %v4050_v54, %v4049_v50  ;;  %v5602_v57 = vadd.f32 %v4124_v53, %v1369_v51 }
 0x10e   :  { %v4052_v59 = vpop.f32.mrf.mxu0  ;;  %v4126_v62 = vpop.f32.mrf.mxu1 }
 0x10f   :  { %v1374_v61 = vadd.f32 %v4051_v55, %v5554_v45  ;;  %v4127_v63 = vadd.f32 %v4126_v62, %v4125_v56 }
 0x110   :  { %v4053_v0 = vpop.f32.mrf.mxu0  ;;  %v4128_v3 = vpop.f32.mrf.mxu1 }
 0x111   :  { %v4054_v1 = vadd.f32 %v4053_v0, %v4052_v59  ;;  %v5608_v4 = vadd.f32 %v4127_v63, %v1374_v61 }
 0x112   :  { %v4055_v5 = vpop.f32.mrf.mxu0  ;;  %1864 = vmatmul.mubr.bf16.gmra.mxu0 %v4913_v60  ;;  %v4129_v7 = vpop.f32.mrf.mxu1 }
 0x113   :  { %v1377_v6 = vadd.f32 %v4054_v1, %v5554_v45  ;;  %v4130_v8 = vadd.f32 %v4129_v7, %v4128_v3 }
 0x114   :  { %v4056_v9 = vpop.f32.mrf.mxu0  ;;  %v4131_v11 = vpop.f32.mrf.mxu1 }
 0x115   :  { %v4057_v10 = vadd.f32 %v4056_v9, %v4055_v5  ;;  %v5611_v13 = vadd.f32 %v4130_v8, %v1377_v6  ;;  %v2119_v6 = vld [vmem:[%s7069_s5 + $0x98] sm:$0xff] }
 0x116   :  { %v4058_v14 = vpop.f32.mrf.mxu0  ;;  %v4132_v16 = vpop.f32.mrf.mxu1  ;;  %2150 = vmatprep.subr.mxu1 %v2119_v6 }
 0x117   :  { %v1382_v15 = vadd.f32 %v4057_v10, %v5554_v45  ;;  %v4133_v17 = vadd.f32 %v4132_v16, %v4131_v11 }
 0x118   :  { %v4059_v18 = vpop.f32.mrf.mxu0  ;;  %v4134_v21 = vpop.f32.mrf.mxu1 }
 0x119   :  { %v4060_v19 = vadd.f32 %v4059_v18, %v4058_v14  ;;  %v5614_v22 = vadd.f32 %v4133_v17, %v1382_v15  ;;  %v2118_v17 = vld [vmem:[%s7069_s5 + $0x90] sm:$0xff]  ;;  %v2117_v18 = vld [vmem:[%s7069_s5 + $0x88] sm:$0xff] }
 0x11a   :  { %v4061_v23 = vpop.f32.mrf.mxu0  ;;  %v4135_v25 = vpop.f32.mrf.mxu1  ;;  %2151 = vmatpush1.msra.mxu1 %v2118_v17 }
 0x11b   :  { %v1385_v24 = vadd.f32 %v4060_v19, %v5554_v45  ;;  %v4136_v26 = vadd.f32 %v4135_v25, %v4134_v21  ;;  %2152 = vmatprep.subr.mxu1 %v2117_v18 }
 0x11c   :  { %v4062_v27 = vpop.f32.mrf.mxu0  ;;  %v4137_v29 = vpop.f32.mrf.mxu1 }
 0x11d   :  { %v4063_v28 = vadd.f32 %v4062_v27, %v4061_v23  ;;  %v5617_v31 = vadd.f32 %v4136_v26, %v1385_v24 }
 0x11e   :  { %v4064_v32 = vpop.f32.mrf.mxu0  ;;  %v4138_v34 = vpop.f32.mrf.mxu1 }
 0x11f   :  { %v1390_v33 = vadd.f32 %v4063_v28, %v5554_v45  ;;  %v4139_v35 = vadd.f32 %v4138_v34, %v4137_v29 }
 0x120   :  { %v4065_v36 = vpop.f32.mrf.mxu0  ;;  %v4140_v39 = vpop.f32.mrf.mxu1 }
 0x121   :  { %v4066_v37 = vadd.f32 %v4065_v36, %v4064_v32  ;;  %v5620_v40 = vadd.f32 %v4139_v35, %v1390_v33  ;;  %v2116_v35 = vld [vmem:[%s7069_s5 + $0x80] sm:$0xff] }
 0x122   :  { %v4067_v41 = vpop.f32.mrf.mxu0  ;;  %v4141_v43 = vpop.f32.mrf.mxu1  ;;  %2153 = vmatpush1.msra.mxu1 %v2116_v35 }
 0x123   :  { %v1393_v42 = vadd.f32 %v4066_v37, %v5554_v45  ;;  %v4142_v44 = vadd.f32 %v4141_v43, %v4140_v39 }
 0x124   :  { %v4068_v46 = vpop.f32.mrf.mxu0  ;;  %v4143_v48 = vpop.f32.mrf.mxu1 }
 0x125   :  { %v4069_v47 = vadd.f32 %v4068_v46, %v4067_v41  ;;  %v5623_v50 = vadd.f32 %v4142_v44, %v1393_v42 }
 0x126   :  { %v4070_v51 = vpop.f32.mrf.mxu0  ;;  %v4144_v53 = vpop.f32.mrf.mxu1 }
 0x127   :  { %v1398_v52 = vadd.f32 %v4069_v47, %v5554_v45  ;;  %v4145_v54 = vadd.f32 %v4144_v53, %v4143_v48  ;;  %v2115_v47 = vld [vmem:[%s7069_s5 + $0x78] sm:$0xff] }
 0x128   :  { %v4071_v55 = vpop.f32.mrf.mxu0  ;;  %v4146_v59 = vpop.f32.mrf.mxu1  ;;  %2154 = vmatprep.subr.mxu1 %v2115_v47 }
 0x129   :  { %v4072_v56 = vadd.f32 %v4071_v55, %v4070_v51  ;;  %v5626_v60 = vadd.f32 %v4145_v54, %v1398_v52 }
 0x12a   :  { %v4073_v61 = vpop.f32.mrf.mxu0  ;;  %v4147_v63 = vpop.f32.mrf.mxu1 }
 0x12b   :  { %v1401_v62 = vadd.f32 %v4072_v56, %v5554_v45  ;;  %v4148_v0 = vadd.f32 %v4147_v63, %v4146_v59  ;;  %v2114_v56 = vld [vmem:[%s7069_s5 + $0x70] sm:$0xff] }
 0x12c   :  { %v4074_v1 = vpop.f32.mrf.mxu0  ;;  %v4149_v5 = vpop.f32.mrf.mxu1  ;;  %2155 = vmatpush1.msra.mxu1 %v2114_v56 }
 0x12d   :  { %v4075_v3 = vadd.f32 %v4074_v1, %v4073_v61  ;;  %v5632_v7 = vadd.f32 %v4148_v0, %v1401_v62  ;;  %v2112_v62 = vld [vmem:[%s7069_s5 + $0x60] sm:$0xff] }
 0x12e   :  { %v4076_v8 = vpop.f32.mrf.mxu0  ;;  %v4150_v10 = vpop.f32.mrf.mxu1 }
 0x12f   :  { %v1406_v9 = vadd.f32 %v4075_v3, %v5554_v45  ;;  %v4151_v11 = vadd.f32 %v4150_v10, %v4149_v5 }
 0x130   :  { %v4077_v14 = vpop.f32.mrf.mxu0  ;;  %v4152_v16 = vpop.f32.mrf.mxu1 }
 0x131   :  { %v4078_v15 = vadd.f32 %v4077_v14, %v4076_v8  ;;  %v5641_v19 = vadd.f32 %v4151_v11, %v1406_v9 }
 0x132   :  { %v4079_v21 = vpop.f32.mrf.mxu0  ;;  %v4153_v24 = vpop.f32.mrf.mxu1 }
 0x133   :  { %v1409_v23 = vadd.f32 %v4078_v15, %v5554_v45  ;;  %v4154_v25 = vadd.f32 %v4153_v24, %v4152_v16 }
 0x134   :  { %v4080_v26 = vpop.f32.mrf.mxu0  ;;  %v4155_v28 = vpop.f32.mrf.mxu1 }
 0x135   :  { %v4081_v27 = vadd.f32 %v4080_v26, %v4079_v21  ;;  %v5644_v29 = vadd.f32 %v4154_v25, %v1409_v23  ;;  %v2109_v23 = vld [vmem:[%s7069_s5 + $0x48] sm:$0xff] }
 0x136   :  { %v4082_v32 = vpop.f32.mrf.mxu0  ;;  %v4156_v34 = vpop.f32.mrf.mxu1 }
 0x137   :  { %v1414_v33 = vadd.f32 %v4081_v27, %v5554_v45  ;;  %v4157_v36 = vadd.f32 %v4156_v34, %v4155_v28  ;;  %v2108_v28 = vld [vmem:[%s7069_s5 + $0x40] sm:$0xff] }
 0x138   :  { %v4083_v37 = vpop.f32.mrf.mxu0  ;;  %v4158_v41 = vpop.f32.mrf.mxu1 }
 0x139   :  { %v4084_v39 = vadd.f32 %v4083_v37, %v4082_v32  ;;  %v5650_v42 = vadd.f32 %v4157_v36, %v1414_v33  ;;  %v2107_v36 = vld [vmem:[%s7069_s5 + $0x38] sm:$0xff] }
 0x13a   :  { %v4177_v43 = vpop.f32.mrf.mxu0  ;;  %v4159_v46 = vpop.f32.mrf.mxu1 }
 0x13b   :  { %v1417_v44 = vadd.f32 %v4084_v39, %v5554_v45  ;;  %v4160_v48 = vadd.f32 %v4159_v46, %v4158_v41  ;;  %v2113_v45 = vld [vmem:[%s7069_s5 + $0x68] sm:$0xff] }
 0x13c   :  { %v4178_v51 = vpop.f32.mrf.mxu0  ;;  %v5656_v53 = vpop.f32.mrf.mxu1  ;;  %2156 = vmatprep.subr.mxu1 %v2113_v45 }
 0x13d   :  { %v4179_v52 = vadd.f32 %v4178_v51, %v4177_v43  ;;  %v5658_v54 = vadd.f32 %v4160_v48, %v1417_v44  ;;  %2157 = vmatpush1.msra.mxu1 %v2112_v62  ;;  %v2106_v44 = vld [vmem:[%s7069_s5 + $0x30] sm:$0xff] }
 0x13e   :  { %v4180_v55 = vpop.f32.mrf.mxu0  ;;  %v5669_v61 = vpop.f32.mrf.mxu1 }
 0x13f   :  { %v5667_v59 = vadd.f32 %v4179_v52, %v5563_v58  ;;  %v2111_v58 = vld [vmem:[%s7069_s5 + $0x58] sm:$0xff]  ;;  %v2105_v52 = vld [vmem:[%s7069_s5 + $0x28] sm:$0xff] }
 0x140   :  { %v4181_v63 = vpop.f32.mrf.mxu0  ;;  %v5674_v1 = vpop.f32.mrf.mxu1  ;;  %2158 = vmatprep.subr.mxu1 %v2111_v58  ;;  %v2101_v58 = vld [vmem:[%s7069_s5 + $0x8] sm:$0xff] }
 0x141   :  { %v4182_v0 = vadd.f32 %v4181_v63, %v4180_v55  ;;  %v2104_v63 = vld [vmem:[%s7069_s5 + $0x20] sm:$0xff] }
 0x142   :  { %v4183_v3 = vpop.f32.mrf.mxu0  ;;  %v5679_v6 = vpop.f32.mrf.mxu1 }
 0x143   :  { %v5677_v5 = vadd.f32 %v4182_v0, %v5566_v2  ;;  %v2110_v2 = vld [vmem:[%s7069_s5 + $0x50] sm:$0xff] }
 0x144   :  { %v4184_v8 = vpop.f32.mrf.mxu0  ;;  %v5684_v10 = vpop.f32.mrf.mxu1  ;;  %2159 = vmatpush1.msra.mxu1 %v2110_v2  ;;  %v2102_v0 = vld [vmem:[%s7069_s5 + $0x10] sm:$0xff] }
 0x145   :  { %v4185_v9 = vadd.f32 %v4184_v8, %v4183_v3  ;;  %2160 = vmatprep.subr.mxu1 %v2109_v23 }
 0x146   :  { %v4186_v11 = vpop.f32.mrf.mxu0  ;;  %v5692_v16 = vpop.f32.mrf.mxu1  ;;  %2161 = vmatpush1.msra.mxu1 %v2108_v28 }
 0x147   :  { %v5687_v14 = vadd.f32 %v4185_v9, %v5575_v12  ;;  %2162 = vmatprep.subr.mxu1 %v2107_v36 }
 0x148   :  { %v4187_v15 = vpop.f32.mrf.mxu0  ;;  %v5700_v12 = vpop.f32.mrf.mxu1  ;;  %2163 = vmatpush1.msra.mxu1 %v2106_v44 }
 0x149   :  { %v4188_v17 = vadd.f32 %v4187_v15, %v4186_v11  ;;  %2164 = vmatprep.subr.mxu1 %v2105_v52  ;;  %v2100_v11 = vld [vmem:[%s7069_s5] sm:$0xff] }
 0x14a   :  { %v4189_v18 = vpop.f32.mrf.mxu0  ;;  %2165 = vmatpush1.msra.mxu1 %v2104_v63  ;;  %v5788_v52 = vld [vmem:[%s7071_s7 + $0x1] ss:$0 sm:$0xff] }
 0x14b   :  { %v5695_v21 = vadd.f32 %v4188_v17, %v5578_v20  ;;  %v5708_v20 = vpop.f32.mrf.mxu1  ;;  %2239 = vrot.lane.b32.xlu0 %v5788_v52, %s4939_s20 }
 0x14c   :  { %v4190_v24 = vpop.f32.mrf.mxu0 }
 0x14d   :  { %v4191_v25 = vadd.f32 %v4190_v24, %v4189_v18 }
 0x14e   :  { %v4192_v26 = vpop.f32.mrf.mxu0 }
 0x14f   :  { %v5703_v27 = vadd.f32 %v4191_v25, %v5587_v30  ;;  %v5716_v30 = vpop.f32.mrf.mxu1 }
 0x150   :  { %v4193_v32 = vpop.f32.mrf.mxu0 }
 0x151   :  { %v4194_v33 = vadd.f32 %v4193_v32, %v4192_v26 }
 0x152   :  { %v4195_v34 = vpop.f32.mrf.mxu0 }
 0x153   :  { %v5711_v35 = vadd.f32 %v4194_v33, %v5590_v38  ;;  %v5724_v38 = vpop.f32.mrf.mxu1 }
 0x154   :  { %v4196_v37 = vpop.f32.mrf.mxu0 }
 0x155   :  { %v4197_v39 = vadd.f32 %v4196_v37, %v4195_v34 }
 0x156   :  { %v4198_v41 = vpop.f32.mrf.mxu0 }
 0x157   :  { %v5719_v43 = vadd.f32 %v4197_v39, %v5599_v49  ;;  %v5732_v49 = vpop.f32.mrf.mxu1 }
 0x158   :  { %v4199_v46 = vpop.f32.mrf.mxu0 }
 0x159   :  { %v4200_v47 = vadd.f32 %v4199_v46, %v4198_v41  ;;  %v5750_v8 = vpop.f32.mrf.mxu1 }
 0x15a   :  { %v4201_v48 = vpop.f32.mrf.mxu0 }
 0x15b   :  { %v5727_v51 = vadd.f32 %v4200_v47, %v5602_v57  ;;  %v2103_v57 = vld [vmem:[%s7069_s5 + $0x18] sm:$0xff]  ;;  %v5759_v18 = vpop.f32.mrf.mxu1 }
 0x15c   :  { %v4202_v55 = vpop.f32.mrf.mxu0  ;;  %2166 = vmatprep.subr.mxu1 %v2103_v57 }
 0x15d   :  { %v4203_v56 = vadd.f32 %v4202_v55, %v4201_v48  ;;  %2167 = vmatpush1.msra.mxu1 %v2102_v0  ;;  %v5765_v28 = vpop.f32.mrf.mxu1 }
 0x15e   :  { %v4204_v45 = vpop.f32.mrf.mxu0  ;;  %2168 = vmatprep.subr.mxu1 %v2101_v58 }
 0x15f   :  { %v5735_v62 = vadd.f32 %v4203_v56, %v5608_v4  ;;  %v7084_v4 = vmov 0.0   ;;  %2169 = vmatpush1.msra.mxu1 %v2100_v11  ;;  %v5770_v36 = vpop.f32.mrf.mxu1  ;;  %v5799_v56 = vld [vmem:[%s7071_s7 + $0x5] ss:$0 sm:$0xff] }
 0x160   :  { %v4205_v3 = vpop.f32.mrf.mxu0  ;;  %2202 = vmatprep.mubr.f32.mxu1 %v7084_v4  ;;  %2765 = vmatprep.mubr.f32.mxu0 %v7084_v4 }
 0x161   :  { %v4206_v9 = vadd.f32 %v4205_v3, %v4204_v45  ;;  %4483 = vmatprep.subr.mxu1 %v7084_v4  ;;  %v5775_v46 = vpop.f32.mrf.mxu1  ;;  %v5804_v45 = vld [vmem:[%s7071_s7 + $0x2] ss:$0 sm:$0xff] }
 0x162   :  { %v4207_v2 = vpop.f32.mrf.mxu0  ;;  %2255 = vrot.lane.b32.xlu0 %v5804_v45, %s4940_s25 }
 0x163   :  { %v5757_v15 = vadd.f32 %v4206_v9, %v5611_v13  ;;  %v5818_v9 = vld [vmem:[%s7071_s7 + $0x8] ss:$0 sm:$0xff] }
 0x164   :  { %v4208_v17 = vpop.f32.mrf.mxu0 }
 0x165   :  { %v4209_v23 = vadd.f32 %v4208_v17, %v4207_v2 }
 0x166   :  { %v4210_v24 = vpop.f32.mrf.mxu0 }
 0x167   :  { %v5763_v25 = vadd.f32 %v4209_v23, %v5614_v22 }
 0x168   :  { %v4211_v26 = vpop.f32.mrf.mxu0 }
 0x169   :  { %v4212_v32 = vadd.f32 %v4211_v26, %v4210_v24 }
 0x16a   :  { %v4213_v33 = vpop.f32.mrf.mxu0 }
 0x16b   :  { %v5768_v13 = vadd.f32 %v4212_v32, %v5617_v31  ;;  %v5783_v31 = vld [vmem:[%s7071_s7 + $0x4] ss:$0 sm:$0xff] }
 0x16c   :  { %v4214_v34 = vpop.f32.mrf.mxu0  ;;  %2287 = vrot.lane.b32.xlu1 %v5783_v31, %s4939_s20 }
 0x16d   :  { %v4215_v37 = vadd.f32 %v4214_v34, %v4213_v33 }
 0x16e   :  { %v4216_v39 = vpop.f32.mrf.mxu0 }
 0x16f   :  { %v5773_v41 = vadd.f32 %v4215_v37, %v5620_v40 }
 0x170   :  { %v4217_v44 = vpop.f32.mrf.mxu0  ;;  %2304 = vrot.lane.b32.xlu1 %v5799_v56, %s4940_s25 }
 0x171   :  { %v4218_v22 = vadd.f32 %v4217_v44, %v4216_v39 }
 0x172   :  { %v4219_v47 = vpop.f32.mrf.mxu0 }
 0x173   :  { %v5778_v48 = vadd.f32 %v4218_v22, %v5623_v50  ;;  %v5794_v50 = vpop.f32.mrf.mxu1 }
 0x174   :  { %v4220_v40 = vpop.f32.mrf.mxu0  ;;  %2354 = vrot.lane.b32.xlu1 %v5818_v9, %s4940_s25 }
 0x175   :  { %v4221_v55 = vadd.f32 %v4220_v40, %v4219_v47  ;;  %v5813_v3 = vpop.f32.mrf.mxu1 }
 0x176   :  { %v4222_v63 = vpop.f32.mrf.mxu0 }
 0x177   :  { %v5807_v57 = vadd.f32 %v4221_v55, %v5626_v60  ;;  %v5823_v60 = vld [vmem:[%s7071_s7 + $0x7] ss:$0 sm:$0xff]  ;;  %v5832_v23 = vpop.f32.mrf.mxu1 }
 0x178   :  { %v4223_v0 = vpop.f32.mrf.mxu0  ;;  %2337 = vrot.lane.b32.xlu0 %v5823_v60, %s4939_s20 }
 0x179   :  { %v4224_v58 = vadd.f32 %v4223_v0, %v4222_v63  ;;  %v5837_v34 = vpop.f32.mrf.mxu1 }
 0x17a   :  { %v4225_v11 = vpop.f32.mrf.mxu0 }
 0x17b   :  { %v5826_v2 = vadd.f32 %v4224_v58, %v5632_v7  ;;  %v5842_v22 = vpop.f32.mrf.mxu1 }
 0x17c   :  { %v4226_v17 = vpop.f32.mrf.mxu0 }
 0x17d   :  { %v4227_v24 = vadd.f32 %v4226_v17, %v4225_v11  ;;  %v5849_v0 = vpop.f32.mrf.mxu1 }
 0x17e   :  { %v4228_v26 = vpop.f32.mrf.mxu0 }
 0x17f   :  { %v5835_v32 = vadd.f32 %v4227_v24, %v5641_v19  ;;  %v4255_v19 = vadd.f32 %v5669_v61, %v5656_v53 }
 0x180   :  { %v4229_v33 = vpop.f32.mrf.mxu0 }
 0x181   :  { %v4230_v37 = vadd.f32 %v4229_v33, %v4228_v26  ;;  %v1681_v24 = vadd.f32 %v4255_v19, %v5667_v59  ;;  %v4258_v26 = vadd.f32 %v5679_v6, %v5674_v1  ;;  %v5857_v33 = vpop.f32.mrf.mxu1  ;;  %v4264_v19 = vadd.f32 %v5708_v20, %v5700_v12 }
 0x182   :  { %v4231_v7 = vpop.f32.mrf.mxu0 }
 0x183   :  { %v5840_v39 = vadd.f32 %v4230_v37, %v5644_v29  ;;  %v1684_v61 = vadd.f32 %v4258_v26, %v5677_v5  ;;  %v4267_v26 = vadd.f32 %v5724_v38, %v5716_v30 }
 0x184   :  { %v4232_v44 = vpop.f32.mrf.mxu0 }
 0x185   :  { %v4233_v47 = vadd.f32 %v4232_v44, %v4231_v7  ;;  %v4261_v44 = vadd.f32 %v5692_v16, %v5684_v10 }
 0x186   :  { %v4234_v40 = vpop.f32.mrf.mxu0 }
 0x187   :  { %v5845_v55 = vadd.f32 %v4233_v47, %v5650_v42 }
 0x188   :  { %v4235_v63 = vpop.f32.mrf.mxu0 }
 0x189   :  { %v4236_v58 = vadd.f32 %v4235_v63, %v4234_v40  ;;  %v1689_v63 = vadd.f32 %v4261_v44, %v5687_v14 }
 0x18a   :  { %v4329_v11 = vpop.f32.mrf.mxu0 }
 0x18b   :  { %v5852_v17 = vadd.f32 %v4236_v58, %v5658_v54  ;;  %v5862_v54 = vpop.f32.mrf.mxu1 }
 0x18c   :  { %v4330_v29 = vpop.f32.mrf.mxu0 }
 0x18d   :  { %v4331_v42 = vadd.f32 %v4330_v29, %v4329_v11  ;;  %v5868_v58 = vpop.f32.mrf.mxu1 }
 0x18e   :  { %v4332_v37 = vpop.f32.mrf.mxu0 }
 0x18f   :  { %v1794_v7 = vadd.f32 %v4331_v42, %v1681_v24  ;;  %v1692_v24 = vadd.f32 %v4264_v19, %v5695_v21  ;;  %v5874_v42 = vpop.f32.mrf.mxu1 }
 0x190   :  { %v4333_v53 = vpop.f32.mrf.mxu0 }
 0x191   :  { %v1872_v47 = vmax.f32 %v1794_v7, 0.0  ;;  %v4334_v40 = vadd.f32 %v4333_v53, %v4332_v37  ;;  %v1697_v53 = vadd.f32 %v4267_v26, %v5703_v27  ;;  %v5880_v44 = vpop.f32.mrf.mxu1  ;;  %v4279_v26 = vadd.f32 %v5813_v3, %v5794_v50 }
 0x192   :  { %v4335_v59 = vpop.f32.mrf.mxu0 }
 0x193   :  { %1893 = vst.msk [vmem:[#allocation2] sm:$0xff] %vm1892_vm0, %v1872_v47  ;;  %v1797_v1 = vadd.f32 %v4334_v40, %v1684_v61  ;;  %v4270_v61 = vadd.f32 %v5750_v8, %v5732_v49 }
 0x194   :  { %v4336_v6 = vpop.f32.mrf.mxu0 }
 0x195   :  { %v1873_v5 = vmax.f32 %v1797_v1, 0.0  ;;  %v4337_v11 = vadd.f32 %v4336_v6, %v4335_v59  ;;  %v1700_v59 = vadd.f32 %v4270_v61, %v5711_v35  ;;  %v4273_v1 = vadd.f32 %v5765_v28, %v5759_v18  ;;  %v4293_v6 = vpop.f32.mrf.mxu1 }
 0x196   :  { %v4338_v29 = vpop.f32.mrf.mxu0 }
 0x197   :  { %1894 = vst.msk [vmem:[#allocation2 + $0x8] sm:$0xff] %vm1892_vm0, %v1873_v5  ;;  %v1802_v10 = vadd.f32 %v4337_v11, %v1689_v63  ;;  %v1705_v5 = vadd.f32 %v4273_v1, %v5719_v43  ;;  %v4276_v11 = vadd.f32 %v5775_v46, %v5770_v36 }
 0x198   :  { %v4339_v16 = vpop.f32.mrf.mxu0 }
 0x199   :  { %v1874_v14 = vmax.f32 %v1802_v10, 0.0  ;;  %v4340_v37 = vadd.f32 %v4339_v16, %v4338_v29  ;;  %v4295_v29 = vpop.f32.mrf.mxu1 }
 0x19a   :  { %v4341_v7 = vpop.f32.mrf.mxu0 }
 0x19b   :  { %1895 = vst.msk [vmem:[#allocation2 + $0x10] sm:$0xff] %vm1892_vm0, %v1874_v14  ;;  %v1805_v12 = vadd.f32 %v4340_v37, %v1692_v24  ;;  %v1708_v24 = vadd.f32 %v4276_v11, %v5727_v51  ;;  %v4296_v14 = vpop.f32.mrf.mxu1 }
 0x19c   :  { %v4342_v20 = vpop.f32.mrf.mxu0 }
 0x19d   :  { %v1875_v21 = vmax.f32 %v1805_v12, 0.0  ;;  %v4343_v47 = vadd.f32 %v4342_v20, %v4341_v7  ;;  %v1713_v12 = vadd.f32 %v4279_v26, %v5735_v62  ;;  %v4282_v20 = vadd.f32 %v5837_v34, %v5832_v23 }
 0x19e   :  { %v4344_v40 = vpop.f32.mrf.mxu0 }
 0x19f   :  { %1896 = vst.msk [vmem:[#allocation2 + $0x18] sm:$0xff] %vm1892_vm0, %v1875_v21  ;;  %v1810_v30 = vadd.f32 %v4343_v47, %v1697_v53  ;;  %v4298_v53 = vpop.f32.mrf.mxu1  ;;  %v1716_v47 = vadd.f32 %v4282_v20, %v5757_v15 }
 0x1a0   :  { %v4345_v38 = vpop.f32.mrf.mxu0 }
 0x1a1   :  { %v1876_v63 = vmax.f32 %v1810_v30, 0.0  ;;  %v4346_v27 = vadd.f32 %v4345_v38, %v4344_v40  ;;  %v4285_v40 = vadd.f32 %v5849_v0, %v5842_v22  ;;  %v4299_v30 = vpop.f32.mrf.mxu1 }
 0x1a2   :  { %v4347_v19 = vpop.f32.mrf.mxu0 }
 0x1a3   :  { %1897 = vst.msk [vmem:[#allocation2 + $0x20] sm:$0xff] %vm1892_vm0, %v1876_v63  ;;  %v1813_v49 = vadd.f32 %v4346_v27, %v1700_v59  ;;  %v1721_v1 = vadd.f32 %v4285_v40, %v5763_v25  ;;  %v4288_v63 = vadd.f32 %v5862_v54, %v5857_v33  ;;  %v4301_v27 = vpop.f32.mrf.mxu1 }
 0x1a4   :  { %v4348_v8 = vpop.f32.mrf.mxu0 }
 0x1a5   :  { %v1877_v10 = vmax.f32 %v1813_v49, 0.0  ;;  %v4349_v16 = vadd.f32 %v4348_v8, %v4347_v19  ;;  %v1724_v8 = vadd.f32 %v4288_v63, %v5768_v13  ;;  %v4302_v11 = vpop.f32.mrf.mxu1 }
 0x1a6   :  { %v4350_v35 = vpop.f32.mrf.mxu0  ;;  %v1935_v40 = vld [vmem:[#allocation2 + $0x14] sm:$0xff] }
 0x1a7   :  { %1898 = vst.msk [vmem:[#allocation2 + $0x28] sm:$0xff] %vm1892_vm0, %v1877_v10  ;;  %v1818_v18 = vadd.f32 %v4349_v16, %v1705_v5  ;;  %v4291_v5 = vadd.f32 %v5874_v42, %v5868_v58 }
 0x1a8   :  { %v4351_v28 = vpop.f32.mrf.mxu0 }
 0x1a9   :  { %v1878_v37 = vmax.f32 %v1818_v18, 0.0  ;;  %v4352_v7 = vadd.f32 %v4351_v28, %v4350_v35  ;;  %v1729_v35 = vadd.f32 %v4291_v5, %v5773_v41  ;;  %v4294_v18 = vadd.f32 %v4293_v6, %v5880_v44  ;;  %v4304_v28 = vpop.f32.mrf.mxu1 }
 0x1aa   :  { %v4353_v43 = vpop.f32.mrf.mxu0  ;;  %v4300_v6 = vadd.f32 %v4299_v30, %v4298_v53  ;;  %v4303_v30 = vadd.f32 %v4302_v11, %v4301_v27 }
 0x1ab   :  { %1899 = vst.msk [vmem:[#allocation2 + $0x30] sm:$0xff] %vm1892_vm0, %v1878_v37  ;;  %v1821_v36 = vadd.f32 %v4352_v7, %v1708_v24  ;;  %v1732_v42 = vadd.f32 %v4294_v18, %v5778_v48  ;;  %v4297_v7 = vadd.f32 %v4296_v14, %v4295_v29  ;;  %v3960_v29 = vld [vmem:[%s7067_s3] ss:$0 sm:$0xff]  ;;  %v1925_v14 = vld [vmem:[#allocation2 + $0x12] sm:$0x3] }
 0x1ac   :  { %v4354_v46 = vpop.f32.mrf.mxu0 }
 0x1ad   :  { %v1879_v61 = vmax.f32 %v1821_v36, 0.0  ;;  %v4355_v21 = vadd.f32 %v4354_v46, %v4353_v43  ;;  %v4305_v43 = vpop.f32.mrf.mxu1  ;;  %v1737_v44 = vadd.f32 %v4297_v7, %v5807_v57  ;;  %v3962_v57 = vld [vmem:[%s7067_s3 + $0x2] ss:$0 sm:$0xff] }
 0x1ae   :  { %v4356_v51 = vpop.f32.mrf.mxu0  ;;  %v1957_v11 = vld [vmem:[#allocation2 + $0x28] sm:$0xff] }
 0x1af   :  { %1900 = vst.msk [vmem:[#allocation2 + $0x38] sm:$0xff] %vm1892_vm0, %v1879_v61  ;;  %v1826_v50 = vadd.f32 %v4355_v21, %v1713_v12  ;;  %v4307_v61 = vpop.f32.mrf.mxu1  ;;  %v1924_v21 = vld [vmem:[#allocation2 + $0xa] sm:$0xff] }
 0x1b0   :  { %v4357_v3 = vpop.f32.mrf.mxu0 }
 0x1b1   :  { %v1880_v38 = vmax.f32 %v1826_v50, 0.0  ;;  %v4358_v59 = vadd.f32 %v4357_v3, %v4356_v51  ;;  %v3961_v51 = vld [vmem:[%s7067_s3 + $0x1] ss:$0 sm:$0xff] }
 0x1b2   :  { %v4359_v62 = vpop.f32.mrf.mxu0  ;;  %v1932_v63 = vmul.f32 %v3961_v51, %v1925_v14 }
 0x1b3   :  { %1901 = vst.msk [vmem:[#allocation2 + $0x40] sm:$0xff] %vm1892_vm0, %v1880_v38  ;;  %v1829_v23 = vadd.f32 %v4358_v59, %v1716_v47  ;;  %v1913_v47 = vld [vmem:[#allocation2] sm:$0xff]  ;;  %v1914_v38 = vld [vmem:[#allocation2 + $0x8] sm:$0x3]  ;;  %v1931_v59 = vmul.f32 %v3961_v51, %v1924_v21 }
 0x1b4   :  { %v4360_v34 = vpop.f32.mrf.mxu0  ;;  %v1921_v27 = vmul.f32 %v3960_v29, %v1914_v38 }
 0x1b5   :  { %v1881_v19 = vmax.f32 %v1829_v23, 0.0  ;;  %v4361_v49 = vadd.f32 %v4360_v34, %v4359_v62  ;;  %v1936_v62 = vld [vmem:[#allocation2 + $0x1c] sm:$0x3]  ;;  %v1740_v34 = vadd.f32 %v4300_v6, %v5826_v2 }
 0x1b6   :  { %v4362_v15 = vpop.f32.mrf.mxu0 }
 0x1b7   :  { %1902 = vst.msk [vmem:[#allocation2 + $0x48] sm:$0xff] %vm1892_vm0, %v1881_v19  ;;  %v1834_v22 = vadd.f32 %v4361_v49, %v1721_v1  ;;  %v4308_v1 = vpop.f32.mrf.mxu1  ;;  %v1946_v19 = vld [vmem:[#allocation2 + $0x1e] sm:$0xff] }
 0x1b8   :  { %v4363_v0 = vpop.f32.mrf.mxu0  ;;  %v3963_v49 = vld [vmem:[%s7067_s3 + $0x3] ss:$0 sm:$0xff] }
 0x1b9   :  { %v1882_v10 = vmax.f32 %v1834_v22, 0.0  ;;  %v4364_v16 = vadd.f32 %v4363_v0, %v4362_v15  ;;  %v1920_v0 = vmul.f32 %v3960_v29, %v1913_v47  ;;  %v1953_v18 = vmul.f32 %v3963_v49, %v1946_v19 }
 0x1ba   :  { %v4365_v25 = vpop.f32.mrf.mxu0 }
 0x1bb   :  { %1903 = vst.msk [vmem:[#allocation2 + $0x50] sm:$0xff] %vm1892_vm0, %v1882_v10  ;;  %v1837_v33 = vadd.f32 %v4364_v16, %v1724_v8  ;;  %v1942_v8 = vmul.f32 %v3962_v57, %v1935_v40  ;;  %v1947_v10 = vld [vmem:[#allocation2 + $0x26] sm:$0x3]  ;;  %v3964_v16 = vld [vmem:[%s7067_s3 + $0x4] ss:$0 sm:$0xff] }
 0x1bc   :  { %v4366_v54 = vpop.f32.mrf.mxu0 }
 0x1bd   :  { %v1883_v24 = vmax.f32 %v1837_v33, 0.0  ;;  %v4367_v26 = vadd.f32 %v4366_v54, %v4365_v25  ;;  %v1943_v25 = vmul.f32 %v3962_v57, %v1936_v62  ;;  %v1745_v33 = vadd.f32 %v4303_v30, %v5835_v32  ;;  %v1979_v32 = vld [vmem:[#allocation2 + $0x3c] sm:$0xff]  ;;  %v3967_v30 = vld [vmem:[%s7067_s3 + $0x7] ss:$0 sm:$0xff] }
 0x1be   :  { %v4368_v37 = vpop.f32.mrf.mxu0  ;;  %v4306_v54 = vadd.f32 %v4305_v43, %v4304_v28  ;;  %v3966_v28 = vld [vmem:[%s7067_s3 + $0x6] ss:$0 sm:$0xff] }
 0x1bf   :  { %1904 = vst.msk [vmem:[#allocation2 + $0x58] sm:$0xff] %vm1892_vm0, %v1883_v24  ;;  %v1842_v13 = vadd.f32 %v4367_v26, %v1729_v35  ;;  %v1933_v35 = vadd.f32 %v1931_v59, %v1920_v0  ;;  %v1958_v26 = vld [vmem:[#allocation2 + $0x30] sm:$0x3]  ;;  %v1990_v40 = vld [vmem:[#allocation2 + $0x46] sm:$0xff] }
 0x1c0   :  { %v4369_v58 = vpop.f32.mrf.mxu0  ;;  %v1965_v21 = vmul.f32 %v3964_v16, %v1958_v26  ;;  %v1748_v51 = vadd.f32 %v4306_v54, %v5840_v39 }
 0x1c1   :  { %v1884_v36 = vmax.f32 %v1842_v13, 0.0  ;;  %v4370_v46 = vadd.f32 %v4369_v58, %v4368_v37  ;;  %v4310_v37 = vpop.f32.mrf.mxu1  ;;  %v1968_v13 = vld [vmem:[#allocation2 + $0x32] sm:$0xff]  ;;  %v3965_v58 = vld [vmem:[%s7067_s3 + $0x5] ss:$0 sm:$0xff] }
 0x1c2   :  { %v4371_v12 = vpop.f32.mrf.mxu0  ;;  %v1975_v29 = vmul.f32 %v3965_v58, %v1968_v13 }
 0x1c3   :  { %1905 = vst.msk [vmem:[#allocation2 + $0x60] sm:$0xff] %vm1892_vm0, %v1884_v36  ;;  %v1845_v41 = vadd.f32 %v4370_v46, %v1732_v42  ;;  %v1934_v36 = vadd.f32 %v1932_v63, %v1921_v27  ;;  %v1954_v46 = vmul.f32 %v3963_v49, %v1947_v10  ;;  %v4311_v47 = vpop.f32.mrf.mxu1  ;;  %v1991_v63 = vld [vmem:[#allocation2 + $0x4e] sm:$0x3] }
 0x1c4   :  { %v4372_v20 = vpop.f32.mrf.mxu0 }
 0x1c5   :  { %v1885_v50 = vmax.f32 %v1845_v41, 0.0  ;;  %v4373_v48 = vadd.f32 %v4372_v20, %v4371_v12  ;;  %v1944_v12 = vadd.f32 %v1942_v8, %v1933_v35  ;;  %v1964_v41 = vmul.f32 %v3964_v16, %v1957_v11 }
 0x1c6   :  { %v4374_v3 = vpop.f32.mrf.mxu0  ;;  %v1945_v6 = vadd.f32 %v1943_v25, %v1934_v36  ;;  %v2002_v10 = vld [vmem:[#allocation2 + $0x58] sm:$0x3] }
 0x1c7   :  { %1906 = vst.msk [vmem:[#allocation2 + $0x68] sm:$0xff] %vm1892_vm0, %v1885_v50  ;;  %v1850_v53 = vadd.f32 %v4373_v48, %v1737_v44  ;;  %v1969_v44 = vld [vmem:[#allocation2 + $0x3a] sm:$0x3]  ;;  %v4309_v50 = vadd.f32 %v4308_v1, %v4307_v61  ;;  %v1955_v48 = vadd.f32 %v1953_v18, %v1944_v12  ;;  %v2001_v61 = vld [vmem:[#allocation2 + $0x50] sm:$0xff]  ;;  %v3968_v1 = vld [vmem:[%s7067_s3 + $0x8] ss:$0 sm:$0xff] }
 0x1c8   :  { %v4375_v23 = vpop.f32.mrf.mxu0  ;;  %v1956_v38 = vadd.f32 %v1954_v46, %v1945_v6  ;;  %v1976_v59 = vmul.f32 %v3965_v58, %v1969_v44  ;;  %v2008_v18 = vmul.f32 %v3968_v1, %v2001_v61  ;;  %v3970_v46 = vld [vmem:[%s7067_s3 + $0xa] ss:$0 sm:$0xff]  ;;  %v3971_v6 = vld [vmem:[%s7067_s3 + $0xb] ss:$0 sm:$0xff]  ;;  %v3974_v61 = vld [vmem:[%s7067_s3 + $0xe] ss:$0 sm:$0xff] }
 0x1c9   :  { %v1886_v15 = vmax.f32 %v1850_v53, 0.0  ;;  %v4376_v22 = vadd.f32 %v4375_v23, %v4374_v3  ;;  %v1980_v3 = vld [vmem:[#allocation2 + $0x44] sm:$0x3]  ;;  %v1966_v62 = vadd.f32 %v1964_v41, %v1955_v48  ;;  %v1986_v23 = vmul.f32 %v3966_v28, %v1979_v32 }
 0x1ca   :  { %v4377_v5 = vpop.f32.mrf.mxu0  ;;  %v1967_v19 = vadd.f32 %v1965_v21, %v1956_v38  ;;  %v1987_v49 = vmul.f32 %v3966_v28, %v1980_v3  ;;  %v2012_v16 = vld [vmem:[#allocation2 + $0x5a] sm:$0xff]  ;;  %v3972_v3 = vld [vmem:[%s7067_s3 + $0xc] ss:$0 sm:$0xff] }
 0x1cb   :  { %1907 = vst.msk [vmem:[#allocation2 + $0x70] sm:$0xff] %vm1892_vm0, %v1886_v15  ;;  %v1853_v2 = vadd.f32 %v4376_v22, %v1740_v34  ;;  %v1753_v15 = vadd.f32 %v4309_v50, %v5845_v55  ;;  %v4312_v22 = vadd.f32 %v4311_v47, %v4310_v37  ;;  %v1977_v8 = vadd.f32 %v1975_v29, %v1966_v62 }
 0x1cc   :  { %v4378_v24 = vpop.f32.mrf.mxu0  ;;  %v1978_v25 = vadd.f32 %v1976_v59, %v1967_v19  ;;  %v2009_v37 = vmul.f32 %v3968_v1, %v2002_v10  ;;  %v3973_v59 = vld [vmem:[%s7067_s3 + $0xd] ss:$0 sm:$0xff] }
 0x1cd   :  { %v1887_v42 = vmax.f32 %v1853_v2, 0.0  ;;  %v4379_v7 = vadd.f32 %v4378_v24, %v4377_v5  ;;  %v1997_v5 = vmul.f32 %v3967_v30, %v1990_v40  ;;  %v3969_v2 = vld [vmem:[%s7067_s3 + $0x9] ss:$0 sm:$0xff]  ;;  %v1988_v35 = vadd.f32 %v1986_v23, %v1977_v8  ;;  %v2013_v24 = vld [vmem:[#allocation2 + $0x62] sm:$0x3] }
 0x1ce   :  { %v4380_v20 = vpop.f32.mrf.mxu0  ;;  %v1989_v26 = vadd.f32 %v1987_v49, %v1978_v25  ;;  %v1756_v13 = vadd.f32 %v4312_v22, %v5852_v17  ;;  %v2023_v36 = vld [vmem:[#allocation2 + $0x64] sm:$0xff]  ;;  %v2024_v12 = vld [vmem:[#allocation2 + $0x6c] sm:$0x3]  ;;  %v2020_v32 = vmul.f32 %v3969_v2, %v2013_v24 }
 0x1cf   :  { %1908 = vst.msk [vmem:[#allocation2 + $0x78] sm:$0xff] %vm1892_vm0, %v1887_v42  ;;  %v1858_v43 = vadd.f32 %v4379_v7, %v1745_v33  ;;  %v1998_v33 = vmul.f32 %v3967_v30, %v1991_v63  ;;  %v1999_v42 = vadd.f32 %v1997_v5, %v1988_v35  ;;  %v2019_v7 = vmul.f32 %v3969_v2, %v2012_v16 }
 0x1d0   :  { %v4381_v14 = vpop.f32.mrf.mxu0  ;;  %v2031_v48 = vmul.f32 %v3970_v46, %v2024_v12 }
 0x1d1   :  { %v1888_v57 = vmax.f32 %v1858_v43, 0.0  ;;  %v4382_v53 = vadd.f32 %v4381_v14, %v4380_v20  ;;  %v2000_v44 = vadd.f32 %v1998_v33, %v1989_v26  ;;  %v2010_v28 = vadd.f32 %v2008_v18, %v1999_v42 }
 0x1d2   :  { %v4383_v34 = vpop.f32.mrf.mxu0  ;;  %v2034_v43 = vld [vmem:[#allocation2 + $0x6e] sm:$0xff]  ;;  %v2035_v17 = vld [vmem:[#allocation2 + $0x76] sm:$0x3] }
 0x1d3   :  { %1909 = vst.msk [vmem:[#allocation2 + $0x80] sm:$0xff] %vm1892_vm0, %v1888_v57  ;;  %v1861_v39 = vadd.f32 %v4382_v53, %v1748_v51  ;;  %v2030_v51 = vmul.f32 %v3970_v46, %v2023_v36  ;;  %v2011_v50 = vadd.f32 %v2009_v37, %v2000_v44  ;;  %v2021_v29 = vadd.f32 %v2019_v7, %v2010_v28 }
 0x1d4   :  { %v4384_v0 = vpop.f32.mrf.mxu0  ;;  %v2041_v57 = vmul.f32 %v3971_v6, %v2034_v43  ;;  %v2042_v30 = vmul.f32 %v3971_v6, %v2035_v17  ;;  %v2122_v36 = vlaneseq  ;;  %v5995_v17 = vld [vmem:[%s7073_s9 + $0x58] sm:$0xff] }
 0x1d5   :  { %v1889_v27 = vmax.f32 %v1861_v39, 0.0  ;;  %v4385_v11 = vadd.f32 %v4384_v0, %v4383_v34  ;;  %v2022_v53 = vadd.f32 %v2020_v32, %v2011_v50  ;;  %v2032_v23 = vadd.f32 %v2030_v51, %v2021_v29 }
 0x1d6   :  { %v4386_v54 = vpop.f32.mrf.mxu0  ;;  %v2045_v14 = vld [vmem:[#allocation2 + $0x78] sm:$0xff]  ;;  %v2123_v46 = vshrl.u32 %v2122_v36, 7 }
 0x1d7   :  { %1910 = vst.msk [vmem:[#allocation2 + $0x88] sm:$0xff] %vm1892_vm0, %v1889_v27  ;;  %v1866_v55 = vadd.f32 %v4385_v11, %v1753_v15  ;;  %v2052_v34 = vmul.f32 %v3972_v3, %v2045_v14  ;;  %v2033_v63 = vadd.f32 %v2031_v48, %v2022_v53  ;;  %v2043_v1 = vadd.f32 %v2041_v57, %v2032_v23  ;;  %v3975_v11 = vld [vmem:[%s7067_s3 + $0xf] ss:$0 sm:$0xff] }
 0x1d8   :  { %v4387_v58 = vpop.f32.mrf.mxu0  ;;  %v5983_v12 = vsub.s32 0, %v2123_v46 }
 0x1d9   :  { %v1890_v41 = vmax.f32 %v1866_v55, 0.0  ;;  %v4388_v20 = vadd.f32 %v4387_v58, %v4386_v54  ;;  %v2044_v49 = vadd.f32 %v2042_v30, %v2033_v63  ;;  %v2054_v8 = vadd.f32 %v2052_v34, %v2043_v1  ;;  %v3976_v55 = vld [vmem:[%s7068_s4] ss:$0 sm:$0xff]  ;;  %v6035_v1 = vld [vmem:[%s7073_s9 + $0x30] sm:$0xff] }
 0x1da   :  { %v2046_v47 = vld [vmem:[#allocation2 + $0x80] sm:$0x3] }
 0x1db   :  { %1911 = vst.msk [vmem:[#allocation2 + $0x90] sm:$0xff] %vm1892_vm0, %v1890_v41  ;;  %v1869_v21 = vadd.f32 %v4388_v20, %v1756_v13  ;;  %v2053_v39 = vmul.f32 %v3972_v3, %v2046_v47  ;;  %v2120_v41 = vld [vmem:[%s7070_s6] sm:$0x3]  ;;  %v5988_v20 = vsub.s32 1, %v2123_v46  ;;  %v2240_v3 = vpop.permute.xlu0 %2239  ;;  %v6109_v46 = vld [vmem:[%s7071_s7 + $0x3] ss:$0 sm:$0xff] }
 0x1dc   :  { %v2125_v44 = vrot.slane %v2120_v41, %v5983_v12 }
 0x1dd   :  { %v1891_v40 = vmax.f32 %v1869_v21, 0.0  ;;  %v2055_v10 = vadd.f32 %v2053_v39, %v2044_v49  ;;  %v2129_v32 = vrot.slane %v2120_v41, %v5988_v20  ;;  %v6000_v21 = vld [vmem:[%s7073_s9 + $0x50] sm:$0xff] }
 0x1de   :  { %v2056_v38 = vld [vmem:[#allocation2 + $0x82] sm:$0xff]  ;;  %v2057_v62 = vld [vmem:[#allocation2 + $0x8a] sm:$0x3]  ;;  %v2288_v57 = vpop.permute.xlu1 %2287 }
 0x1df   :  { %1912 = vst.msk [vmem:[#allocation2 + $0x98] sm:$0xff] %vm1892_vm0, %v1891_v40  ;;  %v2063_v19 = vmul.f32 %v3973_v59, %v2056_v38  ;;  %v2064_v15 = vmul.f32 %v3973_v59, %v2057_v62  ;;  %v6009_v40 = vld [vmem:[%s7073_s9 + $0x48] sm:$0xff]  ;;  %v6016_v38 = vld [vmem:[%s7073_s9 + $0x40] sm:$0xff]  ;;  %v6023_v62 = vld [vmem:[%s7073_s9 + $0x38] sm:$0xff]  ;;  %v2256_v63 = vpop.permute.xlu0 %2255 }
 0x1e1   :  { %v2065_v16 = vadd.f32 %v2063_v19, %v2054_v8  ;;  %v2066_v2 = vadd.f32 %v2064_v15, %v2055_v10  ;;  %v6052_v10 = vld [vmem:[%s7073_s9 + $0x20] sm:$0xff] }
 0x1e2   :  { %v2067_v22 = vld [vmem:[#allocation2 + $0x8c] sm:$0xff]  ;;  %v2068_v0 = vld [vmem:[#allocation2 + $0x94] sm:$0x3] }
 0x1e3   :  { %v2074_v5 = vmul.f32 %v3974_v61, %v2067_v22  ;;  %v2075_v27 = vmul.f32 %v3974_v61, %v2068_v0  ;;  %v2305_v61 = vpop.permute.xlu1 %2304 }
 0x1e5   :  { %v2076_v54 = vadd.f32 %v2074_v5, %v2065_v16  ;;  %v2077_v18 = vadd.f32 %v2075_v27, %v2066_v2  ;;  %v6047_v5 = vld [vmem:[%s7073_s9 + $0x28] sm:$0xff] }
 0x1e6   :  { %v2078_v25 = vld [vmem:[#allocation2 + $0x96] sm:$0xff]  ;;  %v2079_v33 = vld [vmem:[#allocation2 + $0x9e] sm:$0x3] }
 0x1e7   :  { %v2085_v35 = vmul.f32 %v3975_v11, %v2078_v25  ;;  %v2086_v24 = vmul.f32 %v3975_v11, %v2079_v33  ;;  %v2355_v25 = vpop.permute.xlu1 %2354 }
 0x1e9   :  { %v2087_v26 = vadd.f32 %v2085_v35, %v2076_v54  ;;  %v2088_v37 = vadd.f32 %v2086_v24, %v2077_v18  ;;  %v6063_v35 = vld [vmem:[%s7073_s9 + $0x18] sm:$0xff] }
 0x1ea   :  { %v2338_v2 = vpop.permute.xlu0 %2337 }
 0x1eb   :  { %v2096_v13 = vadd.f32 %v3976_v55, %v2087_v26  ;;  %v2097_v42 = vadd.f32 %v3976_v55, %v2088_v37  ;;  %v6071_v26 = vld [vmem:[%s7073_s9 + $0x10] sm:$0xff] }
 0x1ed   :  { %v2098_v58 = vmax.f32 %v2096_v13, 0.0  ;;  %v2099_v7 = vmax.f32 %v2097_v42, 0.0  ;;  %v6084_v42 = vld [vmem:[%s7073_s9] sm:$0xff] }
 0x1ef   :  { %3977 = vmatmul.mubr.msk.f32.vlgmr.msra.gmra.mxu1 %vm1892_vm0, %v2098_v58  ;;  %v6079_v58 = vld [vmem:[%s7073_s9 + $0x8] sm:$0xff]  ;;  %s4944_s9 = smov [#allocation6]  }
 0x1f0   :  { %2208 = vmatprep.mubr.f32.mxu1 %v7084_v4  ;;  %4484 = vmatpush3.msra.mxu1 %v5995_v17  ;;  %s3771_s14 = sshll.u32 %s4944_s9, 4  ;;  %s3772_s14 = int_to_ptr.vmem [resolvable:$true] %s3771_s14 }
 0x1f1   :  { %4485 = vmatprep.subr.mxu1 %v7084_v4  ;;  %p4921_p1 = scmp.lt.s32.totalorder %s3772_s14, %s3772_s14 }
 0x1f2   :  { %4486 = vmatpush3.msra.mxu1 %v6000_v21 }
 0x1f3   :  { %3978 = vmatmul.mubr.msk.f32.gmra.mxu1 %vm1892_vm0, %v2099_v7  ;;  %4487 = vmatprep.subr.mxu1 %v7084_v4 }
 0x1f4   :  { %4488 = vmatpush3.msra.mxu1 %v6009_v40  ;;  %4507 = vmatprep.mubr.msk.f32.mxu1 %vm4942_vm3, %v7084_v4 }
 0x1f5   :  { %4489 = vmatprep.subr.mxu1 %v7084_v4 }
 0x1f6   :  { %4490 = vmatpush3.msra.mxu1 %v6016_v38 }
 0x1f7   :  { %4491 = vmatprep.subr.mxu1 %v7084_v4 }
 0x1f8   :  { %4492 = vmatpush3.msra.mxu1 %v6023_v62 }
 0x1f9   :  { %4493 = vmatprep.subr.mxu1 %v7084_v4 }
 0x1fa   :  { %4494 = vmatpush3.msra.mxu1 %v6035_v1 }
 0x1fb   :  { %4495 = vmatprep.subr.mxu1 %v7084_v4 }
 0x1fc   :  { %4496 = vmatpush3.msra.mxu1 %v6047_v5 }
 0x1fd   :  { %4497 = vmatprep.subr.mxu1 %v7084_v4 }
 0x1fe   :  { %4498 = vmatpush3.msra.mxu1 %v6052_v10 }
 0x1ff   :  { %4499 = vmatprep.subr.mxu1 %v7084_v4 }
 0x200   :  { %4500 = vmatpush3.msra.mxu1 %v6063_v35 }
 0x201   :  { %4501 = vmatprep.subr.mxu1 %v7084_v4 }
 0x202   :  { %4502 = vmatpush3.msra.mxu1 %v6071_v26 }
 0x203   :  { %4503 = vmatprep.subr.mxu1 %v7084_v4 }
 0x204   :  { %4504 = vmatpush3.msra.mxu1 %v6079_v58 }
 0x205   :  { %4505 = vmatprep.subr.mxu1 %v7084_v4 }
 0x206   :  { %4506 = vmatpush3.msra.mxu1 %v6084_v42 }
 0x2af   :  { %v2204_v28 = vpop.f32.mrf.mxu1 }
 0x2b0   :  { %v2205_v43 = vadd.f32 %v2204_v28, %v2125_v44  ;;  %v6124_v28 = vld [vmem:[%s7071_s7 + $0x6] ss:$0 sm:$0xff] }
 0x2b1   :  { %v2206_v6 = vpop.f32.mrf.mxu1 }
 0x2b2   :  { %v2215_v51 = vmax.f32 %v2205_v43, 0.0  ;;  %v2207_v50 = vadd.f32 %v2206_v6, %v2129_v32 }
 0x2b3   :  { %v2210_v48 = vpop.f32.mrf.mxu1 }
 0x2b4   :  { %2219 = vst [vmem:[#allocation3] sm:$0xff] %v2215_v51  ;;  %v2216_v29 = vmax.f32 %v2207_v50, 0.0  ;;  %v2211_v14 = vadd.f32 %v2210_v48, %v2125_v44 }
 0x2b5   :  { %v2212_v47 = vpop.f32.mrf.mxu1 }
 0x2b6   :  { %2221 = vst.msk [vmem:[#allocation3 + $0x8] sm:$0xff] %vm2220_vm1, %v2216_v29  ;;  %v2217_v53 = vmax.f32 %v2211_v14, 0.0  ;;  %v2213_v30 = vadd.f32 %v2212_v47, %v2129_v32 }
 0x2b8   :  { %2222 = vst [vmem:[#allocation3 + $0x10] sm:$0x3] %v2217_v53  ;;  %v2218_v59 = vmax.f32 %v2213_v30, 0.0 }
 0x2ba   :  { %2224 = vst.msk [vmem:[#allocation3 + $0x18] sm:$0x3] %vm2223_vm2, %v2218_v59 }
 0x2bb   :  { %v6026_v23 = vld [vmem:[#allocation3] sm:$0xe] }
 0x2bc   :  { %v6028_v34 = vld [vmem:[#allocation3] sm:$0x7]  ;;  %v2290_v19 = vmul.f32 %v2288_v57, %v6026_v23  ;;  %v2307_v0 = vmul.f32 %v2305_v61, %v6026_v23 }
 0x2bd   :  { %v2242_v39 = vmul.f32 %v2240_v3, %v6028_v34  ;;  %v2248_v49 = vld [vmem:[#allocation3 + $0x8] sm:$0x7]  ;;  %v2258_v15 = vmul.f32 %v2256_v63, %v6028_v34  ;;  %v2320_v16 = vld [vmem:[#allocation3] sm:$0x1c] }
 0x2be   :  { %v2297_v22 = vld [vmem:[#allocation3 + $0x8] sm:$0xe]  ;;  %v2259_v8 = vmul.f32 %v2256_v63, %v2248_v49  ;;  %v2292_v27 = vrot.slane %v2290_v19, 1  ;;  %v2311_v33 = vrot.slane %v2307_v0, 1  ;;  %v2340_v54 = vmul.f32 %v2338_v2, %v2320_v16  ;;  %v6128_v63 = vld [vmem:[#allocation3] sm:$0xe0] }
 0x2bf   :  { %2244 = vrot.lane.b32.xlu0 %v2242_v39, %s4941_s26  ;;  %2262 = vrot.lane.b32.xlu1 %v2258_v15, %s4940_s25  ;;  %v2308_v11 = vmul.f32 %v2305_v61, %v2297_v22  ;;  %v2347_v24 = vld [vmem:[#allocation3 + $0x8] sm:$0x1c]  ;;  %v2357_v55 = vmul.f32 %v2355_v25, %v2320_v16  ;;  %v2326_v48 = vmul.f32 %v6124_v28, %v2320_v16  ;;  %v6133_v61 = vld [vmem:[%s7072_s8] ss:$0 sm:$0xff]  ;;  %v3001_v0 = vld [vmem:[#allocation3 + $0x8] sm:$0xe0] }
 0x2c0   :  { %v2358_v37 = vmul.f32 %v2355_v25, %v2347_v24  ;;  %v2342_v13 = vrot.slane %v2340_v54, 2 }
 0x2c1   :  { %v2312_v18 = vrot.slane %v2308_v11, 1  ;;  %v2361_v7 = vrot.slane %v2357_v55, 2  ;;  %v2328_v57 = vrot.slane %v2326_v48, 2  ;;  %v6141_v11 = vld [vmem:[#allocation3 + $0x10] sm:$0x1] }
 0x2c2   :  { %v2362_v36 = vrot.slane %v2358_v37, 2  ;;  %v3059_v37 = vld [vmem:[#allocation3 + $0x8] sm:$0xc0] }
 0x2c3   :  { %2264 = vrot.lane.b32.xlu0 %v2259_v8, %s4940_s25  ;;  %2293 = vrot.lane.b32.xlu1 %v2292_v27, %s4941_s26  ;;  %v6139_v27 = vld [vmem:[#allocation3] sm:$0xc0] }
 0x2c7   :  { %2313 = vrot.lane.b32.xlu0 %v2311_v33, %s4940_s25  ;;  %2315 = vrot.lane.b32.xlu1 %v2312_v18, %s4940_s25 }
 0x2cb   :  { %2343 = vrot.lane.b32.xlu0 %v2342_v13, %s4941_s26  ;;  %2363 = vrot.lane.b32.xlu1 %v2361_v7, %s4940_s25  ;;  %v3060_v13 = vld [vmem:[#allocation3 + $0x18] sm:$0x1] }
 0x2cf   :  { %2365 = vrot.lane.b32.xlu0 %v2362_v36, %s4940_s25  ;;  %2992 = vrot.lane.b32.xlu1 %v5788_v52, %s4939_s20  ;;  %v6114_v52 = vld [vmem:[%s7071_s7] ss:$0 sm:$0xff]  ;;  %v6149_v36 = vld [vmem:[#allocation3] sm:$0x80] }
 0x2d3   :  { %3008 = vrot.lane.b32.xlu0 %v5804_v45, %s4940_s25  ;;  %3045 = vrot.lane.b32.xlu1 %v5783_v31, %s4939_s20 }
 0x2d7   :  { %3067 = vrot.lane.b32.xlu0 %v5799_v56, %s4940_s25  ;;  %3114 = vrot.lane.b32.xlu1 %v5823_v60, %s4939_s20  ;;  %v2276_v56 = vmul.f32 %v6109_v46, %v6026_v23  ;;  %v2231_v60 = vmul.f32 %v6114_v52, %v6028_v34 }
 0x2d9   :  { %v2278_v43 = vrot.slane %v2276_v56, 1 }
 0x2db   :  { %3136 = vrot.lane.b32.xlu0 %v5818_v9, %s4940_s25 }
 0x331   :  { %v2245_v31 = vpop.permute.xlu0 %2244  ;;  %v2263_v45 = vpop.permute.xlu1 %2262 }
 0x332   :  { %v2247_v9 = vadd.f32 %v2245_v31, %v2231_v60  ;;  %v6151_v31 = vld [vmem:[#allocation3 + $0x10] sm:$0x3] }
 0x335   :  { %v2265_v41 = vpop.permute.xlu0 %2264  ;;  %v2294_v44 = vpop.permute.xlu1 %2293 }
 0x336   :  { %v2267_v32 = vsel %vm2266_vm4, %v2263_v45, %v2265_v41 }
 0x337   :  { %v2269_v6 = vadd.f32 %v2267_v32, %v2247_v9 }
 0x339   :  { %v2280_v51 = vadd.f32 %v2278_v43, %v2269_v6  ;;  %v2314_v50 = vpop.permute.xlu0 %2313  ;;  %v2316_v29 = vpop.permute.xlu1 %2315 }
 0x33a   :  { %v2317_v3 = vsel %vm2266_vm4, %v2314_v50, %v2316_v29 }
 0x33b   :  { %v2296_v14 = vadd.f32 %v2294_v44, %v2280_v51 }
 0x33d   :  { %v2319_v47 = vadd.f32 %v2317_v3, %v2296_v14  ;;  %v2344_v53 = vpop.permute.xlu0 %2343  ;;  %v2364_v30 = vpop.permute.xlu1 %2363 }
 0x33f   :  { %v2330_v59 = vadd.f32 %v2328_v57, %v2319_v47  ;;  %v3128_v47 = vld [vmem:[#allocation3 + $0x8] sm:$0x80]  ;;  %v3129_v57 = vld [vmem:[#allocation3 + $0x18] sm:$0x3] }
 0x341   :  { %v2346_v23 = vadd.f32 %v2344_v53, %v2330_v59  ;;  %v2366_v34 = vpop.permute.xlu0 %2365  ;;  %v2993_v39 = vpop.permute.xlu1 %2992 }
 0x342   :  { %v2367_v19 = vsel %vm2266_vm4, %v2364_v30, %v2366_v34  ;;  %v2995_v49 = vmul.f32 %v2993_v39, %v6128_v63 }
 0x343   :  { %v2369_v15 = vadd.f32 %v2367_v19, %v2346_v23 }
 0x344   :  { %2997 = vrot.lane.b32.xlu1 %v2995_v49, %s4941_s26 }
 0x345   :  { %v2377_v22 = vadd.f32 %v6133_v61, %v2369_v15  ;;  %v3009_v8 = vpop.permute.xlu0 %3008  ;;  %v3046_v16 = vpop.permute.xlu1 %3045 }
 0x346   :  { %v3011_v2 = vmul.f32 %v3009_v8, %v6128_v63  ;;  %v3012_v25 = vmul.f32 %v3009_v8, %v3001_v0  ;;  %v3048_v54 = vmul.f32 %v3046_v16, %v6139_v27  ;;  %v3049_v18 = vmul.f32 %v3046_v16, %v6141_v11  ;;  %v6175_v0 = vld [vmem:[%s7075_s11 + $0x230] sm:$0xff] }
 0x347   :  { %v2378_v33 = vmax.f32 %v2377_v22, 0.0  ;;  %v6170_v22 = vld [vmem:[%s7075_s11 + $0x238] sm:$0xff]  ;;  %7166 = vst [vmem:[#allocation10_spill] sm:$0xff] %v6175_v0 }
 0x348   :  { %3015 = vrot.lane.b32.xlu0 %v3011_v2, %s4940_s25  ;;  %v3052_v24 = vrot.slane %v3048_v54, 1  ;;  %v3053_v55 = vrot.slane %v3049_v18, 1  ;;  %3017 = vrot.lane.b32.xlu1 %v3012_v25, %s4940_s25  ;;  %7165 = vst [vmem:[#allocation9_spill] sm:$0xff] %v6170_v22  ;;  %v6182_v25 = vld [vmem:[%s7075_s11 + $0x228] sm:$0xff]  ;;  %v6195_v54 = vld [vmem:[%s7075_s11 + $0x218] sm:$0xff] }
 0x349   :  { %v3068_v7 = vpop.permute.xlu0 %3067  ;;  %4508 = vmatmul.mubr.msk.f32.vlgmr.msra.gmra.mxu1 %vm2398_vm5, %v2378_v33  ;;  %v3115_v45 = vpop.permute.xlu1 %3114  ;;  %2709 = vmatprep.subr.mxu0 %v6170_v22  ;;  %7167 = vst [vmem:[#allocation11_spill] sm:$0xff] %v6182_v25  ;;  %v6189_v33 = vld [vmem:[%s7075_s11 + $0x220] sm:$0xff]  ;;  %7169 = vst [vmem:[#allocation13_spill] sm:$0xff] %v6195_v54  ;;  %v6200_v18 = vld [vmem:[%s7075_s11 + $0x178] sm:$0xff] }
 0x34a   :  { %v3070_v56 = vmul.f32 %v3068_v7, %v6139_v27  ;;  %v3071_v60 = vmul.f32 %v3068_v7, %v3059_v37  ;;  %v3072_v9 = vmul.f32 %v3068_v7, %v6141_v11  ;;  %v3073_v41 = vmul.f32 %v3068_v7, %v3060_v13  ;;  %2592 = vmatprep.mubr.f32.mxu1 %v7084_v4  ;;  %v6217_v37 = vld [vmem:[%s7075_s11 + $0x168] sm:$0xff]  ;;  %v6410_v4 = vld [vmem:[%s7075_s11 + $0x198] sm:$0xff] }
 0x34b   :  { %v3117_v44 = vmul.f32 %v3115_v45, %v6149_v36  ;;  %v3118_v32 = vmul.f32 %v3115_v45, %v6151_v31  ;;  %v3054_v43 = vsel %vm3033_vm6, %v3052_v24, %v3053_v55  ;;  %7168 = vst [vmem:[#allocation12_spill] sm:$0xff] %v6189_v33  ;;  %2710 = vmatpush1.msra.mxu0 %v6175_v0  ;;  %v6206_v24 = vld [vmem:[%s7075_s11 + $0x210] sm:$0xff]  ;;  %v6224_v7 = vld [vmem:[%s7075_s11 + $0x208] sm:$0xff]  ;;  %v6230_v45 = vld [vmem:[%s7075_s11 + $0x160] sm:$0xff] }
 0x34c   :  { %3055 = vrot.lane.b32.xlu0 %v3054_v43, %s4941_s26  ;;  %v3078_v6 = vrot.slane %v3070_v56, 1  ;;  %v3079_v51 = vrot.slane %v3072_v9, 1  ;;  %v3081_v50 = vrot.slane %v3071_v60, 1  ;;  %v3082_v48 = vrot.slane %v3073_v41, 1  ;;  %2711 = vmatprep.subr.mxu0 %v6182_v25  ;;  %7170 = vst [vmem:[#allocation14_spill] sm:$0xff] %v6206_v24  ;;  %v6212_v55 = vld [vmem:[%s7075_s11 + $0x170] sm:$0xff] }
 0x34d   :  { %v3137_v29 = vpop.permute.xlu0 %3136  ;;  %v3121_v14 = vrot.slane %v3117_v44, 2  ;;  %v3122_v3 = vrot.slane %v3118_v32, 2  ;;  %2536 = vmatprep.subr.mxu1 %v6200_v18  ;;  %2712 = vmatpush1.msra.mxu0 %v6189_v33  ;;  %7171 = vst [vmem:[#allocation15_spill] sm:$0xff] %v6224_v7  ;;  %v6237_v56 = vld [vmem:[%s7075_s11 + $0x200] sm:$0xff]  ;;  %v6242_v60 = vld [vmem:[%s7075_s11 + $0x158] sm:$0xff]  ;;  %v6254_v41 = vld [vmem:[%s7075_s11 + $0x150] sm:$0xff] }
 0x34e   :  { %v3139_v53 = vmul.f32 %v3137_v29, %v6149_v36  ;;  %v3141_v30 = vmul.f32 %v3137_v29, %v6151_v31  ;;  %v3140_v59 = vmul.f32 %v3137_v29, %v3128_v47  ;;  %v3142_v23 = vmul.f32 %v3137_v29, %v3129_v57  ;;  %2537 = vmatpush1.msra.mxu1 %v6212_v55  ;;  %v6248_v9 = vld [vmem:[%s7075_s11 + $0x1f8] sm:$0xff]  ;;  %v6260_v44 = vld [vmem:[%s7075_s11 + $0x1f0] sm:$0xff]  ;;  %v6266_v32 = vld [vmem:[%s7075_s11 + $0x148] sm:$0xff] }
 0x34f   :  { %v3080_v34 = vsel %vm3033_vm6, %v3078_v6, %v3079_v51  ;;  %v3083_v39 = vsel %vm3033_vm6, %v3081_v50, %v3082_v48  ;;  %v3123_v8 = vsel %vm3102_vm7, %v3121_v14, %v3122_v3  ;;  %2713 = vmatprep.subr.mxu0 %v6195_v54  ;;  %7172 = vst [vmem:[#allocation16_spill] sm:$0xff] %v6237_v56  ;;  %7173 = vst [vmem:[#allocation17_spill] sm:$0xff] %v6248_v9  ;;  %v6273_v43 = vld [vmem:[%s7075_s11 + $0x1e8] sm:$0xff]  ;;  %v6278_v6 = vld [vmem:[%s7075_s11 + $0x140] sm:$0xff] }
 0x350   :  { %3084 = vrot.lane.b32.xlu1 %v3080_v34, %s4940_s25  ;;  %3086 = vrot.lane.b32.xlu0 %v3083_v39, %s4940_s25  ;;  %v3147_v19 = vrot.slane %v3139_v53, 2  ;;  %v3148_v49 = vrot.slane %v3141_v30, 2  ;;  %v3150_v16 = vrot.slane %v3140_v59, 2  ;;  %v3151_v2 = vrot.slane %v3142_v23, 2  ;;  %7174 = vst [vmem:[#allocation18_spill] sm:$0xff] %v6260_v44  ;;  %7175 = vst [vmem:[#allocation19_spill] sm:$0xff] %v6273_v43 }
 0x351   :  { %2714 = vmatpush1.msra.mxu0 %v6206_v24  ;;  %2538 = vmatprep.subr.mxu1 %v6217_v37  ;;  %v6285_v51 = vld [vmem:[%s7075_s11 + $0x1e0] sm:$0xff]  ;;  %v6290_v50 = vld [vmem:[%s7075_s11 + $0x138] sm:$0xff]  ;;  %v6297_v48 = vld [vmem:[%s7075_s11 + $0x130] sm:$0xff]  ;;  %7185 = vst [vmem:[#allocation29_spill] sm:$0xff] %v6410_v4  ;;  %v3099_v54 = vmul.f32 %v6124_v28, %v6151_v31 }
 0x352   :  { %v3149_v15 = vsel %vm3102_vm7, %v3147_v19, %v3148_v49  ;;  %v3152_v13 = vsel %vm3102_vm7, %v3150_v16, %v3151_v2  ;;  %2715 = vmatprep.subr.mxu0 %v6224_v7  ;;  %2539 = vmatpush1.msra.mxu1 %v6230_v45  ;;  %7176 = vst [vmem:[#allocation20_spill] sm:$0xff] %v6285_v51  ;;  %v6302_v29 = vld [vmem:[%s7075_s11 + $0x1d8] sm:$0xff]  ;;  %v6309_v14 = vld [vmem:[%s7075_s11 + $0x128] sm:$0xff]  ;;  %v6314_v3 = vld [vmem:[%s7075_s11 + $0x1d0] sm:$0xff] }
 0x353   :  { %2716 = vmatpush1.msra.mxu0 %v6237_v56  ;;  %2540 = vmatprep.subr.mxu1 %v6242_v60  ;;  %7177 = vst [vmem:[#allocation21_spill] sm:$0xff] %v6302_v29  ;;  %7178 = vst [vmem:[#allocation22_spill] sm:$0xff] %v6314_v3  ;;  %v6321_v47 = vld [vmem:[%s7075_s11 + $0x120] sm:$0xff]  ;;  %v6331_v57 = vld [vmem:[%s7075_s11 + $0x118] sm:$0xff]  ;;  %v3104_v0 = vrot.slane %v3099_v54, 2 }
 0x354   :  { %3124 = vrot.lane.b32.xlu1 %v3123_v8, %s4941_s26  ;;  %3153 = vrot.lane.b32.xlu0 %v3149_v15, %s4940_s25  ;;  %v6336_v53 = vld [vmem:[%s7075_s11 + $0x110] sm:$0xff]  ;;  %v6341_v30 = vld [vmem:[%s7075_s11 + $0x108] sm:$0xff] }
 0x355   :  { %2717 = vmatprep.subr.mxu0 %v6248_v9  ;;  %2541 = vmatpush1.msra.mxu1 %v6254_v41  ;;  %v6347_v59 = vld [vmem:[%s7075_s11 + $0x100] sm:$0xff]  ;;  %v6352_v23 = vld [vmem:[%s7075_s11 + $0x1c8] sm:$0xff]  ;;  %v6359_v34 = vld [vmem:[%s7075_s11 + $0xf8] sm:$0xff] }
 0x356   :  { %2718 = vmatpush1.msra.mxu0 %v6260_v44  ;;  %2542 = vmatprep.subr.mxu1 %v6266_v32  ;;  %7179 = vst [vmem:[#allocation23_spill] sm:$0xff] %v6352_v23  ;;  %v6364_v39 = vld [vmem:[%s7075_s11 + $0x1c0] sm:$0xff]  ;;  %v6369_v19 = vld [vmem:[%s7075_s11 + $0x1b8] sm:$0xff]  ;;  %v6376_v49 = vld [vmem:[%s7075_s11 + $0xf0] sm:$0xff] }
 0x357   :  { %2719 = vmatprep.subr.mxu0 %v6273_v43  ;;  %2543 = vmatpush1.msra.mxu1 %v6278_v6  ;;  %7180 = vst [vmem:[#allocation24_spill] sm:$0xff] %v6364_v39  ;;  %7181 = vst [vmem:[#allocation25_spill] sm:$0xff] %v6369_v19  ;;  %v6381_v15 = vld [vmem:[%s7075_s11 + $0x1b0] sm:$0xff]  ;;  %v6388_v8 = vld [vmem:[%s7075_s11 + $0xe8] sm:$0xff]  ;;  %v2984_v43 = vmul.f32 %v6114_v52, %v6128_v63 }
 0x358   :  { %3155 = vrot.lane.b32.xlu1 %v3152_v13, %s4940_s25  ;;  %2720 = vmatpush1.msra.mxu0 %v6285_v51  ;;  %7182 = vst [vmem:[#allocation26_spill] sm:$0xff] %v6381_v15  ;;  %v6393_v16 = vld [vmem:[%s7075_s11 + $0x1a8] sm:$0xff]  ;;  %v6398_v2 = vld [vmem:[%s7075_s11 + $0x1a0] sm:$0xff] }
 0x359   :  { %2544 = vmatprep.subr.mxu1 %v6290_v50  ;;  %2721 = vmatprep.subr.mxu0 %v6302_v29  ;;  %7183 = vst [vmem:[#allocation27_spill] sm:$0xff] %v6393_v16  ;;  %7184 = vst [vmem:[#allocation28_spill] sm:$0xff] %v6398_v2  ;;  %v6405_v13 = vld [vmem:[%s7075_s11 + $0xe0] sm:$0xff]  ;;  %v3030_v29 = vmul.f32 %v6109_v46, %v6141_v11 }
 0x35a   :  { %2545 = vmatpush1.msra.mxu1 %v6297_v48  ;;  %2722 = vmatpush1.msra.mxu0 %v6314_v3  ;;  %v6453_v3 = vld [vmem:[%s7075_s11 + $0xc0] sm:$0xff] }
 0x35b   :  { %2546 = vmatprep.subr.mxu1 %v6309_v14  ;;  %2723 = vmatprep.subr.mxu0 %v6352_v23  ;;  %v6441_v23 = vld [vmem:[%s7075_s11 + $0xc8] sm:$0xff]  ;;  %v3035_v44 = vrot.slane %v3030_v29, 1  ;;  %v6486_v31 = vld [vmem:[%s7074_s10] ss:$0 sm:$0xff] }
 0x35c   :  { %2547 = vmatpush1.msra.mxu1 %v6321_v47  ;;  %2724 = vmatpush1.msra.mxu0 %v6364_v39  ;;  %v6429_v39 = vld [vmem:[%s7075_s11 + $0xd0] sm:$0xff]  ;;  %7190 = vst [vmem:[#allocation33_spill] sm:$0xff] %v6486_v31 }
 0x35d   :  { %2548 = vmatprep.subr.mxu1 %v6331_v57  ;;  %2725 = vmatprep.subr.mxu0 %v6369_v19  ;;  %v6417_v19 = vld [vmem:[%s7075_s11 + $0xd8] sm:$0xff] }
 0x35e   :  { %2549 = vmatpush1.msra.mxu1 %v6336_v53  ;;  %2726 = vmatpush1.msra.mxu0 %v6381_v15  ;;  %v6422_v15 = vld [vmem:[%s7075_s11 + $0x190] sm:$0xff] }
 0x35f   :  { %2550 = vmatprep.subr.mxu1 %v6341_v30  ;;  %2727 = vmatprep.subr.mxu0 %v6393_v16  ;;  %7186 = vst [vmem:[#allocation30_spill] sm:$0xff] %v6422_v15  ;;  %v6434_v16 = vld [vmem:[%s7075_s11 + $0x188] sm:$0xff] }
 0x360   :  { %2551 = vmatpush1.msra.mxu1 %v6347_v59  ;;  %2728 = vmatpush1.msra.mxu0 %v6398_v2  ;;  %7187 = vst [vmem:[#allocation31_spill] sm:$0xff] %v6434_v16  ;;  %v6446_v2 = vld [vmem:[%s7075_s11 + $0x180] sm:$0xff] }
 0x361   :  { %2552 = vmatprep.subr.mxu1 %v6359_v34  ;;  %2729 = vmatprep.subr.mxu0 %v6410_v4  ;;  %7188 = vst [vmem:[#allocation32_spill] sm:$0xff] %v6446_v2  ;;  %v6460_v4 = vld [vmem:[%s7075_s11 + $0xb8] sm:$0xff] }
 0x362   :  { %2553 = vmatpush1.msra.mxu1 %v6376_v49  ;;  %2730 = vmatpush1.msra.mxu0 %v6422_v15  ;;  %v7189_v15 = vmov 0.0  }
 0x363   :  { %2554 = vmatprep.subr.mxu1 %v6388_v8  ;;  %2731 = vmatprep.subr.mxu0 %v6434_v16  ;;  %v3029_v16 = vmul.f32 %v6109_v46, %v6139_v27  ;;  %v3098_v46 = vmul.f32 %v6124_v28, %v6149_v36 }
 0x364   :  { %2555 = vmatpush1.msra.mxu1 %v6405_v13  ;;  %2732 = vmatpush1.msra.mxu0 %v6446_v2 }
 0x365   :  { %2556 = vmatprep.subr.mxu1 %v6417_v19  ;;  %4545 = vmatprep.subr.mxu0 %v7189_v15  ;;  %v3034_v7 = vrot.slane %v3029_v16, 1 }
 0x366   :  { %2557 = vmatpush1.msra.mxu1 %v6429_v39 }
 0x367   :  { %2558 = vmatprep.subr.mxu1 %v6441_v23  ;;  %v3036_v11 = vsel %vm3033_vm6, %v3034_v7, %v3035_v44  ;;  %v6498_v7 = vld [vmem:[%s7075_s11 + $0xa8] sm:$0xff]  ;;  %v6511_v44 = vld [vmem:[%s7075_s11 + $0x98] sm:$0xff] }
 0x368   :  { %2559 = vmatpush1.msra.mxu1 %v6453_v3 }
 0x369   :  { %2610 = vmatprep.subr.mxu1 %v6460_v4 }
 0x3b6   :  { %v2998_v51 = vpop.permute.xlu1 %2997 }
 0x3b7   :  { %v3000_v56 = vadd.f32 %v2998_v51, %v2984_v43  ;;  %v3103_v43 = vrot.slane %v3098_v46, 2  ;;  %v6526_v46 = vld [vmem:[%s7075_s11 + $0x88] sm:$0xff] }
 0x3b8   :  { %7191 = vst [vmem:[#allocation34_spill] sm:$0xff] %v6526_v46 }
 0x3ba   :  { %v3016_v9 = vpop.permute.xlu0 %3015  ;;  %v3018_v2 = vpop.permute.xlu1 %3017 }
 0x3bb   :  { %v3019_v24 = vsel %vm2266_vm4, %v3016_v9, %v3018_v2  ;;  %v3105_v9 = vsel %vm3102_vm7, %v3103_v43, %v3104_v0  ;;  %v6556_v43 = vld [vmem:[%s7075_s11 + $0x60] sm:$0xff] }
 0x3bc   :  { %v3021_v33 = vadd.f32 %v3019_v24, %v3000_v56  ;;  %v6505_v56 = vld [vmem:[%s7075_s11 + $0xa0] sm:$0xff]  ;;  %7196 = vst [vmem:[#allocation39_spill] sm:$0xff] %v6556_v43 }
 0x3be   :  { %v3056_v25 = vpop.permute.xlu0 %3055  ;;  %v3038_v27 = vadd.f32 %v3036_v11, %v3021_v33  ;;  %v6493_v33 = vld [vmem:[%s7075_s11 + $0xb0] sm:$0xff] }
 0x3bf   :  { %v6518_v11 = vld [vmem:[%s7075_s11 + $0x90] sm:$0xff] }
 0x3c0   :  { %v3058_v52 = vadd.f32 %v3056_v25, %v3038_v27  ;;  %v6532_v27 = vld [vmem:[%s7075_s11 + $0x80] sm:$0xff] }
 0x3c1   :  { %7192 = vst [vmem:[#allocation35_spill] sm:$0xff] %v6532_v27 }
 0x3c2   :  { %v3085_v63 = vpop.permute.xlu1 %3084  ;;  %v3087_v29 = vpop.permute.xlu0 %3086 }
 0x3c3   :  { %v3088_v51 = vsel %vm2266_vm4, %v3085_v63, %v3087_v29  ;;  %v6544_v63 = vld [vmem:[%s7075_s11 + $0x70] sm:$0xff]  ;;  %v6550_v29 = vld [vmem:[%s7075_s11 + $0x68] sm:$0xff] }
 0x3c4   :  { %v3090_v16 = vadd.f32 %v3088_v51, %v3058_v52  ;;  %v6538_v52 = vld [vmem:[%s7075_s11 + $0x78] sm:$0xff]  ;;  %7194 = vst [vmem:[#allocation37_spill] sm:$0xff] %v6544_v63  ;;  %7195 = vst [vmem:[#allocation38_spill] sm:$0xff] %v6550_v29 }
 0x3c5   :  { %7193 = vst [vmem:[#allocation36_spill] sm:$0xff] %v6538_v52  ;;  %v6562_v51 = vld [vmem:[%s7075_s11 + $0x58] sm:$0xff] }
 0x3c6   :  { %v6481_v2 = vadd.f32 %v3105_v9, %v3090_v16  ;;  %7197 = vst [vmem:[#allocation40_spill] sm:$0xff] %v6562_v51  ;;  %v6568_v16 = vld [vmem:[%s7075_s11 + $0x50] sm:$0xff]  ;;  %v6574_v9 = vld [vmem:[%s7075_s11 + $0x48] sm:$0xff] }
 0x3c7   :  { %7198 = vst [vmem:[#allocation41_spill] sm:$0xff] %v6568_v16  ;;  %7199 = vst [vmem:[#allocation42_spill] sm:$0xff] %v6574_v9 }
 0x409   :  { %v2468_v24 = vpop.f32.mrf.mxu1 }
 0x40a   :  { %v2469_v28 = vadd.f32 %v6486_v31, %v2468_v24  ;;  %v6580_v24 = vld [vmem:[%s7075_s11 + $0x40] sm:$0xff]  ;;  %v6616_v31 = vld [vmem:[%s7075_s11 + $0x10] sm:$0xff] }
 0x40b   :  { %v4509_v36 = vpop.f32.mrf.mxu1  ;;  %7200 = vst [vmem:[#allocation43_spill] sm:$0xff] %v6580_v24  ;;  %7206 = vst [vmem:[#allocation49_spill] sm:$0xff] %v6616_v31 }
 0x40c   :  { %v2472_v25 = vmax.f32 %v2469_v28, 0.0  ;;  %v6586_v28 = vld [vmem:[%s7075_s11 + $0x38] sm:$0xff]  ;;  %v6592_v36 = vld [vmem:[%s7075_s11 + $0x30] sm:$0xff] }
 0x40d   :  { %7201 = vst [vmem:[#allocation44_spill] sm:$0xff] %v6586_v28  ;;  %7202 = vst [vmem:[#allocation45_spill] sm:$0xff] %v6592_v36 }
 0x40e   :  { %2474 = vst.msk [vmem:[#allocation4] sm:$0x7] %vm2473_vm8, %v2472_v25  ;;  %v6598_v25 = vld [vmem:[%s7075_s11 + $0x28] sm:$0xff] }
 0x40f   :  { %7203 = vst [vmem:[#allocation46_spill] sm:$0xff] %v6598_v25 }
 0x415   :  { %v2500_v0 = vld [vmem:[#allocation4 + $0x1] sm:$0x1]  ;;  %v2673_v54 = vld [vmem:[#allocation4 + $0x2] sm:$0x1] }
 0x416   :  { %3991 = vmatmul.mubr.msk.f32.vlgmr.msra.gmra.mxu1 %vm2398_vm5, %v2500_v0  ;;  %3993 = vmatmul.mubr.msk.f32.vlgmr.msra.gmra.mxu0 %vm2398_vm5, %v2673_v54  ;;  %v6604_v0 = vld [vmem:[%s7075_s11 + $0x20] sm:$0xff]  ;;  %v6610_v54 = vld [vmem:[%s7075_s11 + $0x18] sm:$0xff] }
 0x417   :  { %2611 = vmatpush1.msra.mxu1 %v6493_v33  ;;  %2666 = vmatprep.mubr.f32.mxu1 %v7189_v15  ;;  %7204 = vst [vmem:[#allocation47_spill] sm:$0xff] %v6604_v0  ;;  %7205 = vst [vmem:[#allocation48_spill] sm:$0xff] %v6610_v54 }
 0x418   :  { %2612 = vmatprep.subr.mxu1 %v6498_v7  ;;  %4577 = vmatprep.mubr.msk.f32.mxu0 %vm4942_vm3, %v7189_v15 }
 0x419   :  { %2613 = vmatpush1.msra.mxu1 %v6505_v56 }
 0x41a   :  { %2614 = vmatprep.subr.mxu1 %v6511_v44 }
 0x41b   :  { %2615 = vmatpush1.msra.mxu1 %v6518_v11 }
 0x41c   :  { %2616 = vmatprep.subr.mxu1 %v6526_v46 }
 0x41d   :  { %2617 = vmatpush1.msra.mxu1 %v6532_v27 }
 0x41e   :  { %2618 = vmatprep.subr.mxu1 %v6538_v52 }
 0x41f   :  { %2619 = vmatpush1.msra.mxu1 %v6544_v63 }
 0x420   :  { %2620 = vmatprep.subr.mxu1 %v6550_v29 }
 0x421   :  { %2621 = vmatpush1.msra.mxu1 %v6556_v43 }
 0x422   :  { %2622 = vmatprep.subr.mxu1 %v6562_v51 }
 0x423   :  { %2623 = vmatpush1.msra.mxu1 %v6568_v16 }
 0x424   :  { %2624 = vmatprep.subr.mxu1 %v6574_v9 }
 0x425   :  { %2625 = vmatpush1.msra.mxu1 %v6580_v24 }
 0x426   :  { %2626 = vmatprep.subr.mxu1 %v6586_v28  ;;  %v6622_v28 = vld [vmem:[%s7075_s11 + $0x8] sm:$0xff] }
 0x427   :  { %2627 = vmatpush1.msra.mxu1 %v6592_v36  ;;  %7207 = vst [vmem:[#allocation50_spill] sm:$0xff] %v6622_v28  ;;  %v6628_v36 = vld [vmem:[%s7075_s11] sm:$0xff] }
 0x428   :  { %2628 = vmatprep.subr.mxu1 %v6598_v25  ;;  %7208 = vst [vmem:[#allocation51_spill] sm:$0xff] %v6628_v36  ;;  %v2475_v25 = vld [vmem:[#allocation4] sm:$0x1] }
 0x429   :  { %2629 = vmatpush1.msra.mxu1 %v6604_v0  ;;  %v6690_v0 = vld [vmem:[%s7079_s15 + $0x60] sm:$0xff] }
 0x42a   :  { %2630 = vmatprep.subr.mxu1 %v6610_v54  ;;  %v6640_v54 = vld [vmem:[%s7077_s13 + $0x78] sm:$0xff]  ;;  %7217 = vst [vmem:[#allocation60_spill] sm:$0xff] %v6690_v0 }
 0x42b   :  { %2631 = vmatpush1.msra.mxu1 %v6616_v31  ;;  %7209 = vst [vmem:[#allocation52_spill] sm:$0xff] %v6640_v54  ;;  %v6671_v31 = vld [vmem:[%s7077_s13 + $0x60] sm:$0xff] }
 0x42c   :  { %2632 = vmatprep.subr.mxu1 %v6622_v28  ;;  %v6657_v28 = vld [vmem:[%s7077_s13 + $0x68] sm:$0xff]  ;;  %7214 = vst [vmem:[#allocation57_spill] sm:$0xff] %v6671_v31 }
 0x42d   :  { %2633 = vmatpush1.msra.mxu1 %v6628_v36  ;;  %v6647_v36 = vld [vmem:[%s7077_s13 + $0x70] sm:$0xff]  ;;  %7212 = vst [vmem:[#allocation55_spill] sm:$0xff] %v6657_v28 }
 0x42e   :  { %3992 = vmatmul.mubr.msk.f32.vlgmr.msra.gmra.mxu1 %vm2398_vm5, %v2475_v25  ;;  %4510 = vmatprep.subr.mxu1 %v7189_v15  ;;  %7210 = vst [vmem:[#allocation53_spill] sm:$0xff] %v6647_v36  ;;  %v6652_v25 = vld [vmem:[%s7079_s15 + $0x78] sm:$0xff] }
 0x42f   :  { %4542 = vmatprep.mubr.msk.f32.mxu1 %vm4942_vm3, %v7189_v15  ;;  %4511 = vmatpush3.msra.mxu1 %v6640_v54  ;;  %7211 = vst [vmem:[#allocation54_spill] sm:$0xff] %v6652_v25  ;;  %v6664_v54 = vld [vmem:[%s7079_s15 + $0x70] sm:$0xff] }
 0x430   :  { %4512 = vmatprep.subr.mxu1 %v7189_v15  ;;  %4546 = vmatpush3.msra.mxu0 %v6652_v25  ;;  %7213 = vst [vmem:[#allocation56_spill] sm:$0xff] %v6664_v54  ;;  %v6685_v25 = vld [vmem:[%s7077_s13 + $0x58] sm:$0xff] }
 0x431   :  { %4513 = vmatpush3.msra.mxu1 %v6647_v36  ;;  %4547 = vmatprep.subr.mxu0 %v7189_v15  ;;  %v6676_v36 = vld [vmem:[%s7079_s15 + $0x68] sm:$0xff]  ;;  %7216 = vst [vmem:[#allocation59_spill] sm:$0xff] %v6685_v25 }
 0x432   :  { %4514 = vmatprep.subr.mxu1 %v7189_v15  ;;  %7215 = vst [vmem:[#allocation58_spill] sm:$0xff] %v6676_v36  ;;  %4548 = vmatpush3.msra.mxu0 %v6664_v54  ;;  %v6699_v54 = vld [vmem:[%s7077_s13 + $0x50] sm:$0xff] }
 0x433   :  { %4515 = vmatpush3.msra.mxu1 %v6657_v28  ;;  %4549 = vmatprep.subr.mxu0 %v7189_v15  ;;  %7218 = vst [vmem:[#allocation61_spill] sm:$0xff] %v6699_v54  ;;  %v6704_v28 = vld [vmem:[%s7079_s15 + $0x58] sm:$0xff] }
 0x434   :  { %4516 = vmatprep.subr.mxu1 %v7189_v15  ;;  %4550 = vmatpush3.msra.mxu0 %v6676_v36  ;;  %7219 = vst [vmem:[#allocation62_spill] sm:$0xff] %v6704_v28  ;;  %v6713_v36 = vld [vmem:[%s7077_s13 + $0x48] sm:$0xff] }
 0x435   :  { %4517 = vmatpush3.msra.mxu1 %v6671_v31  ;;  %4551 = vmatprep.subr.mxu0 %v7189_v15  ;;  %7220 = vst [vmem:[#allocation63_spill] sm:$0xff] %v6713_v36  ;;  %v6718_v31 = vld [vmem:[%s7079_s15 + $0x50] sm:$0xff] }
 0x436   :  { %4518 = vmatprep.subr.mxu1 %v7189_v15  ;;  %4552 = vmatpush3.msra.mxu0 %v6690_v0  ;;  %7221 = vst [vmem:[#allocation64_spill] sm:$0xff] %v6718_v31  ;;  %v6727_v0 = vld [vmem:[%s7077_s13 + $0x40] sm:$0xff] }
 0x437   :  { %4519 = vmatpush3.msra.mxu1 %v6685_v25  ;;  %4553 = vmatprep.subr.mxu0 %v7189_v15  ;;  %7222 = vst [vmem:[#allocation65_spill] sm:$0xff] %v6727_v0  ;;  %v6732_v25 = vld [vmem:[%s7079_s15 + $0x48] sm:$0xff] }
 0x438   :  { %4520 = vmatprep.subr.mxu1 %v7189_v15  ;;  %4554 = vmatpush3.msra.mxu0 %v6704_v28  ;;  %7223 = vst [vmem:[#allocation66_spill] sm:$0xff] %v6732_v25  ;;  %v6741_v28 = vld [vmem:[%s7077_s13 + $0x38] sm:$0xff] }
 0x439   :  { %4521 = vmatpush3.msra.mxu1 %v6699_v54  ;;  %4555 = vmatprep.subr.mxu0 %v7189_v15  ;;  %7224 = vst [vmem:[#allocation67_spill] sm:$0xff] %v6741_v28  ;;  %v6746_v54 = vld [vmem:[%s7079_s15 + $0x40] sm:$0xff] }
 0x43a   :  { %4522 = vmatprep.subr.mxu1 %v7189_v15  ;;  %4556 = vmatpush3.msra.mxu0 %v6718_v31  ;;  %7225 = vst [vmem:[#allocation68_spill] sm:$0xff] %v6746_v54  ;;  %v6755_v31 = vld [vmem:[%s7077_s13 + $0x30] sm:$0xff] }
 0x43b   :  { %4523 = vmatpush3.msra.mxu1 %v6713_v36  ;;  %4557 = vmatprep.subr.mxu0 %v7189_v15  ;;  %7226 = vst [vmem:[#allocation69_spill] sm:$0xff] %v6755_v31  ;;  %v6760_v36 = vld [vmem:[%s7079_s15 + $0x38] sm:$0xff] }
 0x43c   :  { %4524 = vmatprep.subr.mxu1 %v7189_v15  ;;  %4558 = vmatpush3.msra.mxu0 %v6732_v25  ;;  %7227 = vst [vmem:[#allocation70_spill] sm:$0xff] %v6760_v36  ;;  %v6769_v25 = vld [vmem:[%s7077_s13 + $0x28] sm:$0xff] }
 0x43d   :  { %4525 = vmatpush3.msra.mxu1 %v6727_v0  ;;  %4559 = vmatprep.subr.mxu0 %v7189_v15  ;;  %7228 = vst [vmem:[#allocation71_spill] sm:$0xff] %v6769_v25  ;;  %v6774_v0 = vld [vmem:[%s7079_s15 + $0x30] sm:$0xff] }
 0x43e   :  { %4526 = vmatprep.subr.mxu1 %v7189_v15  ;;  %4560 = vmatpush3.msra.mxu0 %v6746_v54  ;;  %7229 = vst [vmem:[#allocation72_spill] sm:$0xff] %v6774_v0  ;;  %v6783_v54 = vld [vmem:[%s7077_s13 + $0x20] sm:$0xff] }
 0x43f   :  { %4527 = vmatpush3.msra.mxu1 %v6741_v28  ;;  %4561 = vmatprep.subr.mxu0 %v7189_v15  ;;  %7230 = vst [vmem:[#allocation73_spill] sm:$0xff] %v6783_v54 }
 0x440   :  { %4528 = vmatprep.subr.mxu1 %v7189_v15  ;;  %4562 = vmatpush3.msra.mxu0 %v6760_v36  ;;  %v6794_v36 = vld [vmem:[%s7079_s15 + $0x28] sm:$0xff] }
 0x441   :  { %4529 = vmatpush3.msra.mxu1 %v6755_v31  ;;  %4563 = vmatprep.subr.mxu0 %v7189_v15  ;;  %7231 = vst [vmem:[#allocation74_spill] sm:$0xff] %v6794_v36  ;;  %v6854_v31 = vld [vmem:[%s7079_s15] sm:$0xff] }
 0x442   :  { %4530 = vmatprep.subr.mxu1 %v7189_v15  ;;  %4564 = vmatpush3.msra.mxu0 %v6774_v0  ;;  %v6807_v0 = vld [vmem:[%s7079_s15 + $0x20] sm:$0xff]  ;;  %7240 = vst [vmem:[#allocation83_spill] sm:$0xff] %v6854_v31 }
 0x443   :  { %4531 = vmatpush3.msra.mxu1 %v6769_v25  ;;  %4565 = vmatprep.subr.mxu0 %v7189_v15  ;;  %v6800_v25 = vld [vmem:[%s7077_s13 + $0x18] sm:$0xff]  ;;  %7233 = vst [vmem:[#allocation76_spill] sm:$0xff] %v6807_v0 }
 0x444   :  { %4532 = vmatprep.subr.mxu1 %v7189_v15  ;;  %4566 = vmatpush3.msra.mxu0 %v6794_v36  ;;  %7232 = vst [vmem:[#allocation75_spill] sm:$0xff] %v6800_v25  ;;  %v6814_v36 = vld [vmem:[%s7077_s13 + $0x10] sm:$0xff] }
 0x445   :  { %4533 = vmatpush3.msra.mxu1 %v6783_v54  ;;  %4567 = vmatprep.subr.mxu0 %v7189_v15  ;;  %7234 = vst [vmem:[#allocation77_spill] sm:$0xff] %v6814_v36  ;;  %v6838_v54 = vld [vmem:[%s7077_s13] sm:$0xff] }
 0x446   :  { %4534 = vmatprep.subr.mxu1 %v7189_v15  ;;  %4568 = vmatpush3.msra.mxu0 %v6807_v0  ;;  %v6828_v0 = vld [vmem:[%s7077_s13 + $0x8] sm:$0xff]  ;;  %7238 = vst [vmem:[#allocation81_spill] sm:$0xff] %v6838_v54 }
 0x447   :  { %4535 = vmatpush3.msra.mxu1 %v6800_v25  ;;  %4569 = vmatprep.subr.mxu0 %v7189_v15  ;;  %v6821_v25 = vld [vmem:[%s7079_s15 + $0x18] sm:$0xff]  ;;  %7236 = vst [vmem:[#allocation79_spill] sm:$0xff] %v6828_v0 }
 0x448   :  { %4536 = vmatprep.subr.mxu1 %v7189_v15  ;;  %7235 = vst [vmem:[#allocation78_spill] sm:$0xff] %v6821_v25  ;;  %4570 = vmatpush3.msra.mxu0 %v6821_v25  ;;  %v6845_v25 = vld [vmem:[%s7079_s15 + $0x8] sm:$0xff] }
 0x449   :  { %4537 = vmatpush3.msra.mxu1 %v6814_v36  ;;  %v6833_v36 = vld [vmem:[%s7079_s15 + $0x10] sm:$0xff]  ;;  %4571 = vmatprep.subr.mxu0 %v7189_v15  ;;  %7239 = vst [vmem:[#allocation82_spill] sm:$0xff] %v6845_v25 }
 0x44a   :  { %4538 = vmatprep.subr.mxu1 %v7189_v15  ;;  %7237 = vst [vmem:[#allocation80_spill] sm:$0xff] %v6833_v36  ;;  %4572 = vmatpush3.msra.mxu0 %v6833_v36 }
 0x44b   :  { %4539 = vmatpush3.msra.mxu1 %v6828_v0  ;;  %4573 = vmatprep.subr.mxu0 %v7189_v15 }
 0x44c   :  { %4540 = vmatprep.subr.mxu1 %v7189_v15  ;;  %4574 = vmatpush3.msra.mxu0 %v6845_v25 }
 0x44d   :  { %4541 = vmatpush3.msra.mxu1 %v6838_v54  ;;  %4575 = vmatprep.subr.mxu0 %v7189_v15  ;;  %v2774_v54 = vld [vmem:[%s7076_s12] sm:$0x3] }
 0x44e   :  { %4580 = vmatprep.subr.mxu1 %v7189_v15  ;;  %4576 = vmatpush3.msra.mxu0 %v6854_v31  ;;  %v2779_v16 = vrot.slane %v2774_v54, %v5983_v12  ;;  %v2783_v29 = vrot.slane %v2774_v54, %v5988_v20  ;;  %v7275_v54 = vld [vmem:[#allocation59_spill] sm:$0xff] }
 0x44f   :  { %3325 = vmatprep.subr.mxu0 %v6200_v18  ;;  %v3125_v18 = vpop.permute.xlu1 %3124 }
 0x4d6   :  { %v2594_v36 = vpop.f32.mrf.mxu1  ;;  %v2767_v28 = vpop.f32.mrf.mxu0 }
 0x4d8   :  { %v2596_v0 = vpop.f32.mrf.mxu1  ;;  %v2769_v63 = vpop.f32.mrf.mxu0 }
 0x4ee   :  { %v2668_v24 = vpop.f32.mrf.mxu1 }
 0x4ef   :  { %v2669_v9 = vadd.f32 %v2668_v24, %v2594_v36  ;;  %v7271_v24 = vld [vmem:[#allocation17_spill] sm:$0xff]  ;;  %v7273_v36 = vld [vmem:[#allocation18_spill] sm:$0xff] }
 0x4f0   :  { %v2670_v25 = vpop.f32.mrf.mxu1 }
 0x4f1   :  { %v2772_v51 = vadd.f32 %v2767_v28, %v2669_v9  ;;  %v2671_v43 = vadd.f32 %v2670_v25, %v2596_v0  ;;  %v3156_v9 = vpop.permute.xlu1 %3155  ;;  %v7272_v28 = vld [vmem:[#allocation57_spill] sm:$0xff]  ;;  %v7274_v0 = vld [vmem:[#allocation19_spill] sm:$0xff]  ;;  %v7276_v25 = vld [vmem:[#allocation20_spill] sm:$0xff] }
 0x4f3   :  { %v2786_v31 = vadd.f32 %v2779_v16, %v2772_v51  ;;  %v2773_v52 = vadd.f32 %v2769_v63, %v2671_v43  ;;  %v7266_v63 = vld [vmem:[#allocation53_spill] sm:$0xff]  ;;  %v7268_v43 = vld [vmem:[#allocation15_spill] sm:$0xff]  ;;  %v7270_v16 = vld [vmem:[#allocation16_spill] sm:$0xff] }
 0x4f4   :  { %v7269_v51 = vld [vmem:[#allocation55_spill] sm:$0xff] }
 0x4f5   :  { %v2788_v27 = vmax.f32 %v2786_v31, 0.0  ;;  %v2787_v46 = vadd.f32 %v2783_v29, %v2773_v52  ;;  %v3154_v31 = vpop.permute.xlu0 %3153  ;;  %v7265_v52 = vld [vmem:[#allocation13_spill] sm:$0xff]  ;;  %v7267_v29 = vld [vmem:[#allocation14_spill] sm:$0xff] }
 0x4f7   :  { %v2789_v22 = vmax.f32 %v2787_v46, 0.0  ;;  %4543 = vmatmul.mubr.f32.vlgmr.msra.gmra.mxu1 %v2788_v27  ;;  %v7263_v46 = vld [vmem:[#allocation52_spill] sm:$0xff] }
 0x4f8   :  { %4581 = vmatpush3.msra.mxu1 %v5995_v17  ;;  %4604 = vmatprep.mubr.msk.f32.mxu1 %vm4942_vm3, %v7189_v15  ;;  %v3127_v17 = vadd.f32 %v3125_v18, %v6481_v2  ;;  %v7264_v27 = vld [vmem:[#allocation12_spill] sm:$0xff]  ;;  %v7277_v18 = vld [vmem:[#allocation21_spill] sm:$0xff] }
 0x4f9   :  { %4582 = vmatprep.subr.mxu1 %v7189_v15  ;;  %4578 = vmatmul.mubr.f32.vlgmr.msra.gmra.mxu0 %v2789_v22  ;;  %v7249_v22 = vld [vmem:[#allocation41_spill] sm:$0xff] }
 0x4fa   :  { %4583 = vmatpush3.msra.mxu1 %v6000_v21  ;;  %3326 = vmatpush1.msra.mxu0 %v6212_v55  ;;  %v3157_v21 = vsel %vm2266_vm4, %v3154_v31, %v3156_v9  ;;  %v7250_v55 = vld [vmem:[#allocation42_spill] sm:$0xff]  ;;  %v7278_v9 = vld [vmem:[#allocation61_spill] sm:$0xff]  ;;  %v7280_v31 = vld [vmem:[#allocation23_spill] sm:$0xff] }
 0x4fb   :  { %4584 = vmatprep.subr.mxu1 %v7189_v15  ;;  %3327 = vmatprep.subr.mxu0 %v6217_v37  ;;  %v7251_v37 = vld [vmem:[#allocation43_spill] sm:$0xff] }
 0x4fc   :  { %4585 = vmatpush3.msra.mxu1 %v6009_v40  ;;  %3328 = vmatpush1.msra.mxu0 %v6230_v45  ;;  %v3159_v40 = vadd.f32 %v3157_v21, %v3127_v17  ;;  %v7252_v45 = vld [vmem:[#allocation44_spill] sm:$0xff]  ;;  %v7279_v17 = vld [vmem:[#allocation22_spill] sm:$0xff]  ;;  %v7281_v21 = vld [vmem:[#allocation63_spill] sm:$0xff] }
 0x4fd   :  { %4586 = vmatprep.subr.mxu1 %v7189_v15  ;;  %3329 = vmatprep.subr.mxu0 %v6242_v60  ;;  %v7253_v60 = vld [vmem:[#allocation45_spill] sm:$0xff] }
 0x4fe   :  { %4587 = vmatpush3.msra.mxu1 %v6016_v38  ;;  %3330 = vmatpush1.msra.mxu0 %v6254_v41  ;;  %v3167_v38 = vadd.f32 %v6133_v61, %v3159_v40  ;;  %v7248_v61 = vld [vmem:[#allocation40_spill] sm:$0xff]  ;;  %v7254_v41 = vld [vmem:[#allocation46_spill] sm:$0xff] }
 0x4ff   :  { %4588 = vmatprep.subr.mxu1 %v7189_v15  ;;  %3331 = vmatprep.subr.mxu0 %v6266_v32  ;;  %v7255_v32 = vld [vmem:[#allocation47_spill] sm:$0xff]  ;;  %v7282_v40 = vld [vmem:[#allocation24_spill] sm:$0xff] }
 0x500   :  { %4589 = vmatpush3.msra.mxu1 %v6023_v62  ;;  %3332 = vmatpush1.msra.mxu0 %v6278_v6  ;;  %v3168_v62 = vmax.f32 %v3167_v38, 0.0  ;;  %v7256_v6 = vld [vmem:[#allocation48_spill] sm:$0xff]  ;;  %v7283_v38 = vld [vmem:[#allocation25_spill] sm:$0xff] }
 0x501   :  { %4590 = vmatprep.subr.mxu1 %v7189_v15  ;;  %3333 = vmatprep.subr.mxu0 %v6290_v50  ;;  %v7257_v50 = vld [vmem:[#allocation49_spill] sm:$0xff] }
 0x502   :  { %4591 = vmatpush3.msra.mxu1 %v6035_v1  ;;  %3334 = vmatpush1.msra.mxu0 %v6297_v48  ;;  %v3189_v1 = vrot.slane %v3168_v62, 5  ;;  %v7258_v48 = vld [vmem:[#allocation50_spill] sm:$0xff]  ;;  %v7284_v62 = vld [vmem:[#allocation65_spill] sm:$0xff] }
 0x503   :  { %4592 = vmatprep.subr.mxu1 %v7189_v15  ;;  %3335 = vmatprep.subr.mxu0 %v6309_v14  ;;  %v7259_v14 = vld [vmem:[#allocation51_spill] sm:$0xff] }
 0x504   :  { %4593 = vmatpush3.msra.mxu1 %v6047_v5  ;;  %3336 = vmatpush1.msra.mxu0 %v6321_v47  ;;  %v7241_v5 = vld [vmem:[#allocation9_spill] sm:$0xff] }
 0x505   :  { %4594 = vmatprep.subr.mxu1 %v7189_v15  ;;  %3337 = vmatprep.subr.mxu0 %v6331_v57  ;;  %v2893_v57 = vld [vmem:[%s7080_s16] sm:$0x1] }
 0x506   :  { %4595 = vmatpush3.msra.mxu1 %v6052_v10  ;;  %3338 = vmatpush1.msra.mxu0 %v6336_v53  ;;  %v7243_v10 = vld [vmem:[#allocation35_spill] sm:$0xff] }
 0x507   :  { %4596 = vmatprep.subr.mxu1 %v7189_v15  ;;  %3339 = vmatprep.subr.mxu0 %v6341_v30 }
 0x508   :  { %4597 = vmatpush3.msra.mxu1 %v6063_v35  ;;  %3340 = vmatpush1.msra.mxu0 %v6347_v59  ;;  %v7244_v35 = vld [vmem:[#allocation36_spill] sm:$0xff] }
 0x509   :  { %4598 = vmatprep.subr.mxu1 %v7189_v15  ;;  %3341 = vmatprep.subr.mxu0 %v6359_v34 }
 0x50a   :  { %4599 = vmatpush3.msra.mxu1 %v6071_v26  ;;  %3342 = vmatpush1.msra.mxu0 %v6376_v49  ;;  %v7245_v26 = vld [vmem:[#allocation37_spill] sm:$0xff] }
 0x50b   :  { %4600 = vmatprep.subr.mxu1 %v7189_v15  ;;  %3343 = vmatprep.subr.mxu0 %v6388_v8  ;;  %v7260_v49 = vld [vmem:[#allocation33_spill] sm:$0xff] }
 0x50c   :  { %4601 = vmatpush3.msra.mxu1 %v6079_v58  ;;  %3344 = vmatpush1.msra.mxu0 %v6405_v13  ;;  %v7246_v58 = vld [vmem:[#allocation38_spill] sm:$0xff] }
 0x50d   :  { %4602 = vmatprep.subr.mxu1 %v7189_v15  ;;  %3345 = vmatprep.subr.mxu0 %v6417_v19 }
 0x50e   :  { %4603 = vmatpush3.msra.mxu1 %v6084_v42  ;;  %3346 = vmatpush1.msra.mxu0 %v6429_v39  ;;  %v7247_v42 = vld [vmem:[#allocation39_spill] sm:$0xff]  ;;  %v2806_v39 = vld [vmem:[#allocation5] sm:$0x1] }
 0x50f   :  { %4605 = vmatmul.mubr.msk.f32.vlgmr.msra.gmra.mxu1 %vm2398_vm5, %v3189_v1  ;;  %3399 = vmatprep.subr.mxu1 %v6460_v4  ;;  %v7242_v4 = vld [vmem:[#allocation34_spill] sm:$0xff] }
 0x510   :  { %3400 = vmatpush1.msra.mxu1 %v6493_v33  ;;  %3347 = vmatprep.subr.mxu0 %v6441_v23  ;;  %v7285_v1 = vld [vmem:[#allocation26_spill] sm:$0xff] }
 0x511   :  { %3401 = vmatprep.subr.mxu1 %v6498_v7  ;;  %3348 = vmatpush1.msra.mxu0 %v6453_v3  ;;  %v4943_v3 = vmov 0  }
 0x512   :  { %3402 = vmatpush1.msra.mxu1 %v6505_v56  ;;  %3381 = vmatprep.mubr.f32.mxu0 %v7189_v15 }
 0x513   :  { %3403 = vmatprep.subr.mxu1 %v6511_v44  ;;  %3455 = vmatprep.mubr.f32.mxu1 %v7189_v15  ;;  %v7261_v44 = vld [vmem:[#allocation10_spill] sm:$0xff] }
 0x514   :  { %3404 = vmatpush1.msra.mxu1 %v6518_v11  ;;  %3498 = vmatprep.subr.mxu0 %v7241_v5  ;;  %v7262_v11 = vld [vmem:[#allocation11_spill] sm:$0xff] }
 0x515   :  { %3405 = vmatprep.subr.mxu1 %v7242_v4  ;;  %4684 = vset.pattern.permute.xlu0 %v4943_v3  ;;  %v7286_v5 = vld [vmem:[#allocation27_spill] sm:$0xff] }
 0x516   :  { %3406 = vmatpush1.msra.mxu1 %v7243_v10  ;;  %4685 = vset.pattern.permute.xlu1 %v4943_v3  ;;  %v7287_v4 = vld [vmem:[#allocation67_spill] sm:$0xff]  ;;  %v7288_v10 = vld [vmem:[#allocation28_spill] sm:$0xff]  ;;  %v7304_v3 = vld [vmem:[#allocation81_spill] sm:$0xff] }
 0x517   :  { %3407 = vmatprep.subr.mxu1 %v7244_v35  ;;  %v7289_v35 = vld [vmem:[#allocation29_spill] sm:$0xff] }
 0x518   :  { %3408 = vmatpush1.msra.mxu1 %v7245_v26  ;;  %v7290_v26 = vld [vmem:[#allocation69_spill] sm:$0xff] }
 0x519   :  { %3409 = vmatprep.subr.mxu1 %v7246_v58  ;;  %v7291_v58 = vld [vmem:[#allocation30_spill] sm:$0xff] }
 0x51a   :  { %3410 = vmatpush1.msra.mxu1 %v7247_v42  ;;  %v7292_v42 = vld [vmem:[#allocation31_spill] sm:$0xff] }
 0x51b   :  { %3411 = vmatprep.subr.mxu1 %v7248_v61  ;;  %v7293_v61 = vld [vmem:[#allocation71_spill] sm:$0xff] }
 0x51c   :  { %3412 = vmatpush1.msra.mxu1 %v7249_v22  ;;  %v7294_v22 = vld [vmem:[#allocation32_spill] sm:$0xff] }
 0x51d   :  { %3413 = vmatprep.subr.mxu1 %v7250_v55 }
 0x51e   :  { %3414 = vmatpush1.msra.mxu1 %v7251_v37  ;;  %v7295_v37 = vld [vmem:[#allocation54_spill] sm:$0xff] }
 0x51f   :  { %3415 = vmatprep.subr.mxu1 %v7252_v45  ;;  %v7296_v45 = vld [vmem:[#allocation73_spill] sm:$0xff] }
 0x520   :  { %3416 = vmatpush1.msra.mxu1 %v7253_v60  ;;  %v7297_v60 = vld [vmem:[#allocation56_spill] sm:$0xff] }
 0x521   :  { %3417 = vmatprep.subr.mxu1 %v7254_v41  ;;  %v7298_v41 = vld [vmem:[#allocation75_spill] sm:$0xff] }
 0x522   :  { %3418 = vmatpush1.msra.mxu1 %v7255_v32  ;;  %v7299_v32 = vld [vmem:[#allocation58_spill] sm:$0xff] }
 0x523   :  { %3419 = vmatprep.subr.mxu1 %v7256_v6  ;;  %v7300_v6 = vld [vmem:[#allocation77_spill] sm:$0xff] }
 0x524   :  { %3420 = vmatpush1.msra.mxu1 %v7257_v50  ;;  %v7301_v50 = vld [vmem:[#allocation60_spill] sm:$0xff] }
 0x525   :  { %3421 = vmatprep.subr.mxu1 %v7258_v48  ;;  %v7302_v48 = vld [vmem:[#allocation79_spill] sm:$0xff] }
 0x526   :  { %3422 = vmatpush1.msra.mxu1 %v7259_v14  ;;  %v7303_v14 = vld [vmem:[#allocation62_spill] sm:$0xff] }
 0x527   :  { %4607 = vmatprep.subr.mxu1 %v7189_v15 }
 0x5b7   :  { %v2873_v47 = vpop.f32.mrf.mxu1 }
 0x5b8   :  { %v2874_v13 = vadd.f32 %v2873_v47, %v2806_v39  ;;  %v7305_v47 = vld [vmem:[#allocation64_spill] sm:$0xff] }
 0x5b9   :  { %v4544_v53 = vpop.f32.mrf.mxu1  ;;  %v2960_v30 = vpop.f32.mrf.mxu0  ;;  %v7311_v39 = vld [vmem:[#allocation76_spill] sm:$0xff] }
 0x5ba   :  { %v6949_v59 = vadd.f32 %v2960_v30, %v2893_v57  ;;  %v7306_v57 = vld [vmem:[#allocation66_spill] sm:$0xff]  ;;  %v7307_v53 = vld [vmem:[#allocation68_spill] sm:$0xff] }
 0x5bb   :  { %v4579_v23 = vpop.f32.mrf.mxu0  ;;  %v7308_v30 = vld [vmem:[#allocation70_spill] sm:$0xff] }
 0x5bc   :  { %v2971_v34 = vsel %vm2970_vm9, %v6949_v59, 0.0  ;;  %v7309_v23 = vld [vmem:[#allocation72_spill] sm:$0xff] }
 0x5bd   :  { %2972 = vadd.xlane.f32.xlu0 %v2971_v34  ;;  %v7310_v34 = vld [vmem:[#allocation74_spill] sm:$0xff] }
 0x5cf   :  { %v3258_v19 = vpop.f32.mrf.mxu1 }
 0x5d0   :  { %v3259_v8 = vadd.f32 %v7260_v49, %v3258_v19  ;;  %v7312_v19 = vld [vmem:[#allocation78_spill] sm:$0xff]  ;;  %v7313_v49 = vld [vmem:[#allocation80_spill] sm:$0xff] }
 0x5d1   :  { %v4606_v2 = vpop.f32.mrf.mxu1 }
 0x5d2   :  { %v3262_v33 = vmax.f32 %v3259_v8, 0.0  ;;  %v7314_v8 = vld [vmem:[#allocation82_spill] sm:$0xff] }
 0x5d3   :  { %2966 = vperm.xlu0 %4684, %v2874_v13   ;;  %v7315_v13 = vld [vmem:[#allocation83_spill] sm:$0xff] }
 0x5d4   :  { %3263 = vst.msk [vmem:[#allocation4] sm:$0x7] %vm2473_vm8, %v3262_v33 }
 0x5db   :  { %v3289_v7 = vld [vmem:[#allocation4 + $0x1] sm:$0x1]  ;;  %v3264_v56 = vld [vmem:[#allocation4] sm:$0x1]  ;;  %v3462_v55 = vld [vmem:[#allocation4 + $0x2] sm:$0x1] }
 0x5dc   :  { %4006 = vmatmul.mubr.msk.f32.vlgmr.msra.gmra.mxu0 %vm2398_vm5, %v3289_v7  ;;  %4007 = vmatmul.mubr.msk.f32.vlgmr.msra.gmra.mxu1 %vm2398_vm5, %v3264_v56 }
 0x5dd   :  { %3499 = vmatpush1.msra.mxu0 %v7261_v44  ;;  %3554 = vmatprep.mubr.f32.mxu0 %v7189_v15 }
 0x5de   :  { %3500 = vmatprep.subr.mxu0 %v7262_v11  ;;  %4608 = vmatpush3.msra.mxu1 %v7263_v46 }
 0x5df   :  { %3501 = vmatpush1.msra.mxu0 %v7264_v27  ;;  %4609 = vmatprep.subr.mxu1 %v7189_v15  ;;  %v3563_v27 = vld [vmem:[%s7076_s12] sm:$0x3] }
 0x5e0   :  { %3502 = vmatprep.subr.mxu0 %v7265_v52  ;;  %4610 = vmatpush3.msra.mxu1 %v7266_v63 }
 0x5e1   :  { %3503 = vmatpush1.msra.mxu0 %v7267_v29  ;;  %4611 = vmatprep.subr.mxu1 %v7189_v15 }
 0x5e2   :  { %3504 = vmatprep.subr.mxu0 %v7268_v43  ;;  %4612 = vmatpush3.msra.mxu1 %v7269_v51 }
 0x5e3   :  { %3505 = vmatpush1.msra.mxu0 %v7270_v16  ;;  %4613 = vmatprep.subr.mxu1 %v7189_v15 }
 0x5e4   :  { %3506 = vmatprep.subr.mxu0 %v7271_v24  ;;  %4614 = vmatpush3.msra.mxu1 %v7272_v28  ;;  %v3572_v24 = vrot.slane %v3563_v27, %v5988_v20  ;;  %v3595_v20 = vld [vmem:[#allocation5] sm:$0x1] }
 0x5e5   :  { %3507 = vmatpush1.msra.mxu0 %v7273_v36  ;;  %4615 = vmatprep.subr.mxu1 %v7189_v15 }
 0x5e6   :  { %3508 = vmatprep.subr.mxu0 %v7274_v0  ;;  %4616 = vmatpush3.msra.mxu1 %v7275_v54 }
 0x5e7   :  { %3509 = vmatpush1.msra.mxu0 %v7276_v25  ;;  %4617 = vmatprep.subr.mxu1 %v7189_v15 }
 0x5e8   :  { %3510 = vmatprep.subr.mxu0 %v7277_v18  ;;  %4618 = vmatpush3.msra.mxu1 %v7278_v9  ;;  %v3682_v9 = vld [vmem:[%s7080_s16] sm:$0x1]  ;;  %s4916_s16 = scalar_lea.vmem %s3772_s14, 32 }
 0x5e9   :  { %3511 = vmatpush1.msra.mxu0 %v7279_v17  ;;  %4619 = vmatprep.subr.mxu1 %v7189_v15  ;;  %p4917_p0 = scmp.ne.s32.totalorder %s3772_s14, %s4916_s16  ;;  %p4922_p2 = scmp.lt.s32.totalorder %s4916_s16, %s4916_s16 }
 0x5ea   :  { %3512 = vmatprep.subr.mxu0 %v7280_v31  ;;  %4620 = vmatpush3.msra.mxu1 %v7281_v21 }
 0x5eb   :  { %3513 = vmatpush1.msra.mxu0 %v7282_v40  ;;  %4621 = vmatprep.subr.mxu1 %v7189_v15  ;;  %p4923_p3 = por %p4922_p2, %p4921_p1 }
 0x5ec   :  { %3514 = vmatprep.subr.mxu0 %v7283_v38  ;;  %4622 = vmatpush3.msra.mxu1 %v7284_v62 }
 0x5ed   :  { %3515 = vmatpush1.msra.mxu0 %v7285_v1  ;;  %4623 = vmatprep.subr.mxu1 %v7189_v15  ;;  %p4924_p4 = pnand %p4923_p3, %p4917_p0 }
 0x5ee   :  { %3516 = vmatprep.subr.mxu0 %v7286_v5  ;;  %4624 = vmatpush3.msra.mxu1 %v7287_v4 }
 0x5ef   :  { %3517 = vmatpush1.msra.mxu0 %v7288_v10  ;;  %4625 = vmatprep.subr.mxu1 %v7189_v15 }
 0x5f0   :  { %3518 = vmatprep.subr.mxu0 %v7289_v35  ;;  %4626 = vmatpush3.msra.mxu1 %v7290_v26 }
 0x5f1   :  { %3519 = vmatpush1.msra.mxu0 %v7291_v58  ;;  %4627 = vmatprep.subr.mxu1 %v7189_v15 }
 0x5f2   :  { %3520 = vmatprep.subr.mxu0 %v7292_v42  ;;  %4628 = vmatpush3.msra.mxu1 %v7293_v61 }
 0x5f3   :  { %3521 = vmatpush1.msra.mxu0 %v7294_v22  ;;  %4629 = vmatprep.subr.mxu1 %v7189_v15 }
 0x5f4   :  { %4008 = vmatmul.mubr.msk.f32.vlgmr.msra.gmra.mxu0 %vm2398_vm5, %v3462_v55  ;;  %4642 = vmatprep.subr.mxu0 %v7189_v15 }
 0x5f5   :  { %4643 = vmatpush3.msra.mxu0 %v7295_v37  ;;  %4630 = vmatpush3.msra.mxu1 %v7296_v45 }
 0x5f6   :  { %4644 = vmatprep.subr.mxu0 %v7189_v15  ;;  %4631 = vmatprep.subr.mxu1 %v7189_v15 }
 0x5f7   :  { %4645 = vmatpush3.msra.mxu0 %v7297_v60  ;;  %4632 = vmatpush3.msra.mxu1 %v7298_v41 }
 0x5f8   :  { %4646 = vmatprep.subr.mxu0 %v7189_v15  ;;  %4633 = vmatprep.subr.mxu1 %v7189_v15 }
 0x5f9   :  { %4647 = vmatpush3.msra.mxu0 %v7299_v32  ;;  %4634 = vmatpush3.msra.mxu1 %v7300_v6 }
 0x5fa   :  { %4648 = vmatprep.subr.mxu0 %v7189_v15  ;;  %4635 = vmatprep.subr.mxu1 %v7189_v15 }
 0x5fb   :  { %4649 = vmatpush3.msra.mxu0 %v7301_v50  ;;  %4636 = vmatpush3.msra.mxu1 %v7302_v48 }
 0x5fc   :  { %4650 = vmatprep.subr.mxu0 %v7189_v15  ;;  %4637 = vmatprep.subr.mxu1 %v7189_v15 }
 0x5fd   :  { %4651 = vmatpush3.msra.mxu0 %v7303_v14  ;;  %4638 = vmatpush3.msra.mxu1 %v7304_v3 }
 0x5fe   :  { %4652 = vmatprep.subr.mxu0 %v7189_v15  ;;  %4639 = vmatprep.mubr.msk.f32.mxu1 %vm4942_vm3, %v7189_v15 }
 0x5ff   :  { %4653 = vmatpush3.msra.mxu0 %v7305_v47  ;;  %4674 = vmatprep.mubr.msk.f32.mxu0 %vm4942_vm3, %v7189_v15 }
 0x600   :  { %4654 = vmatprep.subr.mxu0 %v7189_v15 }
 0x601   :  { %4655 = vmatpush3.msra.mxu0 %v7306_v57 }
 0x602   :  { %4656 = vmatprep.subr.mxu0 %v7189_v15 }
 0x603   :  { %4657 = vmatpush3.msra.mxu0 %v7307_v53 }
 0x604   :  { %4658 = vmatprep.subr.mxu0 %v7189_v15 }
 0x605   :  { %4659 = vmatpush3.msra.mxu0 %v7308_v30 }
 0x606   :  { %4660 = vmatprep.subr.mxu0 %v7189_v15 }
 0x607   :  { %4661 = vmatpush3.msra.mxu0 %v7309_v23 }
 0x608   :  { %4662 = vmatprep.subr.mxu0 %v7189_v15 }
 0x609   :  { %4663 = vmatpush3.msra.mxu0 %v7310_v34 }
 0x60a   :  { %4664 = vmatprep.subr.mxu0 %v7189_v15 }
 0x60b   :  { %4665 = vmatpush3.msra.mxu0 %v7311_v39 }
 0x60c   :  { %4666 = vmatprep.subr.mxu0 %v7189_v15 }
 0x60d   :  { %4667 = vmatpush3.msra.mxu0 %v7312_v19 }
 0x60e   :  { %4668 = vmatprep.subr.mxu0 %v7189_v15 }
 0x60f   :  { %4669 = vmatpush3.msra.mxu0 %v7313_v49 }
 0x610   :  { %4670 = vmatprep.subr.mxu0 %v7189_v15 }
 0x611   :  { %4671 = vmatpush3.msra.mxu0 %v7314_v8 }
 0x612   :  { %4672 = vmatprep.subr.mxu0 %v7189_v15  ;;  %v3568_v15 = vrot.slane %v3563_v27, %v5983_v12 }
 0x613   :  { %4673 = vmatpush3.msra.mxu0 %v7315_v13 }
 0x646   :  { %v2973_v2 = vpop.xlane.xlu0 %2972 }
 0x647   :  { %v2975_v7 = vmul.f32 0.16666667, %v2973_v2 }
 0x64e   :  { %v2967_v33 = vpop.permute.xlu0 %2966 }
 0x64f   :  { %v2969_v56 = vadd.f32 %v2967_v33, %v6949_v59 }
 0x651   :  { %v2976_v44 = vsub.f32 %v2969_v56, %v2975_v7 }
 0x653   :  { %2977 = vst.msk [vmem:[#allocation6] sm:$0x1] %vm2970_vm9, %v2976_v44 }
 0x69c   :  { %v3383_v11 = vpop.f32.mrf.mxu0  ;;  %v3457_v46 = vpop.f32.mrf.mxu1 }
 0x69d   :  { %v3458_v29 = vadd.f32 %v3457_v46, %v3383_v11 }
 0x69e   :  { %v3385_v52 = vpop.f32.mrf.mxu0  ;;  %v3459_v63 = vpop.f32.mrf.mxu1 }
 0x69f   :  { %v3460_v51 = vadd.f32 %v3459_v63, %v3385_v52 }
 0x6b4   :  { %v3556_v43 = vpop.f32.mrf.mxu0 }
 0x6b5   :  { %v3561_v16 = vadd.f32 %v3556_v43, %v3458_v29 }
 0x6b6   :  { %v3558_v59 = vpop.f32.mrf.mxu0 }
 0x6b7   :  { %v3575_v28 = vadd.f32 %v3568_v15, %v3561_v16  ;;  %v3562_v36 = vadd.f32 %v3558_v59, %v3460_v51 }
 0x6b9   :  { %v3577_v0 = vmax.f32 %v3575_v28, 0.0  ;;  %v3576_v54 = vadd.f32 %v3572_v24, %v3562_v36 }
 0x6bb   :  { %v3578_v25 = vmax.f32 %v3576_v54, 0.0  ;;  %4640 = vmatmul.mubr.f32.vlgmr.msra.gmra.mxu1 %v3577_v0 }
 0x6bd   :  { %4675 = vmatmul.mubr.f32.vlgmr.msra.gmra.mxu0 %v3578_v25 }
 0x77b   :  { %v3662_v18 = vpop.f32.mrf.mxu1 }
 0x77c   :  { %v3663_v38 = vadd.f32 %v3662_v18, %v3595_v20 }
 0x77d   :  { %v4641_v17 = vpop.f32.mrf.mxu1  ;;  %v3749_v12 = vpop.f32.mrf.mxu0 }
 0x77e   :  { %v3750_v31 = vadd.f32 %v3749_v12, %v3682_v9 }
 0x77f   :  { %v4676_v21 = vpop.f32.mrf.mxu0 }
 0x780   :  { %v3759_v40 = vsel %vm2970_vm9, %v3750_v31, 0.0 }
 0x781   :  { %3760 = vadd.xlane.f32.xlu1 %v3759_v40 }
 0x792   :  { %3755 = vperm.xlu1 %4685, %v3663_v38  }
 0x80a   :  { %v3761_v62 = vpop.xlane.xlu1 %3760 }
 0x80b   :  { %v3762_v5 = vmul.f32 0.16666667, %v3761_v62 }
 0x80e   :  { %v3756_v1 = vpop.permute.xlu1 %3755 }
 0x80f   :  { %v3758_v4 = vadd.f32 %v3756_v1, %v3750_v31 }
 0x811   :  { %v3763_v10 = vsub.f32 %v3758_v4, %v3762_v5 }
 0x813   :  { %3764 = vst.msk [vmem:[#allocation6 + $0x1] sm:$0x1] %vm2970_vm9, %v3763_v10 }
 0x814   :  { %4927 = shalt.err (!%p4924_p4)
}
 0x815   :  { %3774 = dma.vmem_to_hbm [thread:$0]  %s3772_s14, 32, %s7081_s17, [#allocation7]  }
 0x816   :  { %4936 = dma.done.wait [#allocation7], 32  }
 0x817   :  { %4937 = vsyncadd [#allocation7], 4294967264 }
 0x818   :  { %3778 = vsyncpa [#allocation7], 1 }

</bundles_post_ra>
